<compile_context>
chip_gen: v7x
topology: tpu7x:2x2x1
jax: 0.10.0
libtpu: 0.0.40
codegen_flags: <defaults>
</compile_context>

<pallas_src>
import jax
import jax.numpy as jnp
from jax.experimental import pallas as pl
from jax.experimental.pallas import tpu as pltpu

# ----------------------------- configuration --------------------------------
B = 2            # batch
IN_CH = 4        # in_channel
NUM_HIDDEN = 16  # num_hidden
T = 2            # window_length
H = 8
W = 8
FILTER = (2, 3, 3)                                   # filter_size
PAD = (0, FILTER[1] // 2, FILTER[2] // 2)            # Conv3d padding
TAU = 2                                              # eidetic memory depth (tau*T along time)
EPS = 1e-5                                           # nn.LayerNorm default eps
FORGET_BIAS = 1.0
GEMM_DTYPE = jnp.bfloat16                            # bf16 operands, f32 accumulation on MXU

# conv output extent (stride 1) before the nearest-neighbor resize back to (T, H, W)
TO = T + 2 * PAD[0] - FILTER[0] + 1                  # 1
HO = H + 2 * PAD[1] - FILTER[1] + 1                  # 8
WO = W + 2 * PAD[2] - FILTER[2] + 1                  # 8
# The column-duplication trick (im2col columns tiled Tx) realizes the nearest interpolation
# exactly, and the fused LayerNorm then runs on the literal post-interp tensor.  Both are
# only valid under this configuration -- guard it.
assert TO == 1 and T % TO == 0 and HO == H and WO == W

SPATIAL = TO * HO * WO                               # 64  (pre-interp positions)
THW = T * H * W                                      # 128 (post-interp positions, lane-dense)
KK = FILTER[0] * FILTER[1] * FILTER[2]               # 18
K_HID = NUM_HIDDEN * KK                              # 288
K_IN = IN_CH * KK                                    # 72
N_KV = TAU * THW                                     # 256 eidetic memory rows


def _ceil_to(x, m):
    return ((x + m - 1) // m) * m


# stage-1 combined GEMM: rows = [conv_h (4C) | conv_gm (4C) | conv_x (7C) | zero pad]
K1 = 2 * K_HID + K_IN                                # 648
K1_PAD = _ceil_to(K1, 128)                           # 768
N1 = 15 * NUM_HIDDEN                                 # 240
N1_PAD = _ceil_to(N1, 128)                           # 256

# stage-3 combined GEMM: rows = [conv_new_cell (C) | conv_new_gm (C)]
K3 = 2 * K_HID                                       # 576
K3_PAD = _ceil_to(K3, 128)                           # 640

# "parallel" batch axis: the only way to use a second TensorCore on v7x; on 1-TC chips it
# is equivalent to "arbitrary".  (Review: measure vs single-core; kept parallel here.)
_PARALLEL = pltpu.CompilerParams(dimension_semantics=("parallel",))


# ----------------------------- kernel helpers --------------------------------
def _ln_all(x):
    """nn.LayerNorm over every element of x (default identity affine params)."""
    m = jnp.mean(x)
    v = jnp.mean(jnp.square(x - m))
    return (x - m) * jax.lax.rsqrt(v + EPS)


def _split_rows(x, n):
    c = NUM_HIDDEN
    return [x[i * c:(i + 1) * c] for i in range(n)]


# ------------------------------ stage 1 kernel --------------------------------
def _stage1_kernel(a_ref, w_ref, gates_ref):
    C = NUM_HIDDEN
    # one block-diagonal MXU GEMM computes conv_h | conv_gm | conv_x at full 128-lane width
    y = jnp.dot(w_ref[...], a_ref[0], preferred_element_type=jnp.float32)   # (N1_PAD, THW)

    # fused LayerNorm epilogue (columns are already the interpolated T frames -> exact)
    yh = _ln_all(y[0:4 * C])                  # conv_h  + LN, (4C, THW)
    yg = _ln_all(y[4 * C:8 * C])              # conv_gm + LN, (4C, THW)
    yx = _ln_all(y[8 * C:15 * C])             # conv_x  + LN, (7C, THW)

    i_h, g_h, r_h, o_h = _split_rows(yh, 4)
    i_m, f_m, g_m, m_m = _split_rows(yg, 4)
    i_x, g_x, r_x, o_x, ti_x, tg_x, tf_x = _split_rows(yx, 7)

    i_t = jax.nn.sigmoid(i_x + i_h)
    r_t = jax.nn.sigmoid(r_x + r_h)
    g_t = jnp.tanh(g_x + g_h)
    i_g = i_t * g_t
    o_sum = o_x + o_h

    t_i = jax.nn.sigmoid(ti_x + i_m)
    t_f = jax.nn.sigmoid(tf_x + f_m + FORGET_BIAS)
    t_g = jnp.tanh(tg_x + g_m)
    new_gm = t_f * jnp.tanh(m_m) + t_i * t_g

    # single unmasked lane-dense store of the stacked gate block [r_t | i_t*g_t | o_x+o_h | new_gm]
    gates_ref[0] = jnp.concatenate([r_t, i_g, o_sum, new_gm], axis=0)       # (4C, THW)


def _stage1_call(a1, w1):
    b = a1.shape[0]
    return pl.pallas_call(
        _stage1_kernel,
        out_shape=jax.ShapeDtypeStruct((b, 4 * NUM_HIDDEN, THW), jnp.float32),
        grid=(b,),
        in_specs=[pl.BlockSpec((1, K1_PAD, THW), lambda i: (i, 0, 0)),
                  pl.BlockSpec((N1_PAD, K1_PAD), lambda i: (0, 0))],
        out_specs=pl.BlockSpec((1, 4 * NUM_HIDDEN, THW), lambda i: (i, 0, 0)),
        compiler_params=_PARALLEL,
    )(a1, w1)


# ------------------------------ stage 2 kernel --------------------------------
def _stage2_kernel(q_ref, kv_ref, c_ref, ig_ref, o_ref):
    q = q_ref[0]        # (THW, C)   raw reshape(B,-1,C) view of r_t
    kv = kv_ref[0]      # (N_KV, C)  raw reshape view of eidetic_cell (keys == values)
    # attn = softmax(Q K^T, axis=-1) V   (unscaled, exactly like the reference)
    s = jax.lax.dot_general(q, kv, (((1,), (1,)), ((), ())),
                            preferred_element_type=jnp.float32)          # (THW, N_KV)
    s = s - jnp.max(s, axis=-1, keepdims=True)
    e = jnp.exp(s)
    # EUP reciprocal instead of a VALU divide
    p = e * pl.reciprocal(jnp.sum(e, axis=-1, keepdims=True), approx=False)
    attn = jnp.dot(p, kv, preferred_element_type=jnp.float32)            # (THW, C)

    # new_cell = LayerNorm(c_t + attn) + i_t * g_t ; LN over the whole per-batch tensor is
    # permutation-invariant, so computing it in the reshaped view is exact.
    o_ref[0] = _ln_all(c_ref[0] + attn) + ig_ref[0]


def _stage2_call(q, kv, cc, ig):
    b, nq, c = q.shape
    nk = kv.shape[1]
    spec_q = pl.BlockSpec((1, nq, c), lambda i: (i, 0, 0))
    spec_kv = pl.BlockSpec((1, nk, c), lambda i: (i, 0, 0))
    return pl.pallas_call(
        _stage2_kernel,
        out_shape=jax.ShapeDtypeStruct((b, nq, c), jnp.float32),
        grid=(b,),
        in_specs=[spec_q, spec_kv, spec_q, spec_q],
        out_specs=spec_q,
        compiler_params=_PARALLEL,
    )(q, kv, cc, ig)


# ------------------------------ stage 3 kernel --------------------------------
def _stage3_kernel(a_ref, w_ref, wl_ref, nc_ref, g_ref, out_ref):
    C = NUM_HIDDEN
    # conv_new_cell | conv_new_gm as one block-diagonal GEMM (+ fused LN) at 128 lanes
    y = jnp.dot(w_ref[...], a_ref[0], preferred_element_type=jnp.float32)    # (2C, THW)
    o_c = _ln_all(y[0:C])
    o_m = _ln_all(y[C:2 * C])

    g = g_ref[0]                      # (2C, THW) = gates rows [2C:4C] via BlockSpec offset
    o_sum = g[0:C]                    # o_x + o_h
    new_gm = g[C:2 * C]               # new global memory slab (C, THW)
    nc = nc_ref[0]                    # new_cell slab (C, THW)

    # conv_last (1x1x1, no LN): channel mix of cat(new_cell, new_global_memory)
    mem = (jnp.dot(wl_ref[0], nc, preferred_element_type=jnp.float32) +
           jnp.dot(wl_ref[1], new_gm, preferred_element_type=jnp.float32))   # (C, THW)

    # output = tanh(memory) * sigmoid(tanh(o_x + o_h + o_c + o_m))  -- matches reference
    out_ref[0] = jnp.tanh(mem) * jax.nn.sigmoid(jnp.tanh(o_sum + o_c + o_m))


def _stage3_call(a3, w3, wl, nc, gates):
    b = a3.shape[0]
    C = NUM_HIDDEN
    return pl.pallas_call(
        _stage3_kernel,
        out_shape=jax.ShapeDtypeStruct((b, C, THW), jnp.float32),
        grid=(b,),
        in_specs=[pl.BlockSpec((1, K3_PAD, THW), lambda i: (i, 0, 0)),
                  pl.BlockSpec((2 * C, K3_PAD), lambda i: (0, 0)),
                  pl.BlockSpec((2, C, C), lambda i: (0, 0, 0)),
                  pl.BlockSpec((1, C, THW), lambda i: (i, 0, 0)),
                  # only rows [2C:4C] of the (B, 4C, THW) gates array -> block index 1
                  pl.BlockSpec((1, 2 * C, THW), lambda i: (i, 1, 0))],
        out_specs=pl.BlockSpec((1, C, THW), lambda i: (i, 0, 0)),
        compiler_params=_PARALLEL,
    )(a3, w3, wl, nc, gates)


# --------------------------- wrapper-side glue --------------------------------
def _im2col_dup(x, k_pad):
    """K-major im2col of an NCDHW tensor (stride 1, FILTER/PAD) with the columns duplicated
    Tx (= nearest interpolation, TO == 1) and K zero-padded, -> (B, k_pad, THW) bf16.

    k ordering = ci*KK + (dt*kH + dh)*kW + dw, matching weight.reshape(Cout, -1)."""
    b, cin = x.shape[0], x.shape[1]
    kt, kh, kw = FILTER
    pt, ph, pw = PAD
    xp = jnp.pad(x, ((0, 0), (0, 0), (pt, pt), (ph, ph), (pw, pw)))
    cols = [xp[:, :, dt:dt + TO, dh:dh + HO, dw:dw + WO]
            for dt in range(kt) for dh in range(kh) for dw in range(kw)]
    pat = jnp.stack(cols, axis=2).reshape(b, cin * KK, SPATIAL)   # (B, Cin*KK, 64)
    pat = jnp.tile(pat, (1, 1, T))                                # [A | A] -> 128 lanes
    pat = jnp.pad(pat, ((0, 0), (0, k_pad - cin * KK), (0, 0)))
    return pat.astype(GEMM_DTYPE)


def pack_params(params):
    """One-time (init) packing of the padded bf16 block-diagonal GEMM weights."""
    C = NUM_HIDDEN
    w1 = jnp.zeros((N1_PAD, K1_PAD), jnp.float32)
    w1 = w1.at[0:4 * C, 0:K_HID].set(params["w_h"].reshape(4 * C, K_HID))
    w1 = w1.at[4 * C:8 * C, K_HID:2 * K_HID].set(params["w_gm"].reshape(4 * C, K_HID))
    w1 = w1.at[8 * C:15 * C, 2 * K_HID:2 * K_HID + K_IN].set(params["w_x"].reshape(7 * C, K_IN))

    w3 = jnp.zeros((2 * C, K3_PAD), jnp.float32)
    w3 = w3.at[0:C, 0:K_HID].set(params["w_nc"].reshape(C, K_HID))
    w3 = w3.at[C:2 * C, K_HID:2 * K_HID].set(params["w_ngm"].reshape(C, K_HID))

    wl = params["w_last"].reshape(C, 2 * C)
    wl = jnp.stack([wl[:, 0:C], wl[:, C:2 * C]], axis=0)          # (2, C, C) f32

    return {"w1": w1.astype(GEMM_DTYPE), "w3": w3.astype(GEMM_DTYPE), "wl": wl}


# ------------------------------- forward pass ----------------------------------
def forward(packed, x_t, h_t, c_t, global_memory, eidetic_cell):
    b = x_t.shape[0]
    C = NUM_HIDDEN

    # ---- stage 1: conv_h | conv_gm | conv_x (+LN) + all gate math, one fused kernel ----
    # single im2col on the channel-concatenated input (rows already in block-diag order)
    a1 = _im2col_dup(jnp.concatenate([h_t, global_memory, x_t], axis=1), K1_PAD)
    gates = _stage1_call(a1, packed["w1"])                         # (B, 4C, THW) f32

    # ---- stage 2: eidetic attention + cell update, in the exact reshape(B,-1,C) view ----
    # TODO(synk): the raw "memory view" reshapes (and the im2col above) stay as XLA glue;
    # doing them in-kernel needs a lane<->sublane relayout Mosaic doesn't reliably lower,
    # and the reference's reshape is a raw re-chunk (not a channel transpose), so a
    # channel-major in-kernel formulation would change semantics.
    q_v = gates[:, 0 * C:1 * C].reshape(b, THW, C)                 # r_t view
    ig_v = gates[:, 1 * C:2 * C].reshape(b, THW, C)                # i_t * g_t view
    c_v = c_t.reshape(b, THW, C)
    kv_v = eidetic_cell.reshape(b, N_KV, C)
    nc_view = _stage2_call(q_v, kv_v, c_v, ig_v)                   # (B, THW, C)
    new_cell = nc_view.reshape(b, C, T, H, W)

    # ---- stage 3: conv_new_cell | conv_new_gm (+LN) + conv_last + output gating --------
    new_gm_5d = gates[:, 3 * C:4 * C].reshape(b, C, T, H, W)
    a3 = _im2col_dup(jnp.concatenate([new_cell, new_gm_5d], axis=1), K3_PAD)
    out = _stage3_call(a3, packed["w3"], packed["wl"],
                       new_cell.reshape(b, C, THW), gates)         # (B, C, THW)

    output = out.reshape(b, C, T, H, W)
    # The reference module returns the *input* global_memory -- match it exactly.
    return output, new_cell, global_memory


# ---------------------------------- main ----------------------------------------
if __name__ == "__main__":
    key = jax.random.PRNGKey(0)
    ks = jax.random.split(key, 12)

    def conv_w(k, cout, cin, kt, kh, kw):
        fan_in = cin * kt * kh * kw
        return jax.random.normal(k, (cout, cin, kt, kh, kw), jnp.float32) * (1.0 / (fan_in ** 0.5))

    # deterministic synthetic weights (LayerNorm affine params keep their default identity init)
    params = {
        "w_x":    conv_w(ks[0], 7 * NUM_HIDDEN, IN_CH, *FILTER),
        "w_h":    conv_w(ks[1], 4 * NUM_HIDDEN, NUM_HIDDEN, *FILTER),
        "w_gm":   conv_w(ks[2], 4 * NUM_HIDDEN, NUM_HIDDEN, *FILTER),
        "w_nc":   conv_w(ks[3], NUM_HIDDEN, NUM_HIDDEN, *FILTER),
        "w_ngm":  conv_w(ks[4], NUM_HIDDEN, NUM_HIDDEN, *FILTER),
        "w_last": conv_w(ks[5], NUM_HIDDEN, 2 * NUM_HIDDEN, 1, 1, 1),
    }
    packed = pack_params(params)                    # hoisted out of the per-step path

    x_t = jax.random.normal(ks[6], (B, IN_CH, T, H, W), jnp.float32)
    h_t = jax.random.normal(ks[7], (B, NUM_HIDDEN, T, H, W), jnp.float32) * 0.5
    c_t = jax.random.normal(ks[8], (B, NUM_HIDDEN, T, H, W), jnp.float32) * 0.5
    g_m = jax.random.normal(ks[9], (B, NUM_HIDDEN, T, H, W), jnp.float32) * 0.5
    eidetic = jax.random.normal(ks[10], (B, NUM_HIDDEN, TAU * T, H, W), jnp.float32) * 0.5

    fwd = jax.jit(forward)
    output, new_cell, gm_out = fwd(packed, x_t, h_t, c_t, g_m, eidetic)
    jax.block_until_ready((output, new_cell, gm_out))

    assert output.shape == (B, NUM_HIDDEN, T, H, W)
    assert new_cell.shape == (B, NUM_HIDDEN, T, H, W)
    assert gm_out.shape == (B, NUM_HIDDEN, T, H, W)
    assert bool(jnp.isfinite(output).all()) and bool(jnp.isfinite(new_cell).all())
    print("KERNEL_OK")
</pallas_src>

<mosaic_0001>
module attributes {stable_mosaic.version = 11 : i64} {
  func.func @_stage1_kernel(%arg0: i32, %arg1: memref<1x768x128xbf16, #tpu.memory_space<vmem>>, %arg2: memref<256x768xbf16, #tpu.memory_space<vmem>>, %arg3: memref<1x64x128xf32, #tpu.memory_space<vmem>>) attributes {dimension_semantics = [#tpu.dimension_semantics<parallel>], iteration_bounds = array<i64: 2>, scalar_prefetch = 0 : i64, scratch_operands = 0 : i64, tpu.core_type = #tpu.core_type<tc>, window_params = [{transform_indices = @transform_0, window_bounds = array<i64: 1, 768, 128>}, {pipeline_mode = #tpu.pipeline_mode<synchronous>, transform_indices = @transform_1, window_bounds = array<i64: 256, 768>}, {transform_indices = @transform_2, window_bounds = array<i64: 1, 64, 128>}]} {
    %c0 = arith.constant 0 : index
    %c0_0 = arith.constant 0 : index
    %0 = vector.load %arg2[%c0, %c0_0] : memref<256x768xbf16, #tpu.memory_space<vmem>>, vector<256x768xbf16>
    %c0_1 = arith.constant 0 : index
    %c0_2 = arith.constant 0 : index
    %c0_3 = arith.constant 0 : index
    %1 = vector.load %arg1[%c0_1, %c0_2, %c0_3] : memref<1x768x128xbf16, #tpu.memory_space<vmem>>, vector<1x768x128xbf16>
    %2 = vector.shape_cast %1 : vector<1x768x128xbf16> to vector<768x128xbf16>
    %cst = arith.constant dense<0.000000e+00> : vector<256x128xf32>
    %3 = tpu.matmul %0, %2, %cst {dimension_numbers = #tpu.dot_dimension_numbers<[1], [0], [0], [1], [0, 0, 1, 1], [], []>} : vector<256x768xbf16>, vector<768x128xbf16>, vector<256x128xf32> -> vector<256x128xf32>
    %4 = vector.extract_strided_slice %3 {offsets = [0, 0], sizes = [64, 128], strides = [1, 1]} : vector<256x128xf32> to vector<64x128xf32>
    %5 = vector.shape_cast %4 : vector<64x128xf32> to vector<1x64x128xf32>
    %cst_4 = arith.constant dense<0.000000e+00> : vector<1xf32>
    %6 = vector.multi_reduction <add>, %5, %cst_4 [1, 2] : vector<1x64x128xf32> to vector<1xf32>
    %7 = vector.shape_cast %6 : vector<1xf32> to vector<1x1x1xf32>
    %8 = vector.extract %7[0, 0, 0] : f32 from vector<1x1x1xf32>
    %cst_5 = arith.constant 8.192000e+03 : f32
    %9 = arith.divf %8, %cst_5 : f32
    %10 = vector.broadcast %9 : f32 to vector<64x128xf32>
    %11 = arith.subf %4, %10 : vector<64x128xf32>
    %12 = arith.mulf %11, %11 : vector<64x128xf32>
    %13 = vector.shape_cast %12 : vector<64x128xf32> to vector<1x64x128xf32>
    %cst_6 = arith.constant dense<0.000000e+00> : vector<1xf32>
    %14 = vector.multi_reduction <add>, %13, %cst_6 [1, 2] : vector<1x64x128xf32> to vector<1xf32>
    %15 = vector.shape_cast %14 : vector<1xf32> to vector<1x1x1xf32>
    %16 = vector.extract %15[0, 0, 0] : f32 from vector<1x1x1xf32>
    %cst_7 = arith.constant 8.192000e+03 : f32
    %17 = arith.divf %16, %cst_7 : f32
    %18 = vector.broadcast %9 : f32 to vector<64x128xf32>
    %19 = arith.subf %4, %18 : vector<64x128xf32>
    %cst_8 = arith.constant 9.99999974E-6 : f32
    %20 = arith.addf %17, %cst_8 : f32
    %21 = math.rsqrt %20 : f32
    %22 = vector.broadcast %21 : f32 to vector<64x128xf32>
    %23 = arith.mulf %19, %22 : vector<64x128xf32>
    %24 = vector.extract_strided_slice %3 {offsets = [64, 0], sizes = [64, 128], strides = [1, 1]} : vector<256x128xf32> to vector<64x128xf32>
    %25 = vector.shape_cast %24 : vector<64x128xf32> to vector<1x64x128xf32>
    %cst_9 = arith.constant dense<0.000000e+00> : vector<1xf32>
    %26 = vector.multi_reduction <add>, %25, %cst_9 [1, 2] : vector<1x64x128xf32> to vector<1xf32>
    %27 = vector.shape_cast %26 : vector<1xf32> to vector<1x1x1xf32>
    %28 = vector.extract %27[0, 0, 0] : f32 from vector<1x1x1xf32>
    %cst_10 = arith.constant 8.192000e+03 : f32
    %29 = arith.divf %28, %cst_10 : f32
    %30 = vector.broadcast %29 : f32 to vector<64x128xf32>
    %31 = arith.subf %24, %30 : vector<64x128xf32>
    %32 = arith.mulf %31, %31 : vector<64x128xf32>
    %33 = vector.shape_cast %32 : vector<64x128xf32> to vector<1x64x128xf32>
    %cst_11 = arith.constant dense<0.000000e+00> : vector<1xf32>
    %34 = vector.multi_reduction <add>, %33, %cst_11 [1, 2] : vector<1x64x128xf32> to vector<1xf32>
    %35 = vector.shape_cast %34 : vector<1xf32> to vector<1x1x1xf32>
    %36 = vector.extract %35[0, 0, 0] : f32 from vector<1x1x1xf32>
    %cst_12 = arith.constant 8.192000e+03 : f32
    %37 = arith.divf %36, %cst_12 : f32
    %38 = vector.broadcast %29 : f32 to vector<64x128xf32>
    %39 = arith.subf %24, %38 : vector<64x128xf32>
    %cst_13 = arith.constant 9.99999974E-6 : f32
    %40 = arith.addf %37, %cst_13 : f32
    %41 = math.rsqrt %40 : f32
    %42 = vector.broadcast %41 : f32 to vector<64x128xf32>
    %43 = arith.mulf %39, %42 : vector<64x128xf32>
    %44 = vector.extract_strided_slice %3 {offsets = [128, 0], sizes = [112, 128], strides = [1, 1]} : vector<256x128xf32> to vector<112x128xf32>
    %45 = vector.shape_cast %44 : vector<112x128xf32> to vector<1x112x128xf32>
    %cst_14 = arith.constant dense<0.000000e+00> : vector<1xf32>
    %46 = vector.multi_reduction <add>, %45, %cst_14 [1, 2] : vector<1x112x128xf32> to vector<1xf32>
    %47 = vector.shape_cast %46 : vector<1xf32> to vector<1x1x1xf32>
    %48 = vector.extract %47[0, 0, 0] : f32 from vector<1x1x1xf32>
    %cst_15 = arith.constant 1.433600e+04 : f32
    %49 = arith.divf %48, %cst_15 : f32
    %50 = vector.broadcast %49 : f32 to vector<112x128xf32>
    %51 = arith.subf %44, %50 : vector<112x128xf32>
    %52 = arith.mulf %51, %51 : vector<112x128xf32>
    %53 = vector.shape_cast %52 : vector<112x128xf32> to vector<1x112x128xf32>
    %cst_16 = arith.constant dense<0.000000e+00> : vector<1xf32>
    %54 = vector.multi_reduction <add>, %53, %cst_16 [1, 2] : vector<1x112x128xf32> to vector<1xf32>
    %55 = vector.shape_cast %54 : vector<1xf32> to vector<1x1x1xf32>
    %56 = vector.extract %55[0, 0, 0] : f32 from vector<1x1x1xf32>
    %cst_17 = arith.constant 1.433600e+04 : f32
    %57 = arith.divf %56, %cst_17 : f32
    %58 = vector.broadcast %49 : f32 to vector<112x128xf32>
    %59 = arith.subf %44, %58 : vector<112x128xf32>
    %cst_18 = arith.constant 9.99999974E-6 : f32
    %60 = arith.addf %57, %cst_18 : f32
    %61 = math.rsqrt %60 : f32
    %62 = vector.broadcast %61 : f32 to vector<112x128xf32>
    %63 = arith.mulf %59, %62 : vector<112x128xf32>
    %64 = vector.extract_strided_slice %23 {offsets = [0, 0], sizes = [16, 128], strides = [1, 1]} : vector<64x128xf32> to vector<16x128xf32>
    %65 = vector.extract_strided_slice %23 {offsets = [16, 0], sizes = [16, 128], strides = [1, 1]} : vector<64x128xf32> to vector<16x128xf32>
    %66 = vector.extract_strided_slice %23 {offsets = [32, 0], sizes = [16, 128], strides = [1, 1]} : vector<64x128xf32> to vector<16x128xf32>
    %67 = vector.extract_strided_slice %23 {offsets = [48, 0], sizes = [16, 128], strides = [1, 1]} : vector<64x128xf32> to vector<16x128xf32>
    %68 = vector.extract_strided_slice %43 {offsets = [0, 0], sizes = [16, 128], strides = [1, 1]} : vector<64x128xf32> to vector<16x128xf32>
    %69 = vector.extract_strided_slice %43 {offsets = [16, 0], sizes = [16, 128], strides = [1, 1]} : vector<64x128xf32> to vector<16x128xf32>
    %70 = vector.extract_strided_slice %43 {offsets = [32, 0], sizes = [16, 128], strides = [1, 1]} : vector<64x128xf32> to vector<16x128xf32>
    %71 = vector.extract_strided_slice %43 {offsets = [48, 0], sizes = [16, 128], strides = [1, 1]} : vector<64x128xf32> to vector<16x128xf32>
    %72 = vector.extract_strided_slice %63 {offsets = [0, 0], sizes = [16, 128], strides = [1, 1]} : vector<112x128xf32> to vector<16x128xf32>
    %73 = vector.extract_strided_slice %63 {offsets = [16, 0], sizes = [16, 128], strides = [1, 1]} : vector<112x128xf32> to vector<16x128xf32>
    %74 = vector.extract_strided_slice %63 {offsets = [32, 0], sizes = [16, 128], strides = [1, 1]} : vector<112x128xf32> to vector<16x128xf32>
    %75 = vector.extract_strided_slice %63 {offsets = [48, 0], sizes = [16, 128], strides = [1, 1]} : vector<112x128xf32> to vector<16x128xf32>
    %76 = vector.extract_strided_slice %63 {offsets = [64, 0], sizes = [16, 128], strides = [1, 1]} : vector<112x128xf32> to vector<16x128xf32>
    %77 = vector.extract_strided_slice %63 {offsets = [80, 0], sizes = [16, 128], strides = [1, 1]} : vector<112x128xf32> to vector<16x128xf32>
    %78 = vector.extract_strided_slice %63 {offsets = [96, 0], sizes = [16, 128], strides = [1, 1]} : vector<112x128xf32> to vector<16x128xf32>
    %79 = arith.addf %72, %64 : vector<16x128xf32>
    %80 = arith.negf %79 : vector<16x128xf32>
    %81 = math.exp %80 : vector<16x128xf32>
    %cst_19 = arith.constant 1.000000e+00 : f32
    %82 = vector.broadcast %cst_19 : f32 to vector<16x128xf32>
    %83 = arith.addf %82, %81 : vector<16x128xf32>
    %84 = arith.divf %82, %83 : vector<16x128xf32>
    %85 = arith.addf %74, %66 : vector<16x128xf32>
    %86 = arith.negf %85 : vector<16x128xf32>
    %87 = math.exp %86 : vector<16x128xf32>
    %cst_20 = arith.constant 1.000000e+00 : f32
    %88 = vector.broadcast %cst_20 : f32 to vector<16x128xf32>
    %89 = arith.addf %88, %87 : vector<16x128xf32>
    %90 = arith.divf %88, %89 : vector<16x128xf32>
    %91 = arith.addf %73, %65 : vector<16x128xf32>
    %92 = math.tanh %91 : vector<16x128xf32>
    %93 = arith.mulf %84, %92 : vector<16x128xf32>
    %94 = arith.addf %75, %67 : vector<16x128xf32>
    %95 = arith.addf %76, %68 : vector<16x128xf32>
    %96 = arith.negf %95 : vector<16x128xf32>
    %97 = math.exp %96 : vector<16x128xf32>
    %cst_21 = arith.constant 1.000000e+00 : f32
    %98 = vector.broadcast %cst_21 : f32 to vector<16x128xf32>
    %99 = arith.addf %98, %97 : vector<16x128xf32>
    %100 = arith.divf %98, %99 : vector<16x128xf32>
    %101 = arith.addf %78, %69 : vector<16x128xf32>
    %cst_22 = arith.constant 1.000000e+00 : f32
    %102 = vector.broadcast %cst_22 : f32 to vector<16x128xf32>
    %103 = arith.addf %101, %102 : vector<16x128xf32>
    %104 = arith.negf %103 : vector<16x128xf32>
    %105 = math.exp %104 : vector<16x128xf32>
    %cst_23 = arith.constant 1.000000e+00 : f32
    %106 = vector.broadcast %cst_23 : f32 to vector<16x128xf32>
    %107 = arith.addf %106, %105 : vector<16x128xf32>
    %108 = arith.divf %106, %107 : vector<16x128xf32>
    %109 = arith.addf %77, %70 : vector<16x128xf32>
    %110 = math.tanh %109 : vector<16x128xf32>
    %111 = math.tanh %71 : vector<16x128xf32>
    %112 = arith.mulf %108, %111 : vector<16x128xf32>
    %113 = arith.mulf %100, %110 : vector<16x128xf32>
    %114 = arith.addf %112, %113 : vector<16x128xf32>
    %115 = tpu.concatenate %90, %93, %94, %114 in 0 : vector<16x128xf32>, vector<16x128xf32>, vector<16x128xf32>, vector<16x128xf32> -> vector<64x128xf32>
    %c0_24 = arith.constant 0 : index
    %c0_25 = arith.constant 0 : index
    %c0_26 = arith.constant 0 : index
    %116 = vector.load %arg3[%c0_24, %c0_25, %c0_26] : memref<1x64x128xf32, #tpu.memory_space<vmem>>, vector<1x64x128xf32>
    %117 = vector.shape_cast %116 : vector<1x64x128xf32> to vector<64x128xf32>
    %118 = vector.shape_cast %115 : vector<64x128xf32> to vector<1x64x128xf32>
    tpu.vector_store %arg3[%c0_24, %c0_25, %c0_26], %118 {strides = array<i32>} : memref<1x64x128xf32, #tpu.memory_space<vmem>>, vector<1x64x128xf32>,
    return
  }
  func.func @transform_0(%arg0: i32) -> (i32, i32, i32) {
    %c0_i32 = arith.constant 0 : i32
    %c0_i32_0 = arith.constant 0 : i32
    %c0_i32_1 = arith.constant 0 : i32
    return %arg0, %c0_i32, %c0_i32_0 : i32, i32, i32
  }
  func.func @transform_1(%arg0: i32) -> (i32, i32) {
    %c0_i32 = arith.constant 0 : i32
    %c0_i32_0 = arith.constant 0 : i32
    %c0_i32_1 = arith.constant 0 : i32
    return %c0_i32, %c0_i32_0 : i32, i32
  }
  func.func @transform_2(%arg0: i32) -> (i32, i32, i32) {
    %c0_i32 = arith.constant 0 : i32
    %c0_i32_0 = arith.constant 0 : i32
    %c0_i32_1 = arith.constant 0 : i32
    return %arg0, %c0_i32, %c0_i32_0 : i32, i32, i32
  }
}

module attributes {stable_mosaic.version = 11 : i64} {
  func.func @_stage2_kernel(%arg0: i32, %arg1: memref<1x128x16xf32, #tpu.memory_space<vmem>>, %arg2: memref<1x256x16xf32, #tpu.memory_space<vmem>>, %arg3: memref<1x128x16xf32, #tpu.memory_space<vmem>>, %arg4: memref<1x128x16xf32, #tpu.memory_space<vmem>>, %arg5: memref<1x128x16xf32, #tpu.memory_space<vmem>>) attributes {dimension_semantics = [#tpu.dimension_semantics<parallel>], iteration_bounds = array<i64: 2>, scalar_prefetch = 0 : i64, scratch_operands = 0 : i64, tpu.core_type = #tpu.core_type<tc>, window_params = [{transform_indices = @transform_0, window_bounds = array<i64: 1, 128, 16>}, {transform_indices = @transform_1, window_bounds = array<i64: 1, 256, 16>}, {transform_indices = @transform_2, window_bounds = array<i64: 1, 128, 16>}, {transform_indices = @transform_3, window_bounds = array<i64: 1, 128, 16>}, {transform_indices = @transform_4, window_bounds = array<i64: 1, 128, 16>}]} {
    %c0 = arith.constant 0 : index
    %c0_0 = arith.constant 0 : index
    %c0_1 = arith.constant 0 : index
    %0 = vector.load %arg1[%c0, %c0_0, %c0_1] : memref<1x128x16xf32, #tpu.memory_space<vmem>>, vector<1x128x16xf32>
    %1 = vector.shape_cast %0 : vector<1x128x16xf32> to vector<128x16xf32>
    %c0_2 = arith.constant 0 : index
    %c0_3 = arith.constant 0 : index
    %c0_4 = arith.constant 0 : index
    %2 = vector.load %arg2[%c0_2, %c0_3, %c0_4] : memref<1x256x16xf32, #tpu.memory_space<vmem>>, vector<1x256x16xf32>
    %3 = vector.shape_cast %2 : vector<1x256x16xf32> to vector<256x16xf32>
    %cst = arith.constant dense<0.000000e+00> : vector<128x256xf32>
    %4 = tpu.matmul %1, %3, %cst {dimension_numbers = #tpu.dot_dimension_numbers<[1], [1], [0], [0], [0, 0, 1, 0], [], []>} : vector<128x16xf32>, vector<256x16xf32>, vector<128x256xf32> -> vector<128x256xf32>
    %cst_5 = arith.constant dense<0xFF800000> : vector<128xf32>
    %5 = vector.multi_reduction <maximumf>, %4, %cst_5 [1] : vector<128x256xf32> to vector<128xf32>
    %6 = vector.shape_cast %5 : vector<128xf32> to vector<128x1xf32>
    %7 = vector.broadcast %6 : vector<128x1xf32> to vector<128x256xf32>
    %8 = arith.subf %4, %7 : vector<128x256xf32>
    %9 = math.exp %8 : vector<128x256xf32>
    %cst_6 = arith.constant dense<0.000000e+00> : vector<128xf32>
    %10 = vector.multi_reduction <add>, %9, %cst_6 [1] : vector<128x256xf32> to vector<128xf32>
    %11 = vector.shape_cast %10 : vector<128xf32> to vector<128x1xf32>
    %12 = tpu.reciprocal %11 : vector<128x1xf32> -> vector<128x1xf32>
    %13 = vector.broadcast %12 : vector<128x1xf32> to vector<128x256xf32>
    %14 = arith.mulf %9, %13 : vector<128x256xf32>
    %cst_7 = arith.constant dense<0.000000e+00> : vector<128x16xf32>
    %15 = tpu.matmul %14, %3, %cst_7 {dimension_numbers = #tpu.dot_dimension_numbers<[1], [0], [0], [1], [0, 0, 1, 1], [], []>} : vector<128x256xf32>, vector<256x16xf32>, vector<128x16xf32> -> vector<128x16xf32>
    %c0_8 = arith.constant 0 : index
    %c0_9 = arith.constant 0 : index
    %c0_10 = arith.constant 0 : index
    %16 = vector.load %arg3[%c0_8, %c0_9, %c0_10] : memref<1x128x16xf32, #tpu.memory_space<vmem>>, vector<1x128x16xf32>
    %17 = vector.shape_cast %16 : vector<1x128x16xf32> to vector<128x16xf32>
    %18 = arith.addf %17, %15 : vector<128x16xf32>
    %19 = vector.shape_cast %18 : vector<128x16xf32> to vector<1x128x16xf32>
    %cst_11 = arith.constant dense<0.000000e+00> : vector<1xf32>
    %20 = vector.multi_reduction <add>, %19, %cst_11 [1, 2] : vector<1x128x16xf32> to vector<1xf32>
    %21 = vector.shape_cast %20 : vector<1xf32> to vector<1x1x1xf32>
    %22 = vector.extract %21[0, 0, 0] : f32 from vector<1x1x1xf32>
    %cst_12 = arith.constant 2.048000e+03 : f32
    %23 = arith.divf %22, %cst_12 : f32
    %24 = vector.broadcast %23 : f32 to vector<128x16xf32>
    %25 = arith.subf %18, %24 : vector<128x16xf32>
    %26 = arith.mulf %25, %25 : vector<128x16xf32>
    %27 = vector.shape_cast %26 : vector<128x16xf32> to vector<1x128x16xf32>
    %cst_13 = arith.constant dense<0.000000e+00> : vector<1xf32>
    %28 = vector.multi_reduction <add>, %27, %cst_13 [1, 2] : vector<1x128x16xf32> to vector<1xf32>
    %29 = vector.shape_cast %28 : vector<1xf32> to vector<1x1x1xf32>
    %30 = vector.extract %29[0, 0, 0] : f32 from vector<1x1x1xf32>
    %cst_14 = arith.constant 2.048000e+03 : f32
    %31 = arith.divf %30, %cst_14 : f32
    %32 = vector.broadcast %23 : f32 to vector<128x16xf32>
    %33 = arith.subf %18, %32 : vector<128x16xf32>
    %cst_15 = arith.constant 9.99999974E-6 : f32
    %34 = arith.addf %31, %cst_15 : f32
    %35 = math.rsqrt %34 : f32
    %36 = vector.broadcast %35 : f32 to vector<128x16xf32>
    %37 = arith.mulf %33, %36 : vector<128x16xf32>
    %c0_16 = arith.constant 0 : index
    %c0_17 = arith.constant 0 : index
    %c0_18 = arith.constant 0 : index
    %38 = vector.load %arg4[%c0_16, %c0_17, %c0_18] : memref<1x128x16xf32, #tpu.memory_space<vmem>>, vector<1x128x16xf32>
    %39 = vector.shape_cast %38 : vector<1x128x16xf32> to vector<128x16xf32>
    %40 = arith.addf %37, %39 : vector<128x16xf32>
    %c0_19 = arith.constant 0 : index
    %c0_20 = arith.constant 0 : index
    %c0_21 = arith.constant 0 : index
    %41 = vector.load %arg5[%c0_19, %c0_20, %c0_21] : memref<1x128x16xf32, #tpu.memory_space<vmem>>, vector<1x128x16xf32>
    %42 = vector.shape_cast %41 : vector<1x128x16xf32> to vector<128x16xf32>
    %43 = vector.shape_cast %40 : vector<128x16xf32> to vector<1x128x16xf32>
    tpu.vector_store %arg5[%c0_19, %c0_20, %c0_21], %43 {strides = array<i32>} : memref<1x128x16xf32, #tpu.memory_space<vmem>>, vector<1x128x16xf32>,
    return
  }
  func.func @transform_0(%arg0: i32) -> (i32, i32, i32) {
    %c0_i32 = arith.constant 0 : i32
    %c0_i32_0 = arith.constant 0 : i32
    %c0_i32_1 = arith.constant 0 : i32
    return %arg0, %c0_i32, %c0_i32_0 : i32, i32, i32
  }
  func.func @transform_1(%arg0: i32) -> (i32, i32, i32) {
    %c0_i32 = arith.constant 0 : i32
    %c0_i32_0 = arith.constant 0 : i32
    %c0_i32_1 = arith.constant 0 : i32
    return %arg0, %c0_i32, %c0_i32_0 : i32, i32, i32
  }
  func.func @transform_2(%arg0: i32) -> (i32, i32, i32) {
    %c0_i32 = arith.constant 0 : i32
    %c0_i32_0 = arith.constant 0 : i32
    %c0_i32_1 = arith.constant 0 : i32
    return %arg0, %c0_i32, %c0_i32_0 : i32, i32, i32
  }
  func.func @transform_3(%arg0: i32) -> (i32, i32, i32) {
    %c0_i32 = arith.constant 0 : i32
    %c0_i32_0 = arith.constant 0 : i32
    %c0_i32_1 = arith.constant 0 : i32
    return %arg0, %c0_i32, %c0_i32_0 : i32, i32, i32
  }
  func.func @transform_4(%arg0: i32) -> (i32, i32, i32) {
    %c0_i32 = arith.constant 0 : i32
    %c0_i32_0 = arith.constant 0 : i32
    %c0_i32_1 = arith.constant 0 : i32
    return %arg0, %c0_i32, %c0_i32_0 : i32, i32, i32
  }
}

module attributes {stable_mosaic.version = 11 : i64} {
  func.func @_stage3_kernel(%arg0: i32, %arg1: memref<1x640x128xbf16, #tpu.memory_space<vmem>>, %arg2: memref<32x640xbf16, #tpu.memory_space<vmem>>, %arg3: memref<2x16x16xf32, #tpu.memory_space<vmem>>, %arg4: memref<1x16x128xf32, #tpu.memory_space<vmem>>, %arg5: memref<1x32x128xf32, #tpu.memory_space<vmem>>, %arg6: memref<1x16x128xf32, #tpu.memory_space<vmem>>) attributes {dimension_semantics = [#tpu.dimension_semantics<parallel>], iteration_bounds = array<i64: 2>, scalar_prefetch = 0 : i64, scratch_operands = 0 : i64, tpu.core_type = #tpu.core_type<tc>, window_params = [{transform_indices = @transform_0, window_bounds = array<i64: 1, 640, 128>}, {pipeline_mode = #tpu.pipeline_mode<synchronous>, transform_indices = @transform_1, window_bounds = array<i64: 32, 640>}, {pipeline_mode = #tpu.pipeline_mode<synchronous>, transform_indices = @transform_2, window_bounds = array<i64: 2, 16, 16>}, {transform_indices = @transform_3, window_bounds = array<i64: 1, 16, 128>}, {transform_indices = @transform_4, window_bounds = array<i64: 1, 32, 128>}, {transform_indices = @transform_5, window_bounds = array<i64: 1, 16, 128>}]} {
    %c0 = arith.constant 0 : index
    %c0_0 = arith.constant 0 : index
    %0 = vector.load %arg2[%c0, %c0_0] : memref<32x640xbf16, #tpu.memory_space<vmem>>, vector<32x640xbf16>
    %c0_1 = arith.constant 0 : index
    %c0_2 = arith.constant 0 : index
    %c0_3 = arith.constant 0 : index
    %1 = vector.load %arg1[%c0_1, %c0_2, %c0_3] : memref<1x640x128xbf16, #tpu.memory_space<vmem>>, vector<1x640x128xbf16>
    %2 = vector.shape_cast %1 : vector<1x640x128xbf16> to vector<640x128xbf16>
    %cst = arith.constant dense<0.000000e+00> : vector<32x128xf32>
    %3 = tpu.matmul %0, %2, %cst {dimension_numbers = #tpu.dot_dimension_numbers<[1], [0], [0], [1], [0, 0, 1, 1], [], []>} : vector<32x640xbf16>, vector<640x128xbf16>, vector<32x128xf32> -> vector<32x128xf32>
    %4 = vector.extract_strided_slice %3 {offsets = [0, 0], sizes = [16, 128], strides = [1, 1]} : vector<32x128xf32> to vector<16x128xf32>
    %5 = vector.shape_cast %4 : vector<16x128xf32> to vector<1x16x128xf32>
    %cst_4 = arith.constant dense<0.000000e+00> : vector<1xf32>
    %6 = vector.multi_reduction <add>, %5, %cst_4 [1, 2] : vector<1x16x128xf32> to vector<1xf32>
    %7 = vector.shape_cast %6 : vector<1xf32> to vector<1x1x1xf32>
    %8 = vector.extract %7[0, 0, 0] : f32 from vector<1x1x1xf32>
    %cst_5 = arith.constant 2.048000e+03 : f32
    %9 = arith.divf %8, %cst_5 : f32
    %10 = vector.broadcast %9 : f32 to vector<16x128xf32>
    %11 = arith.subf %4, %10 : vector<16x128xf32>
    %12 = arith.mulf %11, %11 : vector<16x128xf32>
    %13 = vector.shape_cast %12 : vector<16x128xf32> to vector<1x16x128xf32>
    %cst_6 = arith.constant dense<0.000000e+00> : vector<1xf32>
    %14 = vector.multi_reduction <add>, %13, %cst_6 [1, 2] : vector<1x16x128xf32> to vector<1xf32>
    %15 = vector.shape_cast %14 : vector<1xf32> to vector<1x1x1xf32>
    %16 = vector.extract %15[0, 0, 0] : f32 from vector<1x1x1xf32>
    %cst_7 = arith.constant 2.048000e+03 : f32
    %17 = arith.divf %16, %cst_7 : f32
    %18 = vector.broadcast %9 : f32 to vector<16x128xf32>
    %19 = arith.subf %4, %18 : vector<16x128xf32>
    %cst_8 = arith.constant 9.99999974E-6 : f32
    %20 = arith.addf %17, %cst_8 : f32
    %21 = math.rsqrt %20 : f32
    %22 = vector.broadcast %21 : f32 to vector<16x128xf32>
    %23 = arith.mulf %19, %22 : vector<16x128xf32>
    %24 = vector.extract_strided_slice %3 {offsets = [16, 0], sizes = [16, 128], strides = [1, 1]} : vector<32x128xf32> to vector<16x128xf32>
    %25 = vector.shape_cast %24 : vector<16x128xf32> to vector<1x16x128xf32>
    %cst_9 = arith.constant dense<0.000000e+00> : vector<1xf32>
    %26 = vector.multi_reduction <add>, %25, %cst_9 [1, 2] : vector<1x16x128xf32> to vector<1xf32>
    %27 = vector.shape_cast %26 : vector<1xf32> to vector<1x1x1xf32>
    %28 = vector.extract %27[0, 0, 0] : f32 from vector<1x1x1xf32>
    %cst_10 = arith.constant 2.048000e+03 : f32
    %29 = arith.divf %28, %cst_10 : f32
    %30 = vector.broadcast %29 : f32 to vector<16x128xf32>
    %31 = arith.subf %24, %30 : vector<16x128xf32>
    %32 = arith.mulf %31, %31 : vector<16x128xf32>
    %33 = vector.shape_cast %32 : vector<16x128xf32> to vector<1x16x128xf32>
    %cst_11 = arith.constant dense<0.000000e+00> : vector<1xf32>
    %34 = vector.multi_reduction <add>, %33, %cst_11 [1, 2] : vector<1x16x128xf32> to vector<1xf32>
    %35 = vector.shape_cast %34 : vector<1xf32> to vector<1x1x1xf32>
    %36 = vector.extract %35[0, 0, 0] : f32 from vector<1x1x1xf32>
    %cst_12 = arith.constant 2.048000e+03 : f32
    %37 = arith.divf %36, %cst_12 : f32
    %38 = vector.broadcast %29 : f32 to vector<16x128xf32>
    %39 = arith.subf %24, %38 : vector<16x128xf32>
    %cst_13 = arith.constant 9.99999974E-6 : f32
    %40 = arith.addf %37, %cst_13 : f32
    %41 = math.rsqrt %40 : f32
    %42 = vector.broadcast %41 : f32 to vector<16x128xf32>
    %43 = arith.mulf %39, %42 : vector<16x128xf32>
    %c0_14 = arith.constant 0 : index
    %c0_15 = arith.constant 0 : index
    %c0_16 = arith.constant 0 : index
    %44 = vector.load %arg5[%c0_14, %c0_15, %c0_16] : memref<1x32x128xf32, #tpu.memory_space<vmem>>, vector<1x32x128xf32>
    %45 = vector.shape_cast %44 : vector<1x32x128xf32> to vector<32x128xf32>
    %46 = vector.extract_strided_slice %45 {offsets = [0, 0], sizes = [16, 128], strides = [1, 1]} : vector<32x128xf32> to vector<16x128xf32>
    %47 = vector.extract_strided_slice %45 {offsets = [16, 0], sizes = [16, 128], strides = [1, 1]} : vector<32x128xf32> to vector<16x128xf32>
    %c0_17 = arith.constant 0 : index
    %c0_18 = arith.constant 0 : index
    %c0_19 = arith.constant 0 : index
    %48 = vector.load %arg4[%c0_17, %c0_18, %c0_19] : memref<1x16x128xf32, #tpu.memory_space<vmem>>, vector<1x16x128xf32>
    %49 = vector.shape_cast %48 : vector<1x16x128xf32> to vector<16x128xf32>
    %c0_20 = arith.constant 0 : index
    %c0_21 = arith.constant 0 : index
    %c0_22 = arith.constant 0 : index
    %50 = vector.load %arg3[%c0_20, %c0_21, %c0_22] : memref<2x16x16xf32, #tpu.memory_space<vmem>>, vector<1x16x16xf32>
    %51 = vector.shape_cast %50 : vector<1x16x16xf32> to vector<16x16xf32>
    %cst_23 = arith.constant dense<0.000000e+00> : vector<16x128xf32>
    %52 = tpu.matmul %51, %49, %cst_23 {dimension_numbers = #tpu.dot_dimension_numbers<[1], [0], [0], [1], [0, 0, 1, 1], [], []>} : vector<16x16xf32>, vector<16x128xf32>, vector<16x128xf32> -> vector<16x128xf32>
    %c1 = arith.constant 1 : index
    %c0_24 = arith.constant 0 : index
    %c0_25 = arith.constant 0 : index
    %53 = vector.load %arg3[%c1, %c0_24, %c0_25] : memref<2x16x16xf32, #tpu.memory_space<vmem>>, vector<1x16x16xf32>
    %54 = vector.shape_cast %53 : vector<1x16x16xf32> to vector<16x16xf32>
    %cst_26 = arith.constant dense<0.000000e+00> : vector<16x128xf32>
    %55 = tpu.matmul %54, %47, %cst_26 {dimension_numbers = #tpu.dot_dimension_numbers<[1], [0], [0], [1], [0, 0, 1, 1], [], []>} : vector<16x16xf32>, vector<16x128xf32>, vector<16x128xf32> -> vector<16x128xf32>
    %56 = arith.addf %52, %55 : vector<16x128xf32>
    %57 = math.tanh %56 : vector<16x128xf32>
    %58 = arith.addf %46, %23 : vector<16x128xf32>
    %59 = arith.addf %58, %43 : vector<16x128xf32>
    %60 = math.tanh %59 : vector<16x128xf32>
    %61 = arith.negf %60 : vector<16x128xf32>
    %62 = math.exp %61 : vector<16x128xf32>
    %cst_27 = arith.constant 1.000000e+00 : f32
    %63 = vector.broadcast %cst_27 : f32 to vector<16x128xf32>
    %64 = arith.addf %63, %62 : vector<16x128xf32>
    %65 = arith.divf %63, %64 : vector<16x128xf32>
    %66 = arith.mulf %57, %65 : vector<16x128xf32>
    %c0_28 = arith.constant 0 : index
    %c0_29 = arith.constant 0 : index
    %c0_30 = arith.constant 0 : index
    %67 = vector.load %arg6[%c0_28, %c0_29, %c0_30] : memref<1x16x128xf32, #tpu.memory_space<vmem>>, vector<1x16x128xf32>
    %68 = vector.shape_cast %67 : vector<1x16x128xf32> to vector<16x128xf32>
    %69 = vector.shape_cast %66 : vector<16x128xf32> to vector<1x16x128xf32>
    tpu.vector_store %arg6[%c0_28, %c0_29, %c0_30], %69 {strides = array<i32>} : memref<1x16x128xf32, #tpu.memory_space<vmem>>, vector<1x16x128xf32>,
    return
  }
  func.func @transform_0(%arg0: i32) -> (i32, i32, i32) {
    %c0_i32 = arith.constant 0 : i32
    %c0_i32_0 = arith.constant 0 : i32
    %c0_i32_1 = arith.constant 0 : i32
    return %arg0, %c0_i32, %c0_i32_0 : i32, i32, i32
  }
  func.func @transform_1(%arg0: i32) -> (i32, i32) {
    %c0_i32 = arith.constant 0 : i32
    %c0_i32_0 = arith.constant 0 : i32
    %c0_i32_1 = arith.constant 0 : i32
    return %c0_i32, %c0_i32_0 : i32, i32
  }
  func.func @transform_2(%arg0: i32) -> (i32, i32, i32) {
    %c0_i32 = arith.constant 0 : i32
    %c0_i32_0 = arith.constant 0 : i32
    %c0_i32_1 = arith.constant 0 : i32
    %c0_i32_2 = arith.constant 0 : i32
    return %c0_i32, %c0_i32_0, %c0_i32_1 : i32, i32, i32
  }
  func.func @transform_3(%arg0: i32) -> (i32, i32, i32) {
    %c0_i32 = arith.constant 0 : i32
    %c0_i32_0 = arith.constant 0 : i32
    %c0_i32_1 = arith.constant 0 : i32
    return %arg0, %c0_i32, %c0_i32_0 : i32, i32, i32
  }
  func.func @transform_4(%arg0: i32) -> (i32, i32, i32) {
    %c1_i32 = arith.constant 1 : i32
    %c0_i32 = arith.constant 0 : i32
    %c0_i32_0 = arith.constant 0 : i32
    return %arg0, %c1_i32, %c0_i32 : i32, i32, i32
  }
  func.func @transform_5(%arg0: i32) -> (i32, i32, i32) {
    %c0_i32 = arith.constant 0 : i32
    %c0_i32_0 = arith.constant 0 : i32
    %c0_i32_1 = arith.constant 0 : i32
    return %arg0, %c0_i32, %c0_i32_0 : i32, i32, i32
  }
}

</mosaic_0001>

<bundles_post_ra>
// kernel: forward.3
= control target key start
LH: loop header
LB: loop body
LE: loop exit
PB: predicated region body
PF: predicated region fallthrough
CT: control target
= control target key end

     0   :  { %s2764_s9 = smov 0   ;;  %s3499_s0 = inlined_call_operand.vmem [shape: bf16[2,768,128], index: 0, kind: input, shape index: {}]   ;;  %s3500_s1 = inlined_call_operand.vmem [shape: bf16[256,768], index: 1, kind: input, shape index: {}]   ;;  %s3501_s2 = inlined_call_operand.vmem [shape: f32[2,64,128], index: 2, kind: output, shape index: {}]  }
   0x1 LB: > { %s1957_s10 = sadd.s32 4294967295, %s2747_s9   ;;  %p1961_p0 = scmp.ge.s32.totalorder %s2747_s9, 1  ;;  %s2747_s9 = sphi %s2764_s9, %s12_s9  }
   0x2   : > { %p112_p1 = scmp.lt.s32.totalorder %s2747_s9, 3 }
   0x4   : > { %p113_p2 = pnand %p1961_p0, %p112_p1 }
   0x5   : > { %p134_p3 = scmp.lt.s32.totalorder (!%p113_p2), %s1957_s10, 1  ;;  %v2517_v0 = vld [vmem:[%s3500_s1 + $0x4] ss:$24 sps:$4 sm:$0xff] (!%p113_p2)   ;;  %v2515_v19 = vld [vmem:[%s3500_s1] ss:$24 sps:$4 sm:$0xff] (!%p113_p2)  }
   0x6   : > { %116 = sbr.rel (%p113_p2) target bundleno = 1496 (0x5d8), region = 28  ;;  %v2520_v1 = vld [vmem:[%s3500_s1 + $0x184] ss:$24 sps:$4 sm:$0xff] (!%p113_p2)   ;;  %1137 = vmatprep.mubr.bf16.mxu0 (!%p113_p2), %v2517_v0  ;;  %v2518_v21 = vld [vmem:[%s3500_s1 + $0x180] ss:$24 sps:$4 sm:$0xff] (!%p113_p2)  }
   0x7   : > { %1201 = vmatprep.mubr.bf16.mxu1 (!%p113_p2), %v2520_v1  ;;  %v2525_v22 = vld [vmem:[%s3500_s1 + $0x34] ss:$24 sps:$4 sm:$0xff] (!%p113_p2)   ;;  %v2529_v31 = vld [vmem:[%s3500_s1 + $0x30] ss:$24 sps:$4 sm:$0xff] (!%p113_p2)   ;;  %v2535_v34 = vld [vmem:[%s3500_s1 + $0x64] ss:$24 sps:$4 sm:$0xff] (!%p113_p2)  }
   0x8   : > { %v2527_v23 = vld [vmem:[%s3500_s1 + $0x1b4] ss:$24 sps:$4 sm:$0xff] (!%p113_p2)   ;;  %v2530_v32 = vld [vmem:[%s3500_s1 + $0x1b0] ss:$24 sps:$4 sm:$0xff] (!%p113_p2)   ;;  %v2537_v35 = vld [vmem:[%s3500_s1 + $0x1e4] ss:$24 sps:$4 sm:$0xff] (!%p113_p2)  }
   0x9   : > { %v2539_v40 = vld [vmem:[%s3500_s1 + $0x60] ss:$24 sps:$4 sm:$0xff] (!%p113_p2)   ;;  %v2545_v45 = vld [vmem:[%s3500_s1 + $0x94] ss:$24 sps:$4 sm:$0xff] (!%p113_p2)   ;;  %v2549_v53 = vld [vmem:[%s3500_s1 + $0x90] ss:$24 sps:$4 sm:$0xff] (!%p113_p2)  }
   0xa   : > { %v2540_v41 = vld [vmem:[%s3500_s1 + $0x1e0] ss:$24 sps:$4 sm:$0xff] (!%p113_p2)   ;;  %v2547_v46 = vld [vmem:[%s3500_s1 + $0x214] ss:$24 sps:$4 sm:$0xff] (!%p113_p2)   ;;  %v2550_v54 = vld [vmem:[%s3500_s1 + $0x210] ss:$24 sps:$4 sm:$0xff] (!%p113_p2)  }
   0xb   : > { %v2555_v56 = vld [vmem:[%s3500_s1 + $0xc4] ss:$24 sps:$4 sm:$0xff] (!%p113_p2)   ;;  %v2559_v63 = vld [vmem:[%s3500_s1 + $0xc0] ss:$24 sps:$4 sm:$0xff] (!%p113_p2)  }
   0xc   : > { %v2557_v57 = vld [vmem:[%s3500_s1 + $0x244] ss:$24 sps:$4 sm:$0xff] (!%p113_p2)   ;;  %v2560_v0 = vld [vmem:[%s3500_s1 + $0x240] ss:$24 sps:$4 sm:$0xff] (!%p113_p2)  }
   0xd   : > { %s3503_s10 = smov (!%p134_p3, %s1957_s10), 1 }
   0xe   : > { %s2472_s15 = smul.u32 384, %s3503_s10 }
  0x10   : > { %s2784_s18 = scalar_lea.vmem %s3499_s0, %s2472_s15 }
  0x11   : > { %v2499_v2 = vld [vmem:[%s2784_s18 + $0x40] sm:$0xff]   ;;  %v2501_v4 = vld [vmem:[%s2784_s18 + $0x48] sm:$0xff]   ;;  %v2503_v6 = vld [vmem:[%s2784_s18 + $0x50] sm:$0xff]  }
  0x12   : > { %v2500_v3 = vld [vmem:[%s2784_s18] sm:$0xff]   ;;  %2120 = vmatprep.subr.bf16.mxu0 %v2499_v2  ;;  %2456 = vmatprep.subr.bf16.mxu1 %v2499_v2  ;;  %v2502_v5 = vld [vmem:[%s2784_s18 + $0x8] sm:$0xff]   ;;  %v2504_v7 = vld [vmem:[%s2784_s18 + $0x10] sm:$0xff]  }
  0x13   : > { %2121 = vmatpush3.bf16.msra.mxu0 %v2500_v3  ;;  %2464 = vmatpush3.bf16.msra.mxu1 %v2500_v3  ;;  %v2505_v8 = vld [vmem:[%s2784_s18 + $0x58] sm:$0xff]   ;;  %v2507_v10 = vld [vmem:[%s2784_s18 + $0x60] sm:$0xff]   ;;  %v2509_v12 = vld [vmem:[%s2784_s18 + $0x68] sm:$0xff]  }
  0x14   : > { %2122 = vmatprep.subr.bf16.mxu0 %v2501_v4  ;;  %2457 = vmatprep.subr.bf16.mxu1 %v2501_v4  ;;  %v2506_v9 = vld [vmem:[%s2784_s18 + $0x18] sm:$0xff]   ;;  %v2508_v11 = vld [vmem:[%s2784_s18 + $0x20] sm:$0xff]   ;;  %v2510_v13 = vld [vmem:[%s2784_s18 + $0x28] sm:$0xff]  }
  0x15   : > { %v2511_v14 = vld [vmem:[%s2784_s18 + $0x70] sm:$0xff]   ;;  %v2513_v16 = vld [vmem:[%s2784_s18 + $0x78] sm:$0xff]   ;;  %v2521_v18 = vld [vmem:[%s2784_s18 + $0xc0] sm:$0xff]  }
  0x16   : > { %v2512_v15 = vld [vmem:[%s2784_s18 + $0x30] sm:$0xff]   ;;  %v2514_v17 = vld [vmem:[%s2784_s18 + $0x38] sm:$0xff]   ;;  %v2523_v20 = vld [vmem:[%s2784_s18 + $0x140] sm:$0xff]  }
  0x17   : > { %2123 = vmatpush3.bf16.msra.mxu0 %v2502_v5  ;;  %2465 = vmatpush3.bf16.msra.mxu1 %v2502_v5  ;;  %v2522_v24 = vld [vmem:[%s2784_s18 + $0x80] sm:$0xff]   ;;  %v2531_v26 = vld [vmem:[%s2784_s18 + $0xc8] sm:$0xff]   ;;  %v2541_v30 = vld [vmem:[%s2784_s18 + $0xd0] sm:$0xff]  }
  0x18   : > { %2124 = vmatprep.subr.bf16.mxu0 %v2503_v6  ;;  %2458 = vmatprep.subr.bf16.mxu1 %v2503_v6  ;;  %v2524_v25 = vld [vmem:[%s2784_s18 + $0x100] sm:$0xff]   ;;  %v2532_v27 = vld [vmem:[%s2784_s18 + $0x88] sm:$0xff]   ;;  %v2543_v33 = vld [vmem:[%s2784_s18 + $0x150] sm:$0xff]  }
  0x19   : > { %v2533_v28 = vld [vmem:[%s2784_s18 + $0x148] sm:$0xff]   ;;  %v2542_v36 = vld [vmem:[%s2784_s18 + $0x90] sm:$0xff]   ;;  %v2551_v38 = vld [vmem:[%s2784_s18 + $0xd8] sm:$0xff]  }
  0x1a   : > { %v2534_v29 = vld [vmem:[%s2784_s18 + $0x108] sm:$0xff]   ;;  %v2544_v37 = vld [vmem:[%s2784_s18 + $0x110] sm:$0xff]   ;;  %v2553_v39 = vld [vmem:[%s2784_s18 + $0x158] sm:$0xff]  }
  0x1b   : > { %2125 = vmatpush3.bf16.msra.mxu0 %v2504_v7  ;;  %2466 = vmatpush3.bf16.msra.mxu1 %v2504_v7  ;;  %v2552_v42 = vld [vmem:[%s2784_s18 + $0x98] sm:$0xff]   ;;  %v2561_v44 = vld [vmem:[%s2784_s18 + $0xe0] sm:$0xff]   ;;  %v2571_v50 = vld [vmem:[%s2784_s18 + $0xe8] sm:$0xff]  }
  0x1c   : > { %2126 = vmatprep.subr.bf16.mxu0 %v2505_v8  ;;  %2459 = vmatprep.subr.bf16.mxu1 %v2505_v8  ;;  %v2554_v43 = vld [vmem:[%s2784_s18 + $0x118] sm:$0xff]   ;;  %v2563_v47 = vld [vmem:[%s2784_s18 + $0x160] sm:$0xff]   ;;  %v2573_v51 = vld [vmem:[%s2784_s18 + $0x168] sm:$0xff]  }
  0x1d   : > { %v2562_v48 = vld [vmem:[%s2784_s18 + $0xa0] sm:$0xff]   ;;  %v2572_v52 = vld [vmem:[%s2784_s18 + $0xa8] sm:$0xff]   ;;  %v2581_v58 = vld [vmem:[%s2784_s18 + $0xf0] sm:$0xff]  }
  0x1e   : > { %v2564_v49 = vld [vmem:[%s2784_s18 + $0x120] sm:$0xff]   ;;  %v2574_v55 = vld [vmem:[%s2784_s18 + $0x128] sm:$0xff]   ;;  %v2583_v59 = vld [vmem:[%s2784_s18 + $0x170] sm:$0xff]  }
  0x1f   : > { %2127 = vmatpush3.bf16.msra.mxu0 %v2506_v9  ;;  %2467 = vmatpush3.bf16.msra.mxu1 %v2506_v9  ;;  %v2582_v60 = vld [vmem:[%s2784_s18 + $0xb0] sm:$0xff]   ;;  %v2591_v62 = vld [vmem:[%s2784_s18 + $0xf8] sm:$0xff]  }
  0x20   : > { %2128 = vmatprep.subr.bf16.mxu0 %v2507_v10  ;;  %2460 = vmatprep.subr.bf16.mxu1 %v2507_v10  ;;  %v2584_v61 = vld [vmem:[%s2784_s18 + $0x130] sm:$0xff]   ;;  %v2592_v1 = vld [vmem:[%s2784_s18 + $0xb8] sm:$0xff]  }
  0x21   : > { %v2593_v2 = vld [vmem:[%s2784_s18 + $0x178] sm:$0xff]   ;;  %v2565_v4 = vld [vmem:[%s3500_s1 + $0xf4] ss:$24 sps:$4 sm:$0xff]   ;;  %v2569_v6 = vld [vmem:[%s3500_s1 + $0xf0] ss:$24 sps:$4 sm:$0xff]  }
  0x22   : > { %v2594_v3 = vld [vmem:[%s2784_s18 + $0x138] sm:$0xff]   ;;  %v2567_v5 = vld [vmem:[%s3500_s1 + $0x274] ss:$24 sps:$4 sm:$0xff]   ;;  %v2570_v7 = vld [vmem:[%s3500_s1 + $0x270] ss:$24 sps:$4 sm:$0xff]  }
  0x23   : > { %2129 = vmatpush3.bf16.msra.mxu0 %v2508_v11  ;;  %2468 = vmatpush3.bf16.msra.mxu1 %v2508_v11  ;;  %v2575_v8 = vld [vmem:[%s3500_s1 + $0x124] ss:$24 sps:$4 sm:$0xff]   ;;  %v2579_v10 = vld [vmem:[%s3500_s1 + $0x120] ss:$24 sps:$4 sm:$0xff]  }
  0x24   : > { %2130 = vmatprep.subr.bf16.mxu0 %v2509_v12  ;;  %2461 = vmatprep.subr.bf16.mxu1 %v2509_v12  ;;  %v2577_v9 = vld [vmem:[%s3500_s1 + $0x2a4] ss:$24 sps:$4 sm:$0xff]   ;;  %v2580_v11 = vld [vmem:[%s3500_s1 + $0x2a0] ss:$24 sps:$4 sm:$0xff]   ;;  %v2585_v12 = vld [vmem:[%s3500_s1 + $0x154] ss:$24 sps:$4 sm:$0xff]  }
  0x27   : > { %2131 = vmatpush3.bf16.msra.mxu0 %v2510_v13  ;;  %2469 = vmatpush3.bf16.msra.mxu1 %v2510_v13  ;;  %v2587_v13 = vld [vmem:[%s3500_s1 + $0x2d4] ss:$24 sps:$4 sm:$0xff]  }
  0x28   : > { %2132 = vmatprep.subr.bf16.mxu0 %v2511_v14  ;;  %2462 = vmatprep.subr.bf16.mxu1 %v2511_v14  ;;  %v2589_v14 = vld [vmem:[%s3500_s1 + $0x150] ss:$24 sps:$4 sm:$0xff]  }
  0x2b   : > { %2133 = vmatpush3.bf16.msra.mxu0 %v2512_v15  ;;  %2470 = vmatpush3.bf16.msra.mxu1 %v2512_v15  ;;  %v2590_v15 = vld [vmem:[%s3500_s1 + $0x2d0] ss:$24 sps:$4 sm:$0xff]  }
  0x2c   : > { %2134 = vmatprep.subr.bf16.mxu0 %v2513_v16  ;;  %2463 = vmatprep.subr.bf16.mxu1 %v2513_v16  ;;  %v2597_v16 = vld [vmem:[%s3500_s1 + $0xc] ss:$24 sps:$4 sm:$0xff]  }
  0x2f   : > { %2135 = vmatpush3.bf16.msra.mxu0 %v2514_v17  ;;  %2471 = vmatpush3.bf16.msra.mxu1 %v2514_v17  ;;  %v2600_v17 = vld [vmem:[%s3500_s1 + $0x14] ss:$24 sps:$4 sm:$0xff]  }
  0x30   : > { %2232 = vmatprep.subr.bf16.mxu1 %v2521_v18  ;;  %2344 = vmatprep.subr.bf16.mxu0 %v2523_v20  ;;  %v2595_v18 = vld [vmem:[%s3500_s1 + $0x8] ss:$24 sps:$4 sm:$0xff]   ;;  %v2601_v20 = vld [vmem:[%s3500_s1 + $0x3c] ss:$24 sps:$4 sm:$0xff]  }
  0x32   : > { %1138 = vmatmul.mubr.bf16.vlgmr.msra.gmra.mrb[0].mxu0 %v2515_v19  ;;  %1202 = vmatmul.mubr.bf16.vlgmr.msra.gmra.mrb[0].mxu1 %v2518_v21  ;;  %v2598_v19 = vld [vmem:[%s3500_s1 + $0x10] ss:$24 sps:$4 sm:$0xff]   ;;  %v2603_v21 = vld [vmem:[%s3500_s1 + $0x44] ss:$24 sps:$4 sm:$0xff]  }
  0x33   : > { %2233 = vmatpush3.bf16.msra.mxu1 %v2522_v24  ;;  %2345 = vmatpush3.bf16.msra.mxu0 %v2524_v25  ;;  %v2607_v24 = vld [vmem:[%s3500_s1 + $0x6c] ss:$24 sps:$4 sm:$0xff]  }
  0x34   : > { %1145 = vmatprep.mubr.bf16.mxu0 %v2525_v22  ;;  %1209 = vmatprep.mubr.bf16.mxu1 %v2527_v23  ;;  %v2605_v22 = vld [vmem:[%s3500_s1 + $0x38] ss:$24 sps:$4 sm:$0xff]   ;;  %v2609_v25 = vld [vmem:[%s3500_s1 + $0x74] ss:$24 sps:$4 sm:$0xff]  }
  0x35   : > { %2234 = vmatprep.subr.bf16.mxu1 %v2531_v26  ;;  %2346 = vmatprep.subr.bf16.mxu0 %v2533_v28  ;;  %v2606_v23 = vld [vmem:[%s3500_s1 + $0x40] ss:$24 sps:$4 sm:$0xff]   ;;  %v2613_v28 = vld [vmem:[%s3500_s1 + $0x9c] ss:$24 sps:$4 sm:$0xff]  }
  0x36   : > { %v2611_v26 = vld [vmem:[%s3500_s1 + $0x68] ss:$24 sps:$4 sm:$0xff]  }
  0x37   : > { %2235 = vmatpush3.bf16.msra.mxu1 %v2532_v27  ;;  %2347 = vmatpush3.bf16.msra.mxu0 %v2534_v29  ;;  %v2612_v27 = vld [vmem:[%s3500_s1 + $0x70] ss:$24 sps:$4 sm:$0xff]   ;;  %v2615_v29 = vld [vmem:[%s3500_s1 + $0xa4] ss:$24 sps:$4 sm:$0xff]  }
  0x38   : > { %2236 = vmatprep.subr.bf16.mxu1 %v2541_v30  ;;  %2348 = vmatprep.subr.bf16.mxu0 %v2543_v33  ;;  %v2617_v30 = vld [vmem:[%s3500_s1 + $0x98] ss:$24 sps:$4 sm:$0xff]   ;;  %v2622_v33 = vld [vmem:[%s3500_s1 + $0xd4] ss:$24 sps:$4 sm:$0xff]  }
  0x3a   : > { %1146 = vmatmul.mubr.bf16.gmra.mrb[4].mxu0 %v2529_v31  ;;  %1210 = vmatmul.mubr.bf16.gmra.mrb[4].mxu1 %v2530_v32  ;;  %v2618_v31 = vld [vmem:[%s3500_s1 + $0xa0] ss:$24 sps:$4 sm:$0xff]   ;;  %v2619_v32 = vld [vmem:[%s3500_s1 + $0xcc] ss:$24 sps:$4 sm:$0xff]  }
  0x3b   : > { %1153 = vmatprep.mubr.bf16.mxu0 %v2535_v34  ;;  %1217 = vmatprep.mubr.bf16.mxu1 %v2537_v35  ;;  %v2621_v34 = vld [vmem:[%s3500_s1 + $0xc8] ss:$24 sps:$4 sm:$0xff]  }
  0x3c   : > { %2237 = vmatpush3.bf16.msra.mxu1 %v2542_v36  ;;  %2349 = vmatpush3.bf16.msra.mxu0 %v2544_v37  ;;  %v2624_v35 = vld [vmem:[%s3500_s1 + $0xd0] ss:$24 sps:$4 sm:$0xff]   ;;  %v2625_v36 = vld [vmem:[%s3500_s1 + $0xfc] ss:$24 sps:$4 sm:$0xff]  }
  0x3d   : > { %2238 = vmatprep.subr.bf16.mxu1 %v2551_v38  ;;  %2350 = vmatprep.subr.bf16.mxu0 %v2553_v39  ;;  %v2628_v37 = vld [vmem:[%s3500_s1 + $0x104] ss:$24 sps:$4 sm:$0xff]   ;;  %v2627_v38 = vld [vmem:[%s3500_s1 + $0xf8] ss:$24 sps:$4 sm:$0xff]  }
  0x3e   : > { %v2630_v39 = vld [vmem:[%s3500_s1 + $0x100] ss:$24 sps:$4 sm:$0xff]  }
  0x40   : > { %2239 = vmatpush3.bf16.msra.mxu1 %v2552_v42  ;;  %2351 = vmatpush3.bf16.msra.mxu0 %v2554_v43  ;;  %v2633_v42 = vld [vmem:[%s3500_s1 + $0x128] ss:$24 sps:$4 sm:$0xff]  }
  0x41   : > { %2240 = vmatprep.subr.bf16.mxu1 %v2561_v44  ;;  %2352 = vmatprep.subr.bf16.mxu0 %v2563_v47  ;;  %v2636_v43 = vld [vmem:[%s3500_s1 + $0x130] ss:$24 sps:$4 sm:$0xff]   ;;  %v2637_v44 = vld [vmem:[%s3500_s1 + $0x15c] ss:$24 sps:$4 sm:$0xff]   ;;  %v2642_v47 = vld [vmem:[%s3500_s1 + $0x160] ss:$24 sps:$4 sm:$0xff]  }
  0x42   : > { %1154 = vmatmul.mubr.bf16.gmra.mrb[8].mxu0 %v2539_v40  ;;  %1218 = vmatmul.mubr.bf16.gmra.mrb[8].mxu1 %v2540_v41  ;;  %v2631_v40 = vld [vmem:[%s3500_s1 + $0x12c] ss:$24 sps:$4 sm:$0xff]  }
  0x43   : > { %1161 = vmatprep.mubr.bf16.mxu0 %v2545_v45  ;;  %1225 = vmatprep.mubr.bf16.mxu1 %v2547_v46  ;;  %v2634_v41 = vld [vmem:[%s3500_s1 + $0x134] ss:$24 sps:$4 sm:$0xff]   ;;  %v2640_v45 = vld [vmem:[%s3500_s1 + $0x164] ss:$24 sps:$4 sm:$0xff]   ;;  %v2639_v46 = vld [vmem:[%s3500_s1 + $0x158] ss:$24 sps:$4 sm:$0xff]  }
  0x44   : > { %2241 = vmatpush3.bf16.msra.mxu1 %v2562_v48  ;;  %2353 = vmatpush3.bf16.msra.mxu0 %v2564_v49  ;;  %v2643_v48 = vld [vmem:[%s3500_s1 + $0x18c] ss:$24 sps:$4 sm:$0xff]  }
  0x45   : > { %2242 = vmatprep.subr.bf16.mxu1 %v2571_v50  ;;  %2354 = vmatprep.subr.bf16.mxu0 %v2573_v51  ;;  %v2646_v49 = vld [vmem:[%s3500_s1 + $0x194] ss:$24 sps:$4 sm:$0xff]   ;;  %v2645_v50 = vld [vmem:[%s3500_s1 + $0x188] ss:$24 sps:$4 sm:$0xff]  }
  0x46   : > { %v2648_v51 = vld [vmem:[%s3500_s1 + $0x190] ss:$24 sps:$4 sm:$0xff]  }
  0x48   : > { %2243 = vmatpush3.bf16.msra.mxu1 %v2572_v52  ;;  %2355 = vmatpush3.bf16.msra.mxu0 %v2574_v55  ;;  %v2649_v52 = vld [vmem:[%s3500_s1 + $0x1bc] ss:$24 sps:$4 sm:$0xff]   ;;  %v2654_v55 = vld [vmem:[%s3500_s1 + $0x1c0] ss:$24 sps:$4 sm:$0xff]  }
  0x49   : > { %2244 = vmatprep.subr.bf16.mxu1 %v2581_v58  ;;  %2356 = vmatprep.subr.bf16.mxu0 %v2583_v59  ;;  %v2657_v58 = vld [vmem:[%s3500_s1 + $0x1e8] ss:$24 sps:$4 sm:$0xff]  }
  0x4a   : > { %1162 = vmatmul.mubr.bf16.gmra.mrb[12].mxu0 %v2549_v53  ;;  %1226 = vmatmul.mubr.bf16.gmra.mrb[12].mxu1 %v2550_v54  ;;  %v2652_v53 = vld [vmem:[%s3500_s1 + $0x1c4] ss:$24 sps:$4 sm:$0xff]   ;;  %v2651_v54 = vld [vmem:[%s3500_s1 + $0x1b8] ss:$24 sps:$4 sm:$0xff]  }
  0x4b   : > { %1169 = vmatprep.mubr.bf16.mxu0 %v2555_v56  ;;  %1233 = vmatprep.mubr.bf16.mxu1 %v2557_v57  ;;  %v2655_v56 = vld [vmem:[%s3500_s1 + $0x1ec] ss:$24 sps:$4 sm:$0xff]   ;;  %v2660_v59 = vld [vmem:[%s3500_s1 + $0x1f0] ss:$24 sps:$4 sm:$0xff]  }
  0x4c   : > { %2245 = vmatpush3.bf16.msra.mxu1 %v2582_v60  ;;  %2357 = vmatpush3.bf16.msra.mxu0 %v2584_v61  ;;  %v2658_v57 = vld [vmem:[%s3500_s1 + $0x1f4] ss:$24 sps:$4 sm:$0xff]   ;;  %v2664_v61 = vld [vmem:[%s3500_s1 + $0x224] ss:$24 sps:$4 sm:$0xff]  }
  0x4d   : > { %2246 = vmatprep.subr.bf16.mxu1 %v2591_v62  ;;  %2358 = vmatprep.subr.bf16.mxu0 %v2593_v2  ;;  %v2661_v60 = vld [vmem:[%s3500_s1 + $0x21c] ss:$24 sps:$4 sm:$0xff]   ;;  %v2663_v62 = vld [vmem:[%s3500_s1 + $0x218] ss:$24 sps:$4 sm:$0xff]   ;;  %v2669_v2 = vld [vmem:[%s3500_s1 + $0x248] ss:$24 sps:$4 sm:$0xff]  }
  0x50   : > { %2247 = vmatpush3.bf16.msra.mxu1 %v2592_v1  ;;  %2359 = vmatpush3.bf16.msra.mxu0 %v2594_v3  ;;  %v2670_v1 = vld [vmem:[%s3500_s1 + $0x254] ss:$24 sps:$4 sm:$0xff]   ;;  %v2672_v3 = vld [vmem:[%s3500_s1 + $0x250] ss:$24 sps:$4 sm:$0xff]  }
  0x52   : > { %1170 = vmatmul.mubr.bf16.gmra.mrb[16].mxu0 %v2559_v63  ;;  %1234 = vmatmul.mubr.bf16.gmra.mrb[16].mxu1 %v2560_v0  ;;  %v2666_v63 = vld [vmem:[%s3500_s1 + $0x220] ss:$24 sps:$4 sm:$0xff]   ;;  %v2667_v0 = vld [vmem:[%s3500_s1 + $0x24c] ss:$24 sps:$4 sm:$0xff]  }
  0x53   : > { %1177 = vmatprep.mubr.bf16.mxu0 %v2565_v4  ;;  %1241 = vmatprep.mubr.bf16.mxu1 %v2567_v5  ;;  %v2673_v4 = vld [vmem:[%s3500_s1 + $0x27c] ss:$24 sps:$4 sm:$0xff]  }
  0x54   : > { %v2676_v5 = vld [vmem:[%s3500_s1 + $0x284] ss:$24 sps:$4 sm:$0xff]  }
  0x5a   : > { %1178 = vmatmul.mubr.bf16.gmra.mrb[20].mxu0 %v2569_v6  ;;  %1242 = vmatmul.mubr.bf16.gmra.mrb[20].mxu1 %v2570_v7  ;;  %v2675_v6 = vld [vmem:[%s3500_s1 + $0x278] ss:$24 sps:$4 sm:$0xff]  }
  0x5b   : > { %1185 = vmatprep.mubr.bf16.mxu0 %v2575_v8  ;;  %1249 = vmatprep.mubr.bf16.mxu1 %v2577_v9  ;;  %v2678_v7 = vld [vmem:[%s3500_s1 + $0x280] ss:$24 sps:$4 sm:$0xff]   ;;  %v2679_v8 = vld [vmem:[%s3500_s1 + $0x2ac] ss:$24 sps:$4 sm:$0xff]  }
  0x5c   : > { %v2682_v9 = vld [vmem:[%s3500_s1 + $0x2b4] ss:$24 sps:$4 sm:$0xff]  }
  0x62   : > { %1186 = vmatmul.mubr.bf16.gmra.mrb[24].mxu0 %v2579_v10  ;;  %1250 = vmatmul.mubr.bf16.gmra.mrb[24].mxu1 %v2580_v11  ;;  %v2681_v10 = vld [vmem:[%s3500_s1 + $0x2a8] ss:$24 sps:$4 sm:$0xff]  }
  0x63   : > { %1193 = vmatprep.mubr.bf16.mxu0 %v2585_v12  ;;  %1257 = vmatprep.mubr.bf16.mxu1 %v2587_v13  ;;  %v2684_v11 = vld [vmem:[%s3500_s1 + $0x2b0] ss:$24 sps:$4 sm:$0xff]  }
  0x6a   : > { %1194 = vmatmul.mubr.bf16.gmra.mrb[28].mxu0 %v2589_v14  ;;  %1258 = vmatmul.mubr.bf16.gmra.mrb[28].mxu1 %v2590_v15 }
  0x6b   : > { %1296 = vmatprep.mubr.bf16.mxu1 %v2597_v16  ;;  %1455 = vmatprep.mubr.bf16.mxu0 %v2600_v17 }
  0x72   : > { %1297 = vmatmul.mubr.bf16.vlgmr.msra.gmra.mrb[32].mxu1 %v2595_v18  ;;  %1456 = vmatmul.mubr.bf16.vlgmr.msra.gmra.mrb[32].mxu0 %v2598_v19 }
  0x73   : > { %1304 = vmatprep.mubr.bf16.mxu1 %v2601_v20  ;;  %1463 = vmatprep.mubr.bf16.mxu0 %v2603_v21 }
  0x7a   : > { %1305 = vmatmul.mubr.bf16.gmra.mrb[36].mxu1 %v2605_v22  ;;  %1464 = vmatmul.mubr.bf16.gmra.mrb[36].mxu0 %v2606_v23 }
  0x7b   : > { %1312 = vmatprep.mubr.bf16.mxu1 %v2607_v24  ;;  %1471 = vmatprep.mubr.bf16.mxu0 %v2609_v25 }
  0x82   : > { %1313 = vmatmul.mubr.bf16.gmra.mrb[40].mxu1 %v2611_v26  ;;  %1472 = vmatmul.mubr.bf16.gmra.mrb[40].mxu0 %v2612_v27 }
  0x83   : > { %1320 = vmatprep.mubr.bf16.mxu1 %v2613_v28  ;;  %1479 = vmatprep.mubr.bf16.mxu0 %v2615_v29 }
  0x8a   : > { %1321 = vmatmul.mubr.bf16.gmra.mrb[44].mxu1 %v2617_v30  ;;  %1480 = vmatmul.mubr.bf16.gmra.mrb[44].mxu0 %v2618_v31 }
  0x8b   : > { %1328 = vmatprep.mubr.bf16.mxu1 %v2619_v32  ;;  %1487 = vmatprep.mubr.bf16.mxu0 %v2622_v33 }
  0x92   : > { %1329 = vmatmul.mubr.bf16.gmra.mrb[48].mxu1 %v2621_v34  ;;  %1488 = vmatmul.mubr.bf16.gmra.mrb[48].mxu0 %v2624_v35 }
  0x93   : > { %1336 = vmatprep.mubr.bf16.mxu1 %v2625_v36  ;;  %1495 = vmatprep.mubr.bf16.mxu0 %v2628_v37 }
  0x9a   : > { %1337 = vmatmul.mubr.bf16.gmra.mrb[52].mxu1 %v2627_v38  ;;  %1496 = vmatmul.mubr.bf16.gmra.mrb[52].mxu0 %v2630_v39 }
  0x9b   : > { %1344 = vmatprep.mubr.bf16.mxu1 %v2631_v40  ;;  %1503 = vmatprep.mubr.bf16.mxu0 %v2634_v41 }
  0xa2   : > { %1345 = vmatmul.mubr.bf16.gmra.mrb[56].mxu1 %v2633_v42  ;;  %1504 = vmatmul.mubr.bf16.gmra.mrb[56].mxu0 %v2636_v43 }
  0xa3   : > { %1352 = vmatprep.mubr.bf16.mxu1 %v2637_v44  ;;  %1511 = vmatprep.mubr.bf16.mxu0 %v2640_v45 }
  0xaa   : > { %1353 = vmatmul.mubr.bf16.gmra.mrb[60].mxu1 %v2639_v46  ;;  %1512 = vmatmul.mubr.bf16.gmra.mrb[60].mxu0 %v2642_v47 }
  0xab   : > { %1360 = vmatprep.mubr.bf16.mxu1 %v2643_v48  ;;  %1519 = vmatprep.mubr.bf16.mxu0 %v2646_v49 }
  0xb2   : > { %1361 = vmatmul.mubr.bf16.gmra.mrb[64].mxu1 %v2645_v50  ;;  %1520 = vmatmul.mubr.bf16.gmra.mrb[64].mxu0 %v2648_v51 }
  0xb3   : > { %1368 = vmatprep.mubr.bf16.mxu1 %v2649_v52  ;;  %1527 = vmatprep.mubr.bf16.mxu0 %v2652_v53 }
  0xba   : > { %1369 = vmatmul.mubr.bf16.gmra.mrb[68].mxu1 %v2651_v54  ;;  %1528 = vmatmul.mubr.bf16.gmra.mrb[68].mxu0 %v2654_v55 }
  0xbb   : > { %1376 = vmatprep.mubr.bf16.mxu1 %v2655_v56  ;;  %1535 = vmatprep.mubr.bf16.mxu0 %v2658_v57 }
  0xc2   : > { %1377 = vmatmul.mubr.bf16.gmra.mrb[72].mxu1 %v2657_v58  ;;  %1536 = vmatmul.mubr.bf16.gmra.mrb[72].mxu0 %v2660_v59 }
  0xc3   : > { %1384 = vmatprep.mubr.bf16.mxu1 %v2661_v60  ;;  %1543 = vmatprep.mubr.bf16.mxu0 %v2664_v61 }
  0xca   : > { %1385 = vmatmul.mubr.bf16.gmra.mrb[76].mxu1 %v2663_v62  ;;  %1544 = vmatmul.mubr.bf16.gmra.mrb[76].mxu0 %v2666_v63 }
  0xcb   : > { %1392 = vmatprep.mubr.bf16.mxu1 %v2667_v0  ;;  %1551 = vmatprep.mubr.bf16.mxu0 %v2670_v1 }
  0xd2   : > { %1393 = vmatmul.mubr.bf16.gmra.mrb[80].mxu1 %v2669_v2  ;;  %1552 = vmatmul.mubr.bf16.gmra.mrb[80].mxu0 %v2672_v3 }
  0xd3   : > { %1400 = vmatprep.mubr.bf16.mxu1 %v2673_v4  ;;  %1559 = vmatprep.mubr.bf16.mxu0 %v2676_v5 }
  0xda   : > { %1401 = vmatmul.mubr.bf16.gmra.mrb[84].mxu1 %v2675_v6  ;;  %1560 = vmatmul.mubr.bf16.gmra.mrb[84].mxu0 %v2678_v7 }
  0xdb   : > { %1408 = vmatprep.mubr.bf16.mxu1 %v2679_v8  ;;  %1567 = vmatprep.mubr.bf16.mxu0 %v2682_v9 }
  0xe2   : > { %1409 = vmatmul.mubr.bf16.gmra.mrb[88].mxu1 %v2681_v10  ;;  %1568 = vmatmul.mubr.bf16.gmra.mrb[88].mxu0 %v2684_v11 }
 0x105   : > { %v2136_v12 = vpop.f32.mrb[0].mxu0  ;;  %v2184_v13 = vpop.f32.mrb[0].mxu1 }
 0x106   : > { %v2137_v14 = vpop.f32.mrb[1].mxu0  ;;  %v2185_v15 = vpop.f32.mrb[1].mxu1 }
 0x107   : > { %v3104_v16 = vadd.f32 %v2137_v14, %v2136_v12  ;;  %v3106_v17 = vadd.f32 %v2185_v15, %v2184_v13  ;;  %v2139_v18 = vpop.f32.mrb[2].mxu0  ;;  %v2187_v19 = vpop.f32.mrb[2].mxu1 }
 0x108   : > { %v2140_v20 = vpop.f32.mrb[3].mxu0  ;;  %v2188_v21 = vpop.f32.mrb[3].mxu1 }
 0x109   : > { %v3108_v22 = vadd.f32 %v2140_v20, %v2139_v18  ;;  %v3110_v23 = vadd.f32 %v2188_v21, %v2187_v19 }
 0x10d   : > { %v2142_v24 = vpop.f32.mrb[4].mxu0  ;;  %v2190_v25 = vpop.f32.mrb[4].mxu1 }
 0x10e   : > { %v2143_v26 = vpop.f32.mrb[5].mxu0  ;;  %v2191_v27 = vpop.f32.mrb[5].mxu1 }
 0x10f   : > { %v3112_v28 = vadd.f32 %v2143_v26, %v2142_v24  ;;  %v3114_v29 = vadd.f32 %v2191_v27, %v2190_v25  ;;  %v2145_v30 = vpop.f32.mrb[6].mxu0  ;;  %v2193_v31 = vpop.f32.mrb[6].mxu1 }
 0x110   : > { %v2146_v32 = vpop.f32.mrb[7].mxu0  ;;  %v2194_v33 = vpop.f32.mrb[7].mxu1 }
 0x111   : > { %v3116_v34 = vadd.f32 %v2146_v32, %v2145_v30  ;;  %v3118_v35 = vadd.f32 %v2194_v33, %v2193_v31 }
 0x115   : > { %v2148_v36 = vpop.f32.mrb[8].mxu0  ;;  %v2196_v37 = vpop.f32.mrb[8].mxu1 }
 0x116   : > { %v2149_v38 = vpop.f32.mrb[9].mxu0  ;;  %v2197_v39 = vpop.f32.mrb[9].mxu1 }
 0x117   : > { %v3120_v40 = vadd.f32 %v2149_v38, %v2148_v36  ;;  %v3122_v41 = vadd.f32 %v2197_v39, %v2196_v37  ;;  %v2151_v42 = vpop.f32.mrb[10].mxu0  ;;  %v2199_v43 = vpop.f32.mrb[10].mxu1 }
 0x118   : > { %v2152_v44 = vpop.f32.mrb[11].mxu0  ;;  %v2200_v45 = vpop.f32.mrb[11].mxu1 }
 0x119   : > { %v3124_v46 = vadd.f32 %v2152_v44, %v2151_v42  ;;  %v3126_v47 = vadd.f32 %v2200_v45, %v2199_v43 }
 0x11d   : > { %v2154_v48 = vpop.f32.mrb[12].mxu0  ;;  %v2202_v49 = vpop.f32.mrb[12].mxu1 }
 0x11e   : > { %v2155_v50 = vpop.f32.mrb[13].mxu0  ;;  %v2203_v51 = vpop.f32.mrb[13].mxu1 }
 0x11f   : > { %v3128_v52 = vadd.f32 %v2155_v50, %v2154_v48  ;;  %v3130_v53 = vadd.f32 %v2203_v51, %v2202_v49  ;;  %v2157_v54 = vpop.f32.mrb[14].mxu0  ;;  %v2205_v55 = vpop.f32.mrb[14].mxu1 }
 0x120   : > { %v2158_v56 = vpop.f32.mrb[15].mxu0  ;;  %v2206_v57 = vpop.f32.mrb[15].mxu1 }
 0x121   : > { %v3132_v58 = vadd.f32 %v2158_v56, %v2157_v54  ;;  %v3134_v59 = vadd.f32 %v2206_v57, %v2205_v55 }
 0x125   : > { %v2160_v60 = vpop.f32.mrb[16].mxu0  ;;  %v2208_v61 = vpop.f32.mrb[16].mxu1 }
 0x126   : > { %v2161_v62 = vpop.f32.mrb[17].mxu0  ;;  %v2209_v63 = vpop.f32.mrb[17].mxu1 }
 0x127   : > { %v3136_v0 = vadd.f32 %v2161_v62, %v2160_v60  ;;  %v3138_v1 = vadd.f32 %v2209_v63, %v2208_v61  ;;  %v2163_v2 = vpop.f32.mrb[18].mxu0  ;;  %v2211_v3 = vpop.f32.mrb[18].mxu1 }
 0x128   : > { %v2164_v4 = vpop.f32.mrb[19].mxu0  ;;  %v2212_v5 = vpop.f32.mrb[19].mxu1 }
 0x129   : > { %v3140_v6 = vadd.f32 %v2164_v4, %v2163_v2  ;;  %v3142_v7 = vadd.f32 %v2212_v5, %v2211_v3 }
 0x12d   : > { %v2166_v8 = vpop.f32.mrb[20].mxu0  ;;  %v2214_v9 = vpop.f32.mrb[20].mxu1 }
 0x12e   : > { %v2167_v10 = vpop.f32.mrb[21].mxu0  ;;  %v2215_v11 = vpop.f32.mrb[21].mxu1 }
 0x12f   : > { %v3144_v12 = vadd.f32 %v2167_v10, %v2166_v8  ;;  %v3146_v13 = vadd.f32 %v2215_v11, %v2214_v9  ;;  %v2169_v14 = vpop.f32.mrb[22].mxu0  ;;  %v2217_v15 = vpop.f32.mrb[22].mxu1 }
 0x130   : > { %v2170_v18 = vpop.f32.mrb[23].mxu0  ;;  %v2218_v19 = vpop.f32.mrb[23].mxu1 }
 0x131   : > { %v3148_v20 = vadd.f32 %v2170_v18, %v2169_v14  ;;  %v3150_v21 = vadd.f32 %v2218_v19, %v2217_v15 }
 0x135   : > { %v2172_v24 = vpop.f32.mrb[24].mxu0  ;;  %v2220_v25 = vpop.f32.mrb[24].mxu1 }
 0x136   : > { %v2173_v26 = vpop.f32.mrb[25].mxu0  ;;  %v2221_v27 = vpop.f32.mrb[25].mxu1 }
 0x137   : > { %v3152_v30 = vadd.f32 %v2173_v26, %v2172_v24  ;;  %v3154_v31 = vadd.f32 %v2221_v27, %v2220_v25  ;;  %v2175_v32 = vpop.f32.mrb[26].mxu0  ;;  %v2223_v33 = vpop.f32.mrb[26].mxu1 }
 0x138   : > { %v2176_v36 = vpop.f32.mrb[27].mxu0  ;;  %v2224_v37 = vpop.f32.mrb[27].mxu1 }
 0x139   : > { %v3156_v38 = vadd.f32 %v2176_v36, %v2175_v32  ;;  %v3158_v39 = vadd.f32 %v2224_v37, %v2223_v33 }
 0x13d   : > { %v2178_v42 = vpop.f32.mrb[28].mxu0  ;;  %v2226_v43 = vpop.f32.mrb[28].mxu1 }
 0x13e   : > { %v2179_v44 = vpop.f32.mrb[29].mxu0  ;;  %v2227_v45 = vpop.f32.mrb[29].mxu1 }
 0x13f   : > { %v3160_v48 = vadd.f32 %v2179_v44, %v2178_v42  ;;  %v2181_v49 = vpop.f32.mrb[30].mxu0  ;;  %v2229_v50 = vpop.f32.mrb[30].mxu1 }
 0x140   : > { %v2182_v51 = vpop.f32.mrb[31].mxu0  ;;  %v2230_v54 = vpop.f32.mrb[31].mxu1 }
 0x141   : > { %v3162_v55 = vadd.f32 %v2182_v51, %v2181_v49 }
 0x145   : > { %v2248_v56 = vpop.f32.mrb[32].mxu1  ;;  %v2360_v57 = vpop.f32.mrb[32].mxu0 }
 0x146   : > { %v2249_v60 = vpop.f32.mrb[33].mxu1  ;;  %v2361_v61 = vpop.f32.mrb[33].mxu0 }
 0x147   : > { %v2250_v62 = vadd.f32 %v2249_v60, %v2248_v56  ;;  %v2362_v63 = vadd.f32 %v2361_v61, %v2360_v57  ;;  %v2251_v2 = vpop.f32.mrb[34].mxu1  ;;  %v2363_v3 = vpop.f32.mrb[34].mxu0 }
 0x148   : > { %v2252_v4 = vpop.f32.mrb[35].mxu1  ;;  %v2364_v5 = vpop.f32.mrb[35].mxu0 }
 0x149   : > { %v1299_v8 = vadd.f32 %v2250_v62, %v3104_v16  ;;  %v2253_v9 = vadd.f32 %v2252_v4, %v2251_v2  ;;  %v2365_v10 = vadd.f32 %v2364_v5, %v2363_v3 }
 0x14b   : > { %v3165_v11 = vadd.f32 %v2362_v63, %v1299_v8  ;;  %v1302_v14 = vadd.f32 %v2253_v9, %v3108_v22 }
 0x14d   : > { %v3168_v15 = vadd.f32 %v2365_v10, %v1302_v14  ;;  %v2254_v18 = vpop.f32.mrb[36].mxu1  ;;  %v2366_v19 = vpop.f32.mrb[36].mxu0 }
 0x14e   : > { %v2255_v24 = vpop.f32.mrb[37].mxu1  ;;  %v2367_v25 = vpop.f32.mrb[37].mxu0 }
 0x14f   : > { %v2256_v26 = vadd.f32 %v2255_v24, %v2254_v18  ;;  %v2368_v27 = vadd.f32 %v2367_v25, %v2366_v19  ;;  %v2257_v32 = vpop.f32.mrb[38].mxu1  ;;  %v2369_v33 = vpop.f32.mrb[38].mxu0  ;;  %v1582_v56 = vadd.f32 %v3168_v15, %v3165_v11 }
 0x150   : > { %v2258_v36 = vpop.f32.mrb[39].mxu1  ;;  %v2370_v37 = vpop.f32.mrb[39].mxu0 }
 0x151   : > { %v1307_v16 = vadd.f32 %v2256_v26, %v3112_v28  ;;  %v2259_v42 = vadd.f32 %v2258_v36, %v2257_v32  ;;  %v2371_v43 = vadd.f32 %v2370_v37, %v2369_v33 }
 0x153   : > { %v3171_v44 = vadd.f32 %v2368_v27, %v1307_v16  ;;  %v1310_v22 = vadd.f32 %v2259_v42, %v3116_v34 }
 0x155   : > { %v3174_v45 = vadd.f32 %v2371_v43, %v1310_v22  ;;  %v2260_v49 = vpop.f32.mrb[40].mxu1  ;;  %v2372_v50 = vpop.f32.mrb[40].mxu0  ;;  %v1583_v2 = vadd.f32 %v1582_v56, %v3171_v44 }
 0x156   : > { %v2261_v51 = vpop.f32.mrb[41].mxu1  ;;  %v2373_v54 = vpop.f32.mrb[41].mxu0 }
 0x157   : > { %v2262_v57 = vadd.f32 %v2261_v51, %v2260_v49  ;;  %v2374_v60 = vadd.f32 %v2373_v54, %v2372_v50  ;;  %v2263_v61 = vpop.f32.mrb[42].mxu1  ;;  %v2375_v62 = vpop.f32.mrb[42].mxu0  ;;  %v1584_v9 = vadd.f32 %v1583_v2, %v3174_v45 }
 0x158   : > { %v2264_v28 = vpop.f32.mrb[43].mxu1  ;;  %v2376_v63 = vpop.f32.mrb[43].mxu0 }
 0x159   : > { %v1315_v3 = vadd.f32 %v2262_v57, %v3120_v40  ;;  %v2265_v34 = vadd.f32 %v2264_v28, %v2263_v61  ;;  %v2377_v4 = vadd.f32 %v2376_v63, %v2375_v62 }
 0x15b   : > { %v3180_v5 = vadd.f32 %v2374_v60, %v1315_v3  ;;  %v1318_v8 = vadd.f32 %v2265_v34, %v3124_v46 }
 0x15d   : > { %v3184_v10 = vadd.f32 %v2377_v4, %v1318_v8  ;;  %v2266_v14 = vpop.f32.mrb[44].mxu1  ;;  %v2378_v18 = vpop.f32.mrb[44].mxu0  ;;  %v1585_v25 = vadd.f32 %v1584_v9, %v3180_v5 }
 0x15e   : > { %v2267_v19 = vpop.f32.mrb[45].mxu1  ;;  %v2379_v24 = vpop.f32.mrb[45].mxu0 }
 0x15f   : > { %v2268_v26 = vadd.f32 %v2267_v19, %v2266_v14  ;;  %v2380_v27 = vadd.f32 %v2379_v24, %v2378_v18  ;;  %v2269_v32 = vpop.f32.mrb[46].mxu1  ;;  %v2381_v40 = vpop.f32.mrb[46].mxu0  ;;  %v1586_v22 = vadd.f32 %v1585_v25, %v3184_v10 }
 0x160   : > { %v2270_v33 = vpop.f32.mrb[47].mxu1  ;;  %v2382_v36 = vpop.f32.mrb[47].mxu0 }
 0x161   : > { %v1323_v37 = vadd.f32 %v2268_v26, %v3128_v52  ;;  %v2271_v16 = vadd.f32 %v2270_v33, %v2269_v32  ;;  %v2383_v46 = vadd.f32 %v2382_v36, %v2381_v40 }
 0x163   : > { %v3188_v42 = vadd.f32 %v2380_v27, %v1323_v37  ;;  %v1326_v43 = vadd.f32 %v2271_v16, %v3132_v58 }
 0x165   : > { %v2272_v49 = vpop.f32.mrb[48].mxu1  ;;  %v2384_v50 = vpop.f32.mrb[48].mxu0  ;;  %v3192_v51 = vadd.f32 %v2383_v46, %v1326_v43  ;;  %v1587_v54 = vadd.f32 %v1586_v22, %v3188_v42 }
 0x166   : > { %v2273_v56 = vpop.f32.mrb[49].mxu1  ;;  %v2385_v57 = vpop.f32.mrb[49].mxu0 }
 0x167   : > { %v2274_v60 = vadd.f32 %v2273_v56, %v2272_v49  ;;  %v2275_v61 = vpop.f32.mrb[50].mxu1  ;;  %v2386_v62 = vadd.f32 %v2385_v57, %v2384_v50  ;;  %v2387_v52 = vpop.f32.mrb[50].mxu0  ;;  %v1588_v28 = vadd.f32 %v1587_v54, %v3192_v51 }
 0x168   : > { %v2276_v63 = vpop.f32.mrb[51].mxu1  ;;  %v2388_v2 = vpop.f32.mrb[51].mxu0 }
 0x169   : > { %v1331_v58 = vadd.f32 %v2274_v60, %v3136_v0  ;;  %v2277_v3 = vadd.f32 %v2276_v63, %v2275_v61  ;;  %1589 = vadd.xlane.f32.xlu0 %v1588_v28  ;;  %v2389_v34 = vadd.f32 %v2388_v2, %v2387_v52 }
 0x16b   : > { %v1334_v4 = vadd.f32 %v2277_v3, %v3140_v6  ;;  %v3198_v8 = vadd.f32 %v2386_v62, %v1331_v58 }
 0x16d   : > { %v3200_v9 = vadd.f32 %v2389_v34, %v1334_v4  ;;  %v2278_v14 = vpop.f32.mrb[52].mxu1  ;;  %v2390_v18 = vpop.f32.mrb[52].mxu0 }
 0x16e   : > { %v2279_v19 = vpop.f32.mrb[53].mxu1  ;;  %v2391_v24 = vpop.f32.mrb[53].mxu0 }
 0x16f   : > { %v2280_v25 = vadd.f32 %v2279_v19, %v2278_v14  ;;  %v2281_v26 = vpop.f32.mrb[54].mxu1  ;;  %v2392_v27 = vadd.f32 %v2391_v24, %v2390_v18  ;;  %v2393_v32 = vpop.f32.mrb[54].mxu0  ;;  %v1650_v54 = vadd.f32 %v3200_v9, %v3198_v8 }
 0x170   : > { %v2282_v40 = vpop.f32.mrb[55].mxu1  ;;  %v2394_v33 = vpop.f32.mrb[55].mxu0 }
 0x171   : > { %v1339_v0 = vadd.f32 %v2280_v25, %v3144_v12  ;;  %v2283_v36 = vadd.f32 %v2282_v40, %v2281_v26  ;;  %v2395_v37 = vadd.f32 %v2394_v33, %v2393_v32 }
 0x173   : > { %v1342_v6 = vadd.f32 %v2283_v36, %v3148_v20  ;;  %v3204_v16 = vadd.f32 %v2392_v27, %v1339_v0 }
 0x175   : > { %v3206_v46 = vadd.f32 %v2395_v37, %v1342_v6  ;;  %v2284_v43 = vpop.f32.mrb[56].mxu1  ;;  %v2396_v22 = vpop.f32.mrb[56].mxu0  ;;  %v1651_v52 = vadd.f32 %v1650_v54, %v3204_v16 }
 0x176   : > { %v2285_v49 = vpop.f32.mrb[57].mxu1  ;;  %v2397_v50 = vpop.f32.mrb[57].mxu0 }
 0x177   : > { %v2286_v56 = vadd.f32 %v2285_v49, %v2284_v43  ;;  %v2287_v57 = vpop.f32.mrb[58].mxu1  ;;  %v2398_v60 = vadd.f32 %v2397_v50, %v2396_v22  ;;  %v2399_v61 = vpop.f32.mrb[58].mxu0  ;;  %v1652_v3 = vadd.f32 %v1651_v52, %v3206_v46 }
 0x178   : > { %v2288_v12 = vpop.f32.mrb[59].mxu1  ;;  %v2400_v62 = vpop.f32.mrb[59].mxu0 }
 0x179   : > { %v1347_v20 = vadd.f32 %v2286_v56, %v3152_v30  ;;  %v2289_v28 = vadd.f32 %v2288_v12, %v2287_v57  ;;  %v2401_v63 = vadd.f32 %v2400_v62, %v2399_v61 }
 0x17b   : > { %v1350_v2 = vadd.f32 %v2289_v28, %v3156_v38  ;;  %v3213_v58 = vadd.f32 %v2398_v60, %v1347_v20 }
 0x17d   : > { %v3216_v34 = vadd.f32 %v2401_v63, %v1350_v2  ;;  %v2290_v4 = vpop.f32.mrb[60].mxu1  ;;  %v2402_v14 = vpop.f32.mrb[60].mxu0  ;;  %v1653_v24 = vadd.f32 %v1652_v3, %v3213_v58 }
 0x17e   : > { %v2291_v18 = vpop.f32.mrb[61].mxu1  ;;  %v2403_v19 = vpop.f32.mrb[61].mxu0 }
 0x17f   : > { %v2292_v25 = vadd.f32 %v2291_v18, %v2290_v4  ;;  %v2293_v26 = vpop.f32.mrb[62].mxu1  ;;  %v2404_v27 = vadd.f32 %v2403_v19, %v2402_v14  ;;  %v2405_v30 = vpop.f32.mrb[62].mxu0  ;;  %v1654_v6 = vadd.f32 %v1653_v24, %v3216_v34 }
 0x180   : > { %v2294_v32 = vpop.f32.mrb[63].mxu1  ;;  %v2406_v40 = vpop.f32.mrb[63].mxu0 }
 0x181   : > { %v1355_v38 = vadd.f32 %v2292_v25, %v3160_v48  ;;  %v2295_v33 = vadd.f32 %v2294_v32, %v2293_v26  ;;  %v2407_v0 = vadd.f32 %v2406_v40, %v2405_v30 }
 0x183   : > { %v1358_v36 = vadd.f32 %v2295_v33, %v3162_v55  ;;  %v3221_v37 = vadd.f32 %v2404_v27, %v1355_v38 }
 0x185   : > { %v2296_v43 = vpop.f32.mrb[64].mxu1  ;;  %v2408_v22 = vpop.f32.mrb[64].mxu0  ;;  %v3224_v49 = vadd.f32 %v2407_v0, %v1358_v36  ;;  %v1655_v50 = vadd.f32 %v1654_v6, %v3221_v37 }
 0x186   : > { %v2297_v54 = vpop.f32.mrb[65].mxu1  ;;  %v2409_v56 = vpop.f32.mrb[65].mxu0 }
 0x187   : > { %v2298_v57 = vadd.f32 %v2297_v54, %v2296_v43  ;;  %v2299_v60 = vpop.f32.mrb[66].mxu1  ;;  %v2410_v61 = vadd.f32 %v2409_v56, %v2408_v22  ;;  %v2411_v48 = vpop.f32.mrb[66].mxu0  ;;  %v1656_v12 = vadd.f32 %v1655_v50, %v3224_v49 }
 0x188   : > { %v2300_v62 = vpop.f32.mrb[67].mxu1  ;;  %v2412_v55 = vpop.f32.mrb[67].mxu0 }
 0x189   : > { %v1363_v52 = vadd.f32 %v2298_v57, %v3106_v17  ;;  %v2301_v20 = vadd.f32 %v2300_v62, %v2299_v60  ;;  %1657 = vadd.xlane.f32.xlu1 %v1656_v12  ;;  %v2413_v28 = vadd.f32 %v2412_v55, %v2411_v48 }
 0x18b   : > { %v1366_v63 = vadd.f32 %v2301_v20, %v3110_v23  ;;  %v3230_v2 = vadd.f32 %v2410_v61, %v1363_v52 }
 0x18d   : > { %v3232_v3 = vadd.f32 %v2413_v28, %v1366_v63  ;;  %v2302_v4 = vpop.f32.mrb[68].mxu1  ;;  %v2414_v14 = vpop.f32.mrb[68].mxu0 }
 0x18e   : > { %v2303_v18 = vpop.f32.mrb[69].mxu1  ;;  %v2415_v19 = vpop.f32.mrb[69].mxu0 }
 0x18f   : > { %v2304_v24 = vadd.f32 %v2303_v18, %v2302_v4  ;;  %v2305_v25 = vpop.f32.mrb[70].mxu1  ;;  %v2416_v26 = vadd.f32 %v2415_v19, %v2414_v14  ;;  %v2417_v27 = vpop.f32.mrb[70].mxu0 }
 0x190   : > { %v2306_v30 = vpop.f32.mrb[71].mxu1  ;;  %v2418_v32 = vpop.f32.mrb[71].mxu0 }
 0x191   : > { %v1371_v17 = vadd.f32 %v2304_v24, %v3114_v29  ;;  %v2307_v40 = vadd.f32 %v2306_v30, %v2305_v25  ;;  %v2419_v38 = vadd.f32 %v2418_v32, %v2417_v27 }
 0x193   : > { %v1374_v23 = vadd.f32 %v2307_v40, %v3118_v35  ;;  %v3236_v33 = vadd.f32 %v2416_v26, %v1371_v17 }
 0x195   : > { %v3238_v0 = vadd.f32 %v2419_v38, %v1374_v23  ;;  %v2308_v36 = vpop.f32.mrb[72].mxu1  ;;  %v2420_v6 = vpop.f32.mrb[72].mxu0 }
 0x196   : > { %v2309_v43 = vpop.f32.mrb[73].mxu1  ;;  %v2421_v22 = vpop.f32.mrb[73].mxu0 }
 0x197   : > { %v2310_v50 = vadd.f32 %v2309_v43, %v2308_v36  ;;  %v2311_v54 = vpop.f32.mrb[74].mxu1  ;;  %v2422_v56 = vadd.f32 %v2421_v22, %v2420_v6  ;;  %v2423_v57 = vpop.f32.mrb[74].mxu0 }
 0x198   : > { %v2312_v60 = vpop.f32.mrb[75].mxu1  ;;  %v2424_v61 = vpop.f32.mrb[75].mxu0 }
 0x199   : > { %v1379_v29 = vadd.f32 %v2310_v50, %v3122_v41  ;;  %v2313_v48 = vadd.f32 %v2312_v60, %v2311_v54  ;;  %v2425_v12 = vadd.f32 %v2424_v61, %v2423_v57 }
 0x19b   : > { %v1382_v35 = vadd.f32 %v2313_v48, %v3126_v47  ;;  %v3242_v62 = vadd.f32 %v2422_v56, %v1379_v29 }
 0x19d   : > { %v3244_v55 = vadd.f32 %v2425_v12, %v1382_v35  ;;  %v2314_v52 = vpop.f32.mrb[76].mxu1  ;;  %v2426_v20 = vpop.f32.mrb[76].mxu0 }
 0x19e   : > { %v2315_v28 = vpop.f32.mrb[77].mxu1  ;;  %v2427_v63 = vpop.f32.mrb[77].mxu0 }
 0x19f   : > { %v2316_v4 = vadd.f32 %v2315_v28, %v2314_v52  ;;  %v2317_v14 = vpop.f32.mrb[78].mxu1  ;;  %v2428_v18 = vadd.f32 %v2427_v63, %v2426_v20  ;;  %v2429_v19 = vpop.f32.mrb[78].mxu0 }
 0x1a0   : > { %v2318_v24 = vpop.f32.mrb[79].mxu1  ;;  %v2430_v25 = vpop.f32.mrb[79].mxu0 }
 0x1a1   : > { %v1387_v41 = vadd.f32 %v2316_v4, %v3130_v53  ;;  %v2319_v26 = vadd.f32 %v2318_v24, %v2317_v14  ;;  %v2431_v27 = vadd.f32 %v2430_v25, %v2429_v19 }
 0x1a3   : > { %v1390_v47 = vadd.f32 %v2319_v26, %v3134_v59  ;;  %v3248_v30 = vadd.f32 %v2428_v18, %v1387_v41 }
 0x1a5   : > { %v3250_v32 = vadd.f32 %v2431_v27, %v1390_v47  ;;  %v2320_v17 = vpop.f32.mrb[80].mxu1  ;;  %v2432_v40 = vpop.f32.mrb[80].mxu0 }
 0x1a6   : > { %v2321_v38 = vpop.f32.mrb[81].mxu1  ;;  %v2433_v23 = vpop.f32.mrb[81].mxu0 }
 0x1a7   : > { %v2322_v36 = vadd.f32 %v2321_v38, %v2320_v17  ;;  %v2323_v6 = vpop.f32.mrb[82].mxu1  ;;  %v2434_v43 = vadd.f32 %v2433_v23, %v2432_v40  ;;  %v2435_v22 = vpop.f32.mrb[82].mxu0 }
 0x1a8   : > { %v2324_v50 = vpop.f32.mrb[83].mxu1  ;;  %v2436_v54 = vpop.f32.mrb[83].mxu0 }
 0x1a9   : > { %v1395_v53 = vadd.f32 %v2322_v36, %v3138_v1  ;;  %v2325_v56 = vadd.f32 %v2324_v50, %v2323_v6  ;;  %v2437_v57 = vadd.f32 %v2436_v54, %v2435_v22 }
 0x1ab   : > { %v1398_v59 = vadd.f32 %v2325_v56, %v3142_v7  ;;  %v3254_v60 = vadd.f32 %v2434_v43, %v1395_v53 }
 0x1ad   : > { %v3256_v61 = vadd.f32 %v2437_v57, %v1398_v59  ;;  %v2326_v29 = vpop.f32.mrb[84].mxu1  ;;  %v2438_v48 = vpop.f32.mrb[84].mxu0 }
 0x1ae   : > { %v2327_v12 = vpop.f32.mrb[85].mxu1  ;;  %v2439_v35 = vpop.f32.mrb[85].mxu0 }
 0x1af   : > { %v2328_v52 = vadd.f32 %v2327_v12, %v2326_v29  ;;  %v2329_v20 = vpop.f32.mrb[86].mxu1  ;;  %v2440_v28 = vadd.f32 %v2439_v35, %v2438_v48  ;;  %v2441_v63 = vpop.f32.mrb[86].mxu0  ;;  %v1718_v35 = vadd.f32 %v3232_v3, %v3230_v2 }
 0x1b0   : > { %v2330_v4 = vpop.f32.mrb[87].mxu1  ;;  %v2442_v14 = vpop.f32.mrb[87].mxu0 }
 0x1b1   : > { %v1403_v1 = vadd.f32 %v2328_v52, %v3146_v13  ;;  %v2331_v18 = vadd.f32 %v2330_v4, %v2329_v20  ;;  %v2443_v19 = vadd.f32 %v2442_v14, %v2441_v63 }
 0x1b3   : > { %v1406_v7 = vadd.f32 %v2331_v18, %v3150_v21  ;;  %v3260_v24 = vadd.f32 %v2440_v28, %v1403_v1 }
 0x1b5   : > { %v3262_v25 = vadd.f32 %v2443_v19, %v1406_v7  ;;  %v2332_v41 = vpop.f32.mrb[88].mxu1  ;;  %v2444_v26 = vpop.f32.mrb[88].mxu0 }
 0x1b6   : > { %v2333_v27 = vpop.f32.mrb[89].mxu1  ;;  %v2445_v47 = vpop.f32.mrb[89].mxu0 }
 0x1b7   : > { %v2334_v17 = vadd.f32 %v2333_v27, %v2332_v41  ;;  %v2335_v40 = vpop.f32.mrb[90].mxu1  ;;  %v2446_v38 = vadd.f32 %v2445_v47, %v2444_v26  ;;  %v2447_v23 = vpop.f32.mrb[90].mxu0 }
 0x1b8   : > { %v2336_v36 = vpop.f32.mrb[91].mxu1  ;;  %v2448_v6 = vpop.f32.mrb[91].mxu0 }
 0x1b9   : > { %v1411_v13 = vadd.f32 %v2334_v17, %v3154_v31  ;;  %v2337_v43 = vadd.f32 %v2336_v36, %v2335_v40  ;;  %v2449_v22 = vadd.f32 %v2448_v6, %v2447_v23  ;;  %v1719_v31 = vadd.f32 %v1718_v35, %v3236_v33 }
 0x1bb   : > { %v1414_v21 = vadd.f32 %v2337_v43, %v3158_v39  ;;  %v3266_v50 = vadd.f32 %v2446_v38, %v1411_v13  ;;  %v1720_v52 = vadd.f32 %v1719_v31, %v3238_v0 }
 0x1bd   : > { %v3268_v54 = vadd.f32 %v2449_v22, %v1414_v21  ;;  %v1721_v39 = vadd.f32 %v1720_v52, %v3242_v62 }
 0x1bf   : > { %v1722_v20 = vadd.f32 %v1721_v39, %v3244_v55 }
 0x1c1   : > { %v1723_v28 = vadd.f32 %v1722_v20, %v3248_v30 }
 0x1c3   : > { %v1724_v18 = vadd.f32 %v1723_v28, %v3250_v32 }
 0x1f6   : > { %v1590_v53 = vpop.xlane.xlu0 %1589 }
 0x1f7   : > { %v1591_v56 = vrot.slane %v1590_v53, 4 }
 0x1f9   : > { %v1592_v57 = vadd.f32 %v1591_v56, %v1590_v53 }
 0x1fb   : > { %v1593_v59 = vrot.slane %v1592_v57, 2 }
 0x1fd   : > { %v1594_v29 = vadd.f32 %v1593_v59, %v1592_v57 }
 0x1ff   : > { %v1595_v48 = vrot.slane %v1594_v29, 1 }
 0x201   : > { %v1596_v12 = vadd.f32 %v1595_v48, %v1594_v29 }
 0x203   : > { %2473 = vpush %v1596_v12 }
 0x216   : > { %v1658_v52 = vpop.xlane.xlu1 %1657 }
 0x217   : > { %v1659_v39 = vrot.slane %v1658_v52, 4 }
 0x219   : > { %v1660_v20 = vadd.f32 %v1659_v39, %v1658_v52  ;;  %v2689_v52 = vld [vmem:[%s3500_s1 + $0x2d8] ss:$24 sps:$4 sm:$0xff]  }
 0x21a   : > { %v2690_v39 = vld [vmem:[%s3500_s1 + $0x2e0] ss:$24 sps:$4 sm:$0xff]  }
 0x21b   : > { %v1661_v28 = vrot.slane %v1660_v20, 2 }
 0x234   : > { %s2474_s17 = spop %2473 }
 0x235   : > { %s1600_s19 = smul.f32 0.00012207031, %s2474_s17  ;;  %s2119_s17 = sshll.u32 %s3503_s10, 6 }
 0x237   : > { %v1601_v63 = vstv %s1600_s19 }
 0x238   : > { %v3278_v4 = vsub.f32 %v3165_v11, %v1601_v63  ;;  %v3281_v14 = vsub.f32 %v3168_v15, %v1601_v63  ;;  %v3284_v1 = vsub.f32 %v3171_v44, %v1601_v63  ;;  %v3288_v19 = vsub.f32 %v3174_v45, %v1601_v63 }
 0x239   : > { %v1725_v11 = vadd.f32 %v1724_v18, %v3254_v60  ;;  %v3296_v26 = vsub.f32 %v3180_v5, %v1601_v63  ;;  %v3301_v27 = vsub.f32 %v3184_v10, %v1601_v63  ;;  %v3307_v40 = vsub.f32 %v3188_v42, %v1601_v63 }
 0x23a   : > { %v1610_v7 = vmul.f32 %v3278_v4, %v3278_v4  ;;  %v1611_v41 = vmul.f32 %v3281_v14, %v3281_v14  ;;  %v1612_v15 = vmul.f32 %v3284_v1, %v3284_v1  ;;  %v1613_v45 = vmul.f32 %v3288_v19, %v3288_v19 }
 0x23b   : > { %v1726_v17 = vadd.f32 %v1725_v11, %v3256_v61  ;;  %v1614_v5 = vmul.f32 %v3296_v26, %v3296_v26  ;;  %v3313_v36 = vsub.f32 %v3192_v51, %v1601_v63  ;;  %v1615_v10 = vmul.f32 %v3301_v27, %v3301_v27 }
 0x23c   : > { %v1618_v44 = vadd.f32 %v1611_v41, %v1610_v7  ;;  %v1616_v13 = vmul.f32 %v3307_v40, %v3307_v40  ;;  %v1662_v18 = vadd.f32 %v1661_v28, %v1660_v20 }
 0x23d   : > { %v1727_v23 = vadd.f32 %v1726_v17, %v3260_v24  ;;  %v1617_v22 = vmul.f32 %v3313_v36, %v3313_v36 }
 0x23e   : > { %v1619_v47 = vadd.f32 %v1618_v44, %v1612_v15  ;;  %v1663_v7 = vrot.slane %v1662_v18, 1 }
 0x23f   : > { %v1728_v42 = vadd.f32 %v1727_v23, %v3262_v25 }
 0x240   : > { %v1620_v38 = vadd.f32 %v1619_v47, %v1613_v45  ;;  %v1664_v11 = vadd.f32 %v1663_v7, %v1662_v18 }
 0x241   : > { %v1729_v56 = vadd.f32 %v1728_v42, %v3266_v50 }
 0x242   : > { %v1621_v6 = vadd.f32 %v1620_v38, %v1614_v5 }
 0x243   : > { %v1730_v51 = vadd.f32 %v1729_v56, %v3268_v54 }
 0x244   : > { %v1622_v43 = vadd.f32 %v1621_v6, %v1615_v10 }
 0x246   : > { %v1623_v21 = vadd.f32 %v1622_v43, %v1616_v13 }
 0x248   : > { %v1624_v53 = vadd.f32 %v1623_v21, %v1617_v22 }
 0x24a   : > { %1625 = vadd.xlane.f32.xlu0 %v1624_v53 }
 0x24e   : > { %1731 = vadd.xlane.f32.xlu0 %v1730_v51 }
 0x2d7   : > { %v1626_v57 = vpop.xlane.xlu0 %1625 }
 0x2d8   : > { %v1627_v59 = vrot.slane %v1626_v57, 4 }
 0x2da   : > { %v1628_v29 = vadd.f32 %v1627_v59, %v1626_v57 }
 0x2db   : > { %v1732_v20 = vpop.xlane.xlu0 %1731 }
 0x2dc   : > { %v1629_v48 = vrot.slane %v1628_v29, 2  ;;  %v1733_v28 = vrot.slane %v1732_v20, 4 }
 0x2de   : > { %v1630_v12 = vadd.f32 %v1629_v48, %v1628_v29 }
 0x2e0   : > { %v1631_v35 = vrot.slane %v1630_v12, 1 }
 0x2e2   : > { %v1632_v31 = vadd.f32 %v1631_v35, %v1630_v12  ;;  %v2685_v35 = vld [vmem:[%s3500_s1 + $0x2dc] ss:$24 sps:$4 sm:$0xff]  }
 0x2e3   : > { %1416 = vmatprep.mubr.bf16.mxu1 %v2685_v35 }
 0x2e4   : > { %2475 = vpush %v1632_v31  ;;  %v2687_v31 = vld [vmem:[%s3500_s1 + $0x2e4] ss:$24 sps:$4 sm:$0xff]   ;;  %1417 = vmatmul.mubr.bf16.gmra.mrb[92].mxu1 %v2689_v52 }
 0x2e5   : > { %1575 = vmatprep.mubr.bf16.mxu0 %v2687_v31 }
 0x2e6   : > { %1576 = vmatmul.mubr.bf16.gmra.mrb[92].mxu0 %v2690_v39 }
 0x315   : > { %s2476_s20 = spop %2475 }
 0x316   : > { %s1636_s21 = smul.f32 0.00012207031, %s2476_s20  ;;  %s3472_s20 = scalar_lea.vmem %s3501_s2, %s2119_s17 }
 0x318   : > { %s1637_s22 = sadd.f32 1e-05, %s1636_s21 }
 0x31a   : > { %v1638_v63 = vstv %s1637_s22 }
 0x31b   : > { %2691 = vrsqrt.f32 %v1638_v63  ;;  %v1734_v63 = vadd.f32 %v1733_v28, %v1732_v20 }
 0x31d   : > { %v1735_v18 = vrot.slane %v1734_v63, 2 }
 0x325   : > { %v2692_v41 = vpop.eup %2691 }
 0x326   : > { %2477 = vpush %v2692_v41  ;;  %v1736_v41 = vadd.f32 %v1735_v18, %v1734_v63 }
 0x327   : > { %2479 = vpush %v1664_v11 }
 0x328   : > { %v1737_v11 = vrot.slane %v1736_v41, 1 }
 0x357   : > { %s3324_s23 = spop %2477 }
 0x358   : > { %s2480_s24 = spop %2479 }
 0x359   : > { %s1668_s25 = smul.f32 0.00012207031, %s2480_s24 }
 0x35b   : > { %v1669_v15 = vstv %s1668_s25 }
 0x35c   : > { %v3327_v44 = vsub.f32 %v3198_v8, %v1669_v15  ;;  %v3330_v45 = vsub.f32 %v3200_v9, %v1669_v15  ;;  %v3333_v47 = vsub.f32 %v3204_v16, %v1669_v15  ;;  %v3336_v17 = vsub.f32 %v3206_v46, %v1669_v15 }
 0x35d   : > { %v3343_v23 = vsub.f32 %v3213_v58, %v1669_v15  ;;  %v3348_v10 = vsub.f32 %v3216_v34, %v1669_v15  ;;  %v3353_v6 = vsub.f32 %v3221_v37, %v1669_v15  ;;  %v3358_v58 = vsub.f32 %v3224_v49, %v1669_v15 }
 0x35e   : > { %v1678_v5 = vmul.f32 %v3327_v44, %v3327_v44  ;;  %v1679_v38 = vmul.f32 %v3330_v45, %v3330_v45  ;;  %v1680_v8 = vmul.f32 %v3333_v47, %v3333_v47  ;;  %v1681_v16 = vmul.f32 %v3336_v17, %v3336_v17 }
 0x35f   : > { %v1682_v13 = vmul.f32 %v3343_v23, %v3343_v23  ;;  %v1683_v42 = vmul.f32 %v3348_v10, %v3348_v10  ;;  %v1684_v34 = vmul.f32 %v3353_v6, %v3353_v6  ;;  %v1685_v53 = vmul.f32 %v3358_v58, %v3358_v58 }
 0x360   : > { %v1686_v9 = vadd.f32 %v1679_v38, %v1678_v5  ;;  %v1738_v5 = vadd.f32 %v1737_v11, %v1736_v41 }
 0x362   : > { %v1687_v46 = vadd.f32 %v1686_v9, %v1680_v8 }
 0x364   : > { %v1688_v43 = vadd.f32 %v1687_v46, %v1681_v16 }
 0x366   : > { %v1689_v22 = vadd.f32 %v1688_v43, %v1682_v13 }
 0x368   : > { %v1690_v21 = vadd.f32 %v1689_v22, %v1683_v42 }
 0x36a   : > { %v1691_v37 = vadd.f32 %v1690_v21, %v1684_v34 }
 0x36c   : > { %v1692_v56 = vadd.f32 %v1691_v37, %v1685_v53 }
 0x36e   : > { %1693 = vadd.xlane.f32.xlu1 %v1692_v56 }
 0x3b7   : > { %v2338_v41 = vpop.f32.mrb[92].mxu1 }
 0x3b9   : > { %v2450_v11 = vpop.f32.mrb[92].mxu0 }
 0x3fb   : > { %v1694_v51 = vpop.xlane.xlu1 %1693 }
 0x3fc   : > { %v1695_v57 = vrot.slane %v1694_v51, 4 }
 0x3fe   : > { %v1696_v59 = vadd.f32 %v1695_v57, %v1694_v51 }
 0x400   : > { %v1697_v29 = vrot.slane %v1696_v59, 2 }
 0x402   : > { %v1698_v49 = vadd.f32 %v1697_v29, %v1696_v59 }
 0x404   : > { %v1699_v48 = vrot.slane %v1698_v49, 1 }
 0x406   : > { %v1700_v12 = vadd.f32 %v1699_v48, %v1698_v49 }
 0x408   : > { %2481 = vpush %v1700_v12 }
 0x439   : > { %s2482_s6 = spop %2481 }
 0x43a   : > { %s1704_s7 = smul.f32 0.00012207031, %s2482_s6 }
 0x43c   : > { %s1705_s18 = sadd.f32 1e-05, %s1704_s7 }
 0x43e   : > { %v1706_v7 = vstv %s1705_s18 }
 0x43f   : > { %2693 = vrsqrt.f32 %v1706_v7 }
 0x449   : > { %v2694_v15 = vpop.eup %2693 }
 0x44a   : > { %2483 = vpush %v2694_v15  ;;  %v2339_v15 = vpop.f32.mrb[93].mxu1 }
 0x44b   : > { %2485 = vpush %v1738_v5  ;;  %v2341_v5 = vpop.f32.mrb[94].mxu1 }
 0x47b   : > { %s3378_s8 = spop %2483 }
 0x47c   : > { %s2486_s11 = spop %2485 }
 0x47d   : > { %s1742_s12 = smul.f32 6.975447e-05, %s2486_s11 }
 0x47f   : > { %v1743_v38 = vstv %s1742_s12 }
 0x480   : > { %v3381_v8 = vsub.f32 %v3230_v2, %v1743_v38  ;;  %v3384_v9 = vsub.f32 %v3232_v3, %v1743_v38  ;;  %v3387_v16 = vsub.f32 %v3236_v33, %v1743_v38  ;;  %v3394_v43 = vsub.f32 %v3238_v0, %v1743_v38 }
 0x481   : > { %v3397_v42 = vsub.f32 %v3242_v62, %v1743_v38  ;;  %v3402_v22 = vsub.f32 %v3244_v55, %v1743_v38  ;;  %v3407_v21 = vsub.f32 %v3248_v30, %v1743_v38  ;;  %v3412_v62 = vsub.f32 %v3250_v32, %v1743_v38 }
 0x482   : > { %v1758_v46 = vmul.f32 %v3381_v8, %v3381_v8  ;;  %v1759_v13 = vmul.f32 %v3384_v9, %v3384_v9  ;;  %v1760_v2 = vmul.f32 %v3387_v16, %v3387_v16  ;;  %v1761_v33 = vmul.f32 %v3394_v43, %v3394_v43 }
 0x483   : > { %v1762_v0 = vmul.f32 %v3397_v42, %v3397_v42  ;;  %v1763_v37 = vmul.f32 %v3402_v22, %v3402_v22  ;;  %v3417_v55 = vsub.f32 %v3254_v60, %v1743_v38  ;;  %v1764_v51 = vmul.f32 %v3407_v21, %v3407_v21 }
 0x484   : > { %v1772_v3 = vadd.f32 %v1759_v13, %v1758_v46  ;;  %v3422_v30 = vsub.f32 %v3256_v61, %v1743_v38  ;;  %v1765_v59 = vmul.f32 %v3412_v62, %v3412_v62  ;;  %v3427_v32 = vsub.f32 %v3260_v24, %v1743_v38  ;;  %v2342_v13 = vpop.f32.mrb[95].mxu1 }
 0x485   : > { %v1766_v49 = vmul.f32 %v3417_v55, %v3417_v55  ;;  %v3432_v60 = vsub.f32 %v3262_v25, %v1743_v38  ;;  %v1756_v61 = vsub.f32 %v3266_v50, %v1743_v38  ;;  %v1757_v24 = vsub.f32 %v3268_v54, %v1743_v38  ;;  %v2451_v50 = vpop.f32.mrb[93].mxu0 }
 0x486   : > { %v1773_v34 = vadd.f32 %v1772_v3, %v1760_v2  ;;  %v1767_v12 = vmul.f32 %v3422_v30, %v3422_v30  ;;  %v1768_v31 = vmul.f32 %v3427_v32, %v3427_v32  ;;  %v2453_v46 = vpop.f32.mrb[94].mxu0 }
 0x487   : > { %v1769_v39 = vmul.f32 %v3432_v60, %v3432_v60  ;;  %v1770_v28 = vmul.f32 %v1756_v61, %v1756_v61  ;;  %v1771_v25 = vmul.f32 %v1757_v24, %v1757_v24  ;;  %v2454_v2 = vpop.f32.mrb[95].mxu0 }
 0x488   : > { %v1774_v53 = vadd.f32 %v1773_v34, %v1761_v33 }
 0x48a   : > { %v1775_v56 = vadd.f32 %v1774_v53, %v1762_v0 }
 0x48c   : > { %v1776_v57 = vadd.f32 %v1775_v56, %v1763_v37 }
 0x48e   : > { %v1777_v29 = vadd.f32 %v1776_v57, %v1764_v51  ;;  %v1641_v51 = vstv %s3324_s23 }
 0x48f   : > { %v1642_v57 = vmul.f32 %v1641_v51, %v3278_v4  ;;  %v1644_v13 = vmul.f32 %v1641_v51, %v3284_v1 }
 0x490   : > { %v1778_v48 = vadd.f32 %v1777_v29, %v1765_v59  ;;  %v1643_v59 = vmul.f32 %v1641_v51, %v3281_v14  ;;  %v1646_v29 = vmul.f32 %v1641_v51, %v3296_v26 }
 0x492   : > { %v1779_v35 = vadd.f32 %v1778_v48, %v1766_v49  ;;  %v1647_v49 = vmul.f32 %v1641_v51, %v3301_v27  ;;  %v3448_v48 = vstv %s3378_s8 }
 0x494   : > { %v1780_v52 = vadd.f32 %v1779_v35, %v1767_v12  ;;  %v1648_v35 = vmul.f32 %v1641_v51, %v3307_v40  ;;  %v1711_v40 = vmul.f32 %v3448_v48, %v3330_v45 }
 0x496   : > { %v1781_v20 = vadd.f32 %v1780_v52, %v1768_v31  ;;  %v1649_v31 = vmul.f32 %v1641_v51, %v3313_v36 }
 0x498   : > { %v1782_v63 = vadd.f32 %v1781_v20, %v1769_v39  ;;  %v1710_v20 = vmul.f32 %v3448_v48, %v3327_v44 }
 0x49a   : > { %v1783_v18 = vadd.f32 %v1782_v63, %v1770_v28 }
 0x49c   : > { %v1784_v7 = vadd.f32 %v1783_v18, %v1771_v25 }
 0x49e   : > { %1785 = vadd.xlane.f32.xlu1 %v1784_v7 }
 0x52b   : > { %v1786_v54 = vpop.xlane.xlu1 %1785 }
 0x52c   : > { %v1787_v38 = vrot.slane %v1786_v54, 4 }
 0x52e   : > { %v1788_v3 = vadd.f32 %v1787_v38, %v1786_v54 }
 0x530   : > { %v1789_v33 = vrot.slane %v1788_v3, 2 }
 0x532   : > { %v1790_v34 = vadd.f32 %v1789_v33, %v1788_v3  ;;  %v1645_v3 = vmul.f32 %v1641_v51, %v3288_v19  ;;  %v1714_v33 = vmul.f32 %v3448_v48, %v3343_v23  ;;  %v1715_v19 = vmul.f32 %v3448_v48, %v3348_v10 }
 0x534   : > { %v1791_v0 = vrot.slane %v1790_v34, 1 }
 0x536   : > { %v1792_v53 = vadd.f32 %v1791_v0, %v1790_v34 }
 0x538   : > { %2487 = vpush %v1792_v53 }
 0x569   : > { %s2488_s13 = spop %2487 }
 0x56a   : > { %s1796_s14 = smul.f32 6.975447e-05, %s2488_s13 }
 0x56c   : > { %s1797_s15 = sadd.f32 1e-05, %s1796_s14 }
 0x56e   : > { %v1798_v37 = vstv %s1797_s15 }
 0x56f   : > { %2695 = vrsqrt.f32 %v1798_v37 }
 0x579   : > { %v2696_v56 = vpop.eup %2695 }
 0x57a   : > { %2489 = vpush %v2696_v56 }
 0x5ab   : > { %s2490_s16 = spop %2489 }
 0x5ac   : > { %v1801_v12 = vstv %s2490_s16 }
 0x5ad   : > { %v1802_v52 = vmul.f32 %v1801_v12, %v3381_v8  ;;  %v1803_v39 = vmul.f32 %v1801_v12, %v3384_v9  ;;  %v1806_v4 = vmul.f32 %v1801_v12, %v3397_v42  ;;  %v1807_v14 = vmul.f32 %v1801_v12, %v3402_v22 }
 0x5ae   : > { %v1808_v26 = vmul.f32 %v1801_v12, %v3407_v21  ;;  %v1809_v27 = vmul.f32 %v1801_v12, %v3412_v62  ;;  %v1810_v36 = vmul.f32 %v1801_v12, %v3417_v55  ;;  %v1811_v8 = vmul.f32 %v1801_v12, %v3422_v30 }
 0x5af   : > { %v1814_v9 = vmul.f32 %v1801_v12, %v1756_v61  ;;  %v1815_v28 = vmul.f32 %v1801_v12, %v1757_v24  ;;  %v1816_v63 = vadd.f32 %v1802_v52, %v1642_v57  ;;  %v1817_v42 = vadd.f32 %v1803_v39, %v1643_v59 }
 0x5b0   : > { %v1712_v22 = vmul.f32 %v3448_v48, %v3333_v47  ;;  %v1713_v21 = vmul.f32 %v3448_v48, %v3336_v17  ;;  %v1830_v44 = vadd.f32 %v1806_v4, %v1646_v29  ;;  %v1831_v45 = vadd.f32 %v1807_v14, %v1647_v49 }
 0x5b1   : > { %v2109_v62 = vmul.f32 -1.442695, %v1816_v63  ;;  %v2110_v55 = vmul.f32 -1.442695, %v1817_v42  ;;  %v1850_v30 = vadd.f32 %v1808_v26, %v1648_v35  ;;  %v1851_v61 = vadd.f32 %v1809_v27, %v1649_v31 }
 0x5b2   : > { %v1716_v24 = vmul.f32 %v3448_v48, %v3353_v6  ;;  %v2111_v47 = vmul.f32 -1.442695, %v1830_v44  ;;  %v2112_v25 = vmul.f32 -1.442695, %v1831_v45  ;;  %v1852_v18 = vadd.f32 %v1810_v36, %v1710_v20 }
 0x5b3   : > { %2697 = vpow2.f32 %v2109_v62  ;;  %v1853_v17 = vadd.f32 %v1811_v8, %v1711_v40  ;;  %v1866_v7 = vadd.f32 %v1814_v9, %v1712_v22  ;;  %v1867_v41 = vadd.f32 %v1815_v28, %v1713_v21  ;;  %1898 = vst [vmem:[%s3472_s20 + $0x20] sm:$0xff] %v1850_v30  ;;  %1899 = vst [vmem:[%s3472_s20 + $0x28] sm:$0xff] %v1851_v61 }
 0x5b4   : > { %v1804_v11 = vmul.f32 %v1801_v12, %v3387_v16  ;;  %2699 = vpow2.f32 %v2110_v55  ;;  %v2113_v15 = vmul.f32 -1.442695, %v1852_v18  ;;  %v1805_v6 = vmul.f32 %v1801_v12, %v3394_v43 }
 0x5b5   : > { %2701 = vpow2.f32 %v2111_v47  ;;  %v2114_v50 = vmul.f32 -1.442695, %v1853_v17  ;;  %v1868_v5 = vadd.f32 1.0, %v1866_v7  ;;  %v1869_v46 = vadd.f32 1.0, %v1867_v41 }
 0x5b6   : > { %2703 = vpow2.f32 %v2112_v25  ;;  %v1812_v2 = vmul.f32 %v1801_v12, %v3427_v32  ;;  %v1717_v16 = vmul.f32 %v3448_v48, %v3358_v58  ;;  %v1844_v34 = vadd.f32 %v1804_v11, %v1644_v13 }
 0x5b7   : > { %2705 = vtanh.f32 %v1716_v24  ;;  %v2115_v54 = vmul.f32 -1.442695, %v1868_v5  ;;  %v2116_v38 = vmul.f32 -1.442695, %v1869_v46  ;;  %v1845_v1 = vadd.f32 %v1805_v6, %v1645_v3 }
 0x5b8   : > { %2707 = vpow2.f32 %v2113_v15  ;;  %v1882_v43 = vadd.f32 %v1812_v2, %v1714_v33  ;;  %v1813_v32 = vmul.f32 %v1801_v12, %v3432_v60 }
 0x5b9   : > { %2709 = vpow2.f32 %v2114_v50 }
 0x5ba   : > { %2711 = vpow2.f32 %v2115_v54  ;;  %v1883_v57 = vadd.f32 %v1813_v32, %v1715_v19 }
 0x5bb   : > { %2713 = vpow2.f32 %v2116_v38 }
 0x5bc   : > { %2715 = vtanh.f32 %v1717_v16 }
 0x5bd   : > { %v2698_v0 = vpop.eup %2697  ;;  %2717 = vtanh.f32 %v1844_v34 }
 0x5be   : > { %v2700_v53 = vpop.eup %2699  ;;  %v1824_v58 = vadd.f32 1.0, %v2698_v0  ;;  %2719 = vtanh.f32 %v1845_v1 }
 0x5bf   : > { %v2702_v37 = vpop.eup %2701  ;;  %v1825_v56 = vadd.f32 1.0, %v2700_v53  ;;  %2721 = vtanh.f32 %v1882_v43 }
 0x5c0   : > { %v2704_v23 = vpop.eup %2703  ;;  %2723 = vrcp.f32 %v1824_v58  ;;  %v1838_v51 = vadd.f32 1.0, %v2702_v37 }
 0x5c1   : > { %v2706_v59 = vpop.eup %2705  ;;  %2725 = vrcp.f32 %v1825_v56  ;;  %v1839_v29 = vadd.f32 1.0, %v2704_v23 }
 0x5c2   : > { %v2708_v49 = vpop.eup %2707  ;;  %2727 = vrcp.f32 %v1838_v51 }
 0x5c3   : > { %v2710_v60 = vpop.eup %2709  ;;  %2729 = vrcp.f32 %v1839_v29  ;;  %v1860_v12 = vadd.f32 1.0, %v2708_v49 }
 0x5c4   : > { %v2712_v35 = vpop.eup %2711  ;;  %v1861_v31 = vadd.f32 1.0, %v2710_v60  ;;  %2731 = vtanh.f32 %v1883_v57 }
 0x5c5   : > { %v2714_v10 = vpop.eup %2713  ;;  %2733 = vrcp.f32 %v1860_v12  ;;  %v1876_v48 = vadd.f32 1.0, %v2712_v35 }
 0x5c6   : > { %v2716_v52 = vpop.eup %2715  ;;  %2735 = vrcp.f32 %v1861_v31  ;;  %v1877_v39 = vadd.f32 1.0, %v2714_v10 }
 0x5c7   : > { %v2718_v4 = vpop.eup %2717  ;;  %2737 = vrcp.f32 %v1876_v48 }
 0x5c8   : > { %v2720_v14 = vpop.eup %2719  ;;  %2739 = vrcp.f32 %v1877_v39 }
 0x5c9   : > { %v2722_v26 = vpop.eup %2721 }
 0x5ca   : > { %v2724_v27 = vpop.eup %2723 }
 0x5cb   : > { %v2726_v20 = vpop.eup %2725  ;;  %v1848_v40 = vmul.f32 %v2724_v27, %v2718_v4 }
 0x5cc   : > { %v2728_v36 = vpop.eup %2727  ;;  %v1849_v8 = vmul.f32 %v2726_v20, %v2720_v14 }
 0x5cd   : > { %v2730_v9 = vpop.eup %2729  ;;  %1894 = vst [vmem:[%s3472_s20] sm:$0xff] %v2728_v36  ;;  %1896 = vst [vmem:[%s3472_s20 + $0x10] sm:$0xff] %v1848_v40 }
 0x5ce   : > { %v2732_v28 = vpop.eup %2731  ;;  %1895 = vst [vmem:[%s3472_s20 + $0x8] sm:$0xff] %v2730_v9  ;;  %1897 = vst [vmem:[%s3472_s20 + $0x18] sm:$0xff] %v1849_v8 }
 0x5cf   : > { %v2734_v63 = vpop.eup %2733 }
 0x5d0   : > { %v2736_v42 = vpop.eup %2735  ;;  %v1890_v45 = vmul.f32 %v2734_v63, %v2722_v26 }
 0x5d1   : > { %v2738_v22 = vpop.eup %2737  ;;  %v1891_v55 = vmul.f32 %v2736_v42, %v2732_v28 }
 0x5d2   : > { %v2740_v21 = vpop.eup %2739  ;;  %v1888_v44 = vmul.f32 %v2738_v22, %v2706_v59 }
 0x5d3   : > { %v1889_v62 = vmul.f32 %v2740_v21, %v2716_v52 }
 0x5d4   : > { %v1892_v30 = vadd.f32 %v1890_v45, %v1888_v44 }
 0x5d5   : > { %v1893_v61 = vadd.f32 %v1891_v55, %v1889_v62 }
 0x5d6   : > { %1900 = vst [vmem:[%s3472_s20 + $0x30] sm:$0xff] %v1892_v30 }
 0x5d7   : > { %1901 = vst [vmem:[%s3472_s20 + $0x38] sm:$0xff] %v1893_v61 }
 0x5d8 PF: > { %s12_s9 = sadd.s32 1, %s2747_s9  }
 0x5d9   : > { %p9_p4 = scmp.ge.s32.totalorder %s12_s9, 4  }
 0x5db   :  { %11 = sbr.rel (!%p9_p4) target bundleno = 1 (0x1), region = 58 }

// kernel: forward.4
= control target key start
LH: loop header
LB: loop body
LE: loop exit
PB: predicated region body
PF: predicated region fallthrough
CT: control target
= control target key end

     0   :  { %s1747_s15 = smov 0   ;;  %s2393_s0 = inlined_call_operand.vmem [shape: f32[2,128,16], index: 0, kind: input, shape index: {}]   ;;  %s2394_s1 = inlined_call_operand.vmem [shape: f32[2,256,16], index: 1, kind: input, shape index: {}]   ;;  %s2395_s2 = inlined_call_operand.vmem [shape: f32[2,128,16], index: 2, kind: input, shape index: {}]   ;;  %s2396_s3 = inlined_call_operand.vmem [shape: f32[2,128,16], index: 3, kind: input, shape index: {}]   ;;  %s2397_s4 = inlined_call_operand.vmem [shape: f32[2,128,16], index: 4, kind: output, shape index: {}]  }
   0x1 LB: > { %s1308_s16 = sadd.s32 4294967295, %s1720_s15   ;;  %p1312_p0 = scmp.ge.s32.totalorder %s1720_s15, 1  ;;  %s1720_s15 = sphi %s1747_s15, %s14_s15  }
   0x2   : > { %p192_p1 = scmp.lt.s32.totalorder %s1720_s15, 3 }
   0x4   : > { %p193_p2 = pnand %p1312_p0, %p192_p1 }
   0x5   : > { %p233_p3 = scmp.lt.s32.totalorder (!%p193_p2), %s1308_s16, 1  ;;  %vm306_vm0 = vcmask (!%p193_p2), 130048  }
   0x6   : > { %196 = sbr.rel (%p193_p2) target bundleno = 1422 (0x58e), region = 36  ;;  %vm1762_vm1 = vmpackc.low (!%p193_p2), %vm306_vm0, %vm306_vm0 }
   0xd   : > { %s2401_s16 = smov (!%p233_p3, %s1308_s16), 1 }
   0xe   : > { %s1374_s17 = sshll.u32 %s2401_s16, 8  ;;  %s1780_s21 = sshll.u32 %s2401_s16, 7 }
   0xf   : > { %s1758_s20 = scalar_lea.vmem %s2394_s1, %s1374_s17  ;;  %s1790_s24 = scalar_lea.vmem %s2393_s0, %s1780_s21 }
  0x10   : > { %v290_v1 = vld [vmem:[%s1758_s20 + $0x80] sm:$0xff]  ;;  %v291_v2 = vld [vmem:[%s1758_s20 + $0x88] sm:$0xff]  ;;  %v292_v6 = vld [vmem:[%s1758_s20 + $0x90] sm:$0xff]  ;;  %s2146_s27 = scalar_lea.vmem %s2395_s2, %s1780_s21  ;;  %s2320_s9 = scalar_lea.vmem %s2396_s3, %s1780_s21 }
  0x11   : > { %v274_v3 = vld [vmem:[%s1758_s20] sm:$0xff]  ;;  %v1522_v4 = vpack.c.bf16 %v291_v2, %v290_v1  ;;  %v275_v5 = vld [vmem:[%s1758_s20 + $0x8] sm:$0xff]  ;;  %v293_v7 = vld [vmem:[%s1758_s20 + $0x98] sm:$0xff]  ;;  %s2348_s13 = scalar_lea.vmem %s2397_s4, %s1780_s21 }
  0x12   : > { %v1525_v8 = vpack.c.bf16 %v275_v5, %v274_v3  ;;  %v1528_v9 = vpack.c.bf16 %v293_v7, %v292_v6  ;;  %v276_v10 = vld [vmem:[%s1758_s20 + $0x10] sm:$0xff]  ;;  %v277_v11 = vld [vmem:[%s1758_s20 + $0x18] sm:$0xff]  ;;  %v294_v12 = vld [vmem:[%s1758_s20 + $0xa0] sm:$0xff] }
  0x13   : > { %1524 = vmatprep.subr.msk.bf16.mxu0 %vm1762_vm1, %v1522_v4  ;;  %1571 = vmatprep.subr.bf16.mxu1 %v1522_v4  ;;  %v295_v13 = vld [vmem:[%s1758_s20 + $0xa8] sm:$0xff]  ;;  %v1531_v14 = vpack.c.bf16 %v277_v11, %v276_v10  ;;  %v278_v16 = vld [vmem:[%s1758_s20 + $0x20] sm:$0xff]  ;;  %v296_v18 = vld [vmem:[%s1758_s20 + $0xb0] sm:$0xff] }
  0x14   : > { %1527 = vmatpush3.bf16.xpose.msk.msra.mxu0 %vm1762_vm1, %v1525_v8  ;;  %1573 = vmatpush3.bf16.msra.mxu1 %v1525_v8  ;;  %v1534_v15 = vpack.c.bf16 %v295_v13, %v294_v12  ;;  %v279_v17 = vld [vmem:[%s1758_s20 + $0x28] sm:$0xff]  ;;  %v297_v19 = vld [vmem:[%s1758_s20 + $0xb8] sm:$0xff]  ;;  %v258_v21 = vld [vmem:[%s1790_s24] sm:$0xff] }
  0x15   : > { %1530 = vmatprep.subr.msk.bf16.mxu0 %vm1762_vm1, %v1528_v9  ;;  %1575 = vmatprep.subr.bf16.mxu1 %v1528_v9  ;;  %v1537_v20 = vpack.c.bf16 %v279_v17, %v278_v16  ;;  %v1540_v22 = vpack.c.bf16 %v297_v19, %v296_v18  ;;  %v280_v23 = vld [vmem:[%s1758_s20 + $0x30] sm:$0xff]  ;;  %v281_v24 = vld [vmem:[%s1758_s20 + $0x38] sm:$0xff]  ;;  %v298_v25 = vld [vmem:[%s1758_s20 + $0xc0] sm:$0xff] }
  0x16   : > { %1410 = vmatprep.mubr.msk.f32.mxu0 %vm306_vm0, %v258_v21  ;;  %v299_v26 = vld [vmem:[%s1758_s20 + $0xc8] sm:$0xff]  ;;  %v1543_v27 = vpack.c.bf16 %v281_v24, %v280_v23  ;;  %v282_v29 = vld [vmem:[%s1758_s20 + $0x40] sm:$0xff]  ;;  %v300_v31 = vld [vmem:[%s1758_s20 + $0xd0] sm:$0xff] }
  0x17   : > { %v1546_v28 = vpack.c.bf16 %v299_v26, %v298_v25  ;;  %v283_v30 = vld [vmem:[%s1758_s20 + $0x48] sm:$0xff]  ;;  %v301_v32 = vld [vmem:[%s1758_s20 + $0xd8] sm:$0xff]  ;;  %v284_v35 = vld [vmem:[%s1758_s20 + $0x50] sm:$0xff] }
  0x18   : > { %1577 = vmatpush3.bf16.msra.mxu1 %v1531_v14  ;;  %v1549_v33 = vpack.c.bf16 %v283_v30, %v282_v29  ;;  %v1552_v34 = vpack.c.bf16 %v301_v32, %v300_v31  ;;  %v285_v36 = vld [vmem:[%s1758_s20 + $0x58] sm:$0xff]  ;;  %v302_v37 = vld [vmem:[%s1758_s20 + $0xe0] sm:$0xff]  ;;  %v303_v38 = vld [vmem:[%s1758_s20 + $0xe8] sm:$0xff] }
  0x19   : > { %1579 = vmatprep.subr.bf16.mxu1 %v1534_v15  ;;  %v1555_v39 = vpack.c.bf16 %v285_v36, %v284_v35  ;;  %v1558_v40 = vpack.c.bf16 %v303_v38, %v302_v37  ;;  %v286_v41 = vld [vmem:[%s1758_s20 + $0x60] sm:$0xff]  ;;  %v287_v42 = vld [vmem:[%s1758_s20 + $0x68] sm:$0xff]  ;;  %v304_v43 = vld [vmem:[%s1758_s20 + $0xf0] sm:$0xff] }
  0x1a   : > { %v305_v44 = vld [vmem:[%s1758_s20 + $0xf8] sm:$0xff]  ;;  %v1561_v45 = vpack.c.bf16 %v287_v42, %v286_v41  ;;  %v288_v47 = vld [vmem:[%s1758_s20 + $0x70] sm:$0xff]  ;;  %v259_v50 = vld [vmem:[%s1790_s24 + $0x8] sm:$0xff] }
  0x1b   : > { %v1564_v46 = vpack.c.bf16 %v305_v44, %v304_v43  ;;  %v289_v48 = vld [vmem:[%s1758_s20 + $0x78] sm:$0xff]  ;;  %v260_v51 = vld [vmem:[%s1790_s24 + $0x10] sm:$0xff]  ;;  %v262_v53 = vld [vmem:[%s1790_s24 + $0x20] sm:$0xff] }
  0x1c   : > { %1533 = vmatpush3.bf16.xpose.msk.msra.mxu0 %vm1762_vm1, %v1531_v14  ;;  %1581 = vmatpush3.bf16.msra.mxu1 %v1537_v20  ;;  %v1567_v49 = vpack.c.bf16 %v289_v48, %v288_v47  ;;  %v261_v52 = vld [vmem:[%s1790_s24 + $0x18] sm:$0xff]  ;;  %v263_v54 = vld [vmem:[%s1790_s24 + $0x28] sm:$0xff]  ;;  %v264_v55 = vld [vmem:[%s1790_s24 + $0x30] sm:$0xff] }
  0x1d   : > { %1536 = vmatprep.subr.msk.bf16.mxu0 %vm1762_vm1, %v1534_v15  ;;  %1583 = vmatprep.subr.bf16.mxu1 %v1540_v22  ;;  %v265_v56 = vld [vmem:[%s1790_s24 + $0x38] sm:$0xff]  ;;  %v266_v57 = vld [vmem:[%s1790_s24 + $0x40] sm:$0xff]  ;;  %v267_v58 = vld [vmem:[%s1790_s24 + $0x48] sm:$0xff] }
  0x1e   : > { %v268_v59 = vld [vmem:[%s1790_s24 + $0x50] sm:$0xff]  ;;  %v269_v60 = vld [vmem:[%s1790_s24 + $0x58] sm:$0xff]  ;;  %v270_v61 = vld [vmem:[%s1790_s24 + $0x60] sm:$0xff] }
  0x1f   : > { %v271_v62 = vld [vmem:[%s1790_s24 + $0x68] sm:$0xff]  ;;  %v272_v63 = vld [vmem:[%s1790_s24 + $0x70] sm:$0xff]  ;;  %v273_v0 = vld [vmem:[%s1790_s24 + $0x78] sm:$0xff] }
  0x20   : > { %1585 = vmatpush3.bf16.msra.mxu1 %v1543_v27 }
  0x21   : > { %1587 = vmatprep.subr.bf16.mxu1 %v1546_v28 }
  0x24   : > { %1539 = vmatpush3.bf16.xpose.msk.msra.mxu0 %vm1762_vm1, %v1537_v20  ;;  %1589 = vmatpush3.bf16.msra.mxu1 %v1549_v33 }
  0x25   : > { %1542 = vmatprep.subr.msk.bf16.mxu0 %vm1762_vm1, %v1540_v22  ;;  %1591 = vmatprep.subr.bf16.mxu1 %v1552_v34 }
  0x28   : > { %1593 = vmatpush3.bf16.msra.mxu1 %v1555_v39 }
  0x29   : > { %1595 = vmatprep.subr.bf16.mxu1 %v1558_v40 }
  0x2c   : > { %1545 = vmatpush3.bf16.xpose.msk.msra.mxu0 %vm1762_vm1, %v1543_v27  ;;  %1597 = vmatpush3.bf16.msra.mxu1 %v1561_v45 }
  0x2d   : > { %1548 = vmatprep.subr.msk.bf16.mxu0 %vm1762_vm1, %v1546_v28  ;;  %1599 = vmatprep.subr.bf16.mxu1 %v1564_v46 }
  0x30   : > { %1601 = vmatpush3.bf16.msra.mxu1 %v1567_v49 }
  0x34   : > { %1551 = vmatpush3.bf16.xpose.msk.msra.mxu0 %vm1762_vm1, %v1549_v33 }
  0x35   : > { %1554 = vmatprep.subr.msk.bf16.mxu0 %vm1762_vm1, %v1552_v34 }
  0x3c   : > { %1557 = vmatpush3.bf16.xpose.msk.msra.mxu0 %vm1762_vm1, %v1555_v39 }
  0x3d   : > { %1560 = vmatprep.subr.msk.bf16.mxu0 %vm1762_vm1, %v1558_v40 }
  0x44   : > { %1563 = vmatpush3.bf16.xpose.msk.msra.mxu0 %vm1762_vm1, %v1561_v45 }
  0x45   : > { %1566 = vmatprep.subr.msk.bf16.mxu0 %vm1762_vm1, %v1564_v46 }
  0x4c   : > { %1569 = vmatpush3.bf16.xpose.msk.msra.mxu0 %vm1762_vm1, %v1567_v49 }
  0x53   : > { %1411 = vmatmul.mubr.msk.f32.vlgmr.msra.gmra.mrb[0].mxu0 %vm306_vm0, %v258_v21 }
  0x54   : > { %1412 = vmatprep.mubr.msk.f32.mxu0 %vm306_vm0, %v259_v50 }
  0x57   : > { %1413 = vmatmul.mubr.msk.f32.gmra.mrb[2].mxu0 %vm306_vm0, %v259_v50 }
  0x58   : > { %1414 = vmatprep.mubr.msk.f32.mxu0 %vm306_vm0, %v260_v51 }
  0x5b   : > { %1415 = vmatmul.mubr.msk.f32.gmra.mrb[4].mxu0 %vm306_vm0, %v260_v51 }
  0x5c   : > { %1416 = vmatprep.mubr.msk.f32.mxu0 %vm306_vm0, %v261_v52 }
  0x5f   : > { %1417 = vmatmul.mubr.msk.f32.gmra.mrb[6].mxu0 %vm306_vm0, %v261_v52 }
  0x60   : > { %1418 = vmatprep.mubr.msk.f32.mxu0 %vm306_vm0, %v262_v53 }
  0x63   : > { %1419 = vmatmul.mubr.msk.f32.gmra.mrb[8].mxu0 %vm306_vm0, %v262_v53 }
  0x64   : > { %1420 = vmatprep.mubr.msk.f32.mxu0 %vm306_vm0, %v263_v54 }
  0x67   : > { %1421 = vmatmul.mubr.msk.f32.gmra.mrb[10].mxu0 %vm306_vm0, %v263_v54 }
  0x68   : > { %1422 = vmatprep.mubr.msk.f32.mxu0 %vm306_vm0, %v264_v55 }
  0x6b   : > { %1423 = vmatmul.mubr.msk.f32.gmra.mrb[12].mxu0 %vm306_vm0, %v264_v55 }
  0x6c   : > { %1424 = vmatprep.mubr.msk.f32.mxu0 %vm306_vm0, %v265_v56 }
  0x6f   : > { %1425 = vmatmul.mubr.msk.f32.gmra.mrb[14].mxu0 %vm306_vm0, %v265_v56 }
  0x70   : > { %1426 = vmatprep.mubr.msk.f32.mxu0 %vm306_vm0, %v266_v57 }
  0x73   : > { %1427 = vmatmul.mubr.msk.f32.gmra.mrb[16].mxu0 %vm306_vm0, %v266_v57 }
  0x74   : > { %1428 = vmatprep.mubr.msk.f32.mxu0 %vm306_vm0, %v267_v58 }
  0x77   : > { %1429 = vmatmul.mubr.msk.f32.gmra.mrb[18].mxu0 %vm306_vm0, %v267_v58 }
  0x78   : > { %1430 = vmatprep.mubr.msk.f32.mxu0 %vm306_vm0, %v268_v59 }
  0x7b   : > { %1431 = vmatmul.mubr.msk.f32.gmra.mrb[20].mxu0 %vm306_vm0, %v268_v59 }
  0x7c   : > { %1432 = vmatprep.mubr.msk.f32.mxu0 %vm306_vm0, %v269_v60 }
  0x7f   : > { %1433 = vmatmul.mubr.msk.f32.gmra.mrb[22].mxu0 %vm306_vm0, %v269_v60 }
  0x80   : > { %1434 = vmatprep.mubr.msk.f32.mxu0 %vm306_vm0, %v270_v61 }
  0x83   : > { %1435 = vmatmul.mubr.msk.f32.gmra.mrb[24].mxu0 %vm306_vm0, %v270_v61 }
  0x84   : > { %1436 = vmatprep.mubr.msk.f32.mxu0 %vm306_vm0, %v271_v62 }
  0x87   : > { %1437 = vmatmul.mubr.msk.f32.gmra.mrb[26].mxu0 %vm306_vm0, %v271_v62 }
  0x88   : > { %1438 = vmatprep.mubr.msk.f32.mxu0 %vm306_vm0, %v272_v63 }
  0x8b   : > { %1439 = vmatmul.mubr.msk.f32.gmra.mrb[28].mxu0 %vm306_vm0, %v272_v63 }
  0x8c   : > { %1440 = vmatprep.mubr.msk.f32.mxu0 %vm306_vm0, %v273_v0 }
  0x8f   : > { %1441 = vmatmul.mubr.msk.f32.gmra.mrb[30].mxu0 %vm306_vm0, %v273_v0 }
 0x126   : > { %v1886_v1 = vpop.f32.mrb[0].mxu0 }
 0x127   : > { %v1888_v2 = vpop.f32.mrb[1].mxu0 }
 0x128   : > { %v612_v3 = vmax.f32 %v1886_v1, %v1888_v2 }
 0x12a   : > { %613 = vmax.xlane.f32.xlu0 %v612_v3  ;;  %v1892_v4 = vpop.f32.mrb[2].mxu0 }
 0x12b   : > { %v1894_v5 = vpop.f32.mrb[3].mxu0 }
 0x12c   : > { %v615_v6 = vmax.f32 %v1892_v4, %v1894_v5 }
 0x12e   : > { %616 = vmax.xlane.f32.xlu0 %v615_v6  ;;  %v1898_v7 = vpop.f32.mrb[4].mxu0 }
 0x12f   : > { %v1900_v8 = vpop.f32.mrb[5].mxu0 }
 0x130   : > { %v618_v9 = vmax.f32 %v1898_v7, %v1900_v8 }
 0x132   : > { %619 = vmax.xlane.f32.xlu1 %v618_v9  ;;  %v1904_v10 = vpop.f32.mrb[6].mxu0 }
 0x133   : > { %v1906_v11 = vpop.f32.mrb[7].mxu0 }
 0x134   : > { %v621_v12 = vmax.f32 %v1904_v10, %v1906_v11 }
 0x136   : > { %622 = vmax.xlane.f32.xlu1 %v621_v12  ;;  %v1910_v13 = vpop.f32.mrb[8].mxu0 }
 0x137   : > { %v1912_v14 = vpop.f32.mrb[9].mxu0 }
 0x138   : > { %v624_v15 = vmax.f32 %v1910_v13, %v1912_v14 }
 0x13a   : > { %625 = vmax.xlane.f32.xlu0 %v624_v15  ;;  %v1916_v16 = vpop.f32.mrb[10].mxu0 }
 0x13b   : > { %v1918_v17 = vpop.f32.mrb[11].mxu0 }
 0x13c   : > { %v627_v18 = vmax.f32 %v1916_v16, %v1918_v17 }
 0x13e   : > { %628 = vmax.xlane.f32.xlu1 %v627_v18  ;;  %v1922_v19 = vpop.f32.mrb[12].mxu0 }
 0x13f   : > { %v1924_v20 = vpop.f32.mrb[13].mxu0 }
 0x140   : > { %v630_v21 = vmax.f32 %v1922_v19, %v1924_v20 }
 0x142   : > { %631 = vmax.xlane.f32.xlu0 %v630_v21  ;;  %v1928_v22 = vpop.f32.mrb[14].mxu0 }
 0x143   : > { %v1930_v23 = vpop.f32.mrb[15].mxu0 }
 0x144   : > { %v633_v24 = vmax.f32 %v1928_v22, %v1930_v23 }
 0x146   : > { %634 = vmax.xlane.f32.xlu1 %v633_v24  ;;  %v1934_v25 = vpop.f32.mrb[16].mxu0 }
 0x147   : > { %v1936_v26 = vpop.f32.mrb[17].mxu0 }
 0x148   : > { %v636_v27 = vmax.f32 %v1934_v25, %v1936_v26 }
 0x14a   : > { %637 = vmax.xlane.f32.xlu0 %v636_v27  ;;  %v1940_v28 = vpop.f32.mrb[18].mxu0 }
 0x14b   : > { %v1942_v29 = vpop.f32.mrb[19].mxu0 }
 0x14c   : > { %v639_v30 = vmax.f32 %v1940_v28, %v1942_v29 }
 0x14e   : > { %640 = vmax.xlane.f32.xlu1 %v639_v30  ;;  %v1946_v31 = vpop.f32.mrb[20].mxu0 }
 0x14f   : > { %v1948_v32 = vpop.f32.mrb[21].mxu0 }
 0x150   : > { %v642_v33 = vmax.f32 %v1946_v31, %v1948_v32 }
 0x152   : > { %643 = vmax.xlane.f32.xlu0 %v642_v33  ;;  %v1952_v34 = vpop.f32.mrb[22].mxu0 }
 0x153   : > { %v1954_v35 = vpop.f32.mrb[23].mxu0 }
 0x154   : > { %v645_v36 = vmax.f32 %v1952_v34, %v1954_v35 }
 0x156   : > { %646 = vmax.xlane.f32.xlu1 %v645_v36  ;;  %v1958_v37 = vpop.f32.mrb[24].mxu0 }
 0x157   : > { %v1960_v38 = vpop.f32.mrb[25].mxu0 }
 0x158   : > { %v648_v39 = vmax.f32 %v1958_v37, %v1960_v38 }
 0x15a   : > { %649 = vmax.xlane.f32.xlu0 %v648_v39  ;;  %v1964_v40 = vpop.f32.mrb[26].mxu0 }
 0x15b   : > { %v1966_v41 = vpop.f32.mrb[27].mxu0 }
 0x15c   : > { %v651_v42 = vmax.f32 %v1964_v40, %v1966_v41 }
 0x15e   : > { %652 = vmax.xlane.f32.xlu1 %v651_v42  ;;  %v1970_v43 = vpop.f32.mrb[28].mxu0 }
 0x15f   : > { %v1972_v44 = vpop.f32.mrb[29].mxu0 }
 0x160   : > { %v654_v45 = vmax.f32 %v1970_v43, %v1972_v44 }
 0x162   : > { %655 = vmax.xlane.f32.xlu0 %v654_v45  ;;  %v1976_v46 = vpop.f32.mrb[30].mxu0 }
 0x163   : > { %v1978_v47 = vpop.f32.mrb[31].mxu0 }
 0x164   : > { %v657_v48 = vmax.f32 %v1976_v46, %v1978_v47 }
 0x166   : > { %658 = vmax.xlane.f32.xlu1 %v657_v48 }
 0x1b7   : > { %v614_v49 = vpop.xlane.xlu0 %613 }
 0x1b8   : > { %v660_v50 = vsub.f32 %v1886_v1, %v614_v49  ;;  %v661_v51 = vsub.f32 %v1888_v2, %v614_v49 }
 0x1ba   : > { %v692_v52 = vmul.f32 1.442695, %v660_v50  ;;  %v694_v53 = vmul.f32 1.442695, %v661_v51 }
 0x1bb   : > { %v617_v54 = vpop.xlane.xlu0 %616 }
 0x1bc   : > { %1616 = vpow2.f32 %v692_v52  ;;  %v662_v55 = vsub.f32 %v1892_v4, %v617_v54  ;;  %v663_v56 = vsub.f32 %v1894_v5, %v617_v54 }
 0x1bd   : > { %1618 = vpow2.f32 %v694_v53 }
 0x1be   : > { %v696_v57 = vmul.f32 1.442695, %v662_v55  ;;  %v698_v58 = vmul.f32 1.442695, %v663_v56 }
 0x1bf   : > { %v620_v59 = vpop.xlane.xlu1 %619 }
 0x1c0   : > { %1620 = vpow2.f32 %v696_v57  ;;  %v664_v60 = vsub.f32 %v1898_v7, %v620_v59  ;;  %v665_v61 = vsub.f32 %v1900_v8, %v620_v59 }
 0x1c1   : > { %1622 = vpow2.f32 %v698_v58 }
 0x1c2   : > { %v700_v62 = vmul.f32 1.442695, %v664_v60  ;;  %v702_v63 = vmul.f32 1.442695, %v665_v61 }
 0x1c3   : > { %v623_v0 = vpop.xlane.xlu1 %622 }
 0x1c4   : > { %1624 = vpow2.f32 %v700_v62  ;;  %v666_v1 = vsub.f32 %v1904_v10, %v623_v0  ;;  %v667_v2 = vsub.f32 %v1906_v11, %v623_v0 }
 0x1c5   : > { %1626 = vpow2.f32 %v702_v63 }
 0x1c6   : > { %v1990_v3 = vpop.eup %1616  ;;  %v704_v4 = vmul.f32 1.442695, %v666_v1  ;;  %v706_v5 = vmul.f32 1.442695, %v667_v2 }
 0x1c7   : > { %v1992_v6 = vpop.eup %1618  ;;  %v626_v9 = vpop.xlane.xlu0 %625 }
 0x1c8   : > { %1628 = vpow2.f32 %v704_v4  ;;  %v668_v7 = vsub.f32 %v1910_v13, %v626_v9  ;;  %v669_v8 = vsub.f32 %v1912_v14, %v626_v9  ;;  %v756_v12 = vadd.f32 %v1992_v6, %v1990_v3 }
 0x1c9   : > { %1630 = vpow2.f32 %v706_v5 }
 0x1ca   : > { %v1998_v10 = vpop.eup %1620  ;;  %v708_v11 = vmul.f32 1.442695, %v668_v7  ;;  %v710_v15 = vmul.f32 1.442695, %v669_v8  ;;  %757 = vadd.xlane.f32.xlu0 %v756_v12 }
 0x1cb   : > { %v2000_v18 = vpop.eup %1622  ;;  %v629_v21 = vpop.xlane.xlu1 %628 }
 0x1cc   : > { %1632 = vpow2.f32 %v708_v11  ;;  %v670_v24 = vsub.f32 %v1916_v16, %v629_v21  ;;  %v671_v27 = vsub.f32 %v1918_v17, %v629_v21  ;;  %v759_v13 = vadd.f32 %v2000_v18, %v1998_v10 }
 0x1cd   : > { %1634 = vpow2.f32 %v710_v15 }
 0x1ce   : > { %v2006_v14 = vpop.eup %1624  ;;  %v712_v30 = vmul.f32 1.442695, %v670_v24  ;;  %v714_v33 = vmul.f32 1.442695, %v671_v27  ;;  %760 = vadd.xlane.f32.xlu1 %v759_v13 }
 0x1cf   : > { %v2008_v36 = vpop.eup %1626  ;;  %v632_v39 = vpop.xlane.xlu0 %631 }
 0x1d0   : > { %1636 = vpow2.f32 %v712_v30  ;;  %v672_v42 = vsub.f32 %v1922_v19, %v632_v39  ;;  %v673_v45 = vsub.f32 %v1924_v20, %v632_v39  ;;  %v762_v16 = vadd.f32 %v2008_v36, %v2006_v14 }
 0x1d1   : > { %1638 = vpow2.f32 %v714_v33 }
 0x1d2   : > { %v2014_v17 = vpop.eup %1628  ;;  %v716_v48 = vmul.f32 1.442695, %v672_v42  ;;  %v718_v49 = vmul.f32 1.442695, %v673_v45  ;;  %763 = vadd.xlane.f32.xlu0 %v762_v16 }
 0x1d3   : > { %v2016_v50 = vpop.eup %1630  ;;  %v635_v51 = vpop.xlane.xlu1 %634 }
 0x1d4   : > { %1640 = vpow2.f32 %v716_v48  ;;  %v674_v52 = vsub.f32 %v1928_v22, %v635_v51  ;;  %v675_v53 = vsub.f32 %v1930_v23, %v635_v51  ;;  %v765_v19 = vadd.f32 %v2016_v50, %v2014_v17 }
 0x1d5   : > { %1642 = vpow2.f32 %v718_v49 }
 0x1d6   : > { %v2022_v20 = vpop.eup %1632  ;;  %v720_v54 = vmul.f32 1.442695, %v674_v52  ;;  %v722_v55 = vmul.f32 1.442695, %v675_v53  ;;  %766 = vadd.xlane.f32.xlu1 %v765_v19 }
 0x1d7   : > { %v2024_v56 = vpop.eup %1634  ;;  %v638_v57 = vpop.xlane.xlu0 %637 }
 0x1d8   : > { %1644 = vpow2.f32 %v720_v54  ;;  %v676_v58 = vsub.f32 %v1934_v25, %v638_v57  ;;  %v677_v59 = vsub.f32 %v1936_v26, %v638_v57  ;;  %v768_v22 = vadd.f32 %v2024_v56, %v2022_v20 }
 0x1d9   : > { %1646 = vpow2.f32 %v722_v55 }
 0x1da   : > { %v2030_v23 = vpop.eup %1636  ;;  %v724_v60 = vmul.f32 1.442695, %v676_v58  ;;  %v726_v61 = vmul.f32 1.442695, %v677_v59  ;;  %769 = vadd.xlane.f32.xlu0 %v768_v22 }
 0x1db   : > { %v2032_v62 = vpop.eup %1638  ;;  %v641_v63 = vpop.xlane.xlu1 %640 }
 0x1dc   : > { %1648 = vpow2.f32 %v724_v60  ;;  %v678_v0 = vsub.f32 %v1940_v28, %v641_v63  ;;  %v679_v1 = vsub.f32 %v1942_v29, %v641_v63  ;;  %v771_v25 = vadd.f32 %v2032_v62, %v2030_v23 }
 0x1dd   : > { %1650 = vpow2.f32 %v726_v61 }
 0x1de   : > { %v2038_v26 = vpop.eup %1640  ;;  %v728_v2 = vmul.f32 1.442695, %v678_v0  ;;  %v730_v4 = vmul.f32 1.442695, %v679_v1  ;;  %772 = vadd.xlane.f32.xlu1 %v771_v25 }
 0x1df   : > { %v2040_v5 = vpop.eup %1642  ;;  %v644_v9 = vpop.xlane.xlu0 %643 }
 0x1e0   : > { %1652 = vpow2.f32 %v728_v2  ;;  %v680_v7 = vsub.f32 %v1946_v31, %v644_v9  ;;  %v681_v8 = vsub.f32 %v1948_v32, %v644_v9  ;;  %v774_v28 = vadd.f32 %v2040_v5, %v2038_v26 }
 0x1e1   : > { %1654 = vpow2.f32 %v730_v4 }
 0x1e2   : > { %v2046_v29 = vpop.eup %1644  ;;  %v732_v12 = vmul.f32 1.442695, %v680_v7  ;;  %v734_v11 = vmul.f32 1.442695, %v681_v8  ;;  %775 = vadd.xlane.f32.xlu0 %v774_v28 }
 0x1e3   : > { %v2048_v15 = vpop.eup %1646  ;;  %v647_v21 = vpop.xlane.xlu1 %646 }
 0x1e4   : > { %1656 = vpow2.f32 %v732_v12  ;;  %v682_v24 = vsub.f32 %v1952_v34, %v647_v21  ;;  %v683_v27 = vsub.f32 %v1954_v35, %v647_v21  ;;  %v777_v31 = vadd.f32 %v2048_v15, %v2046_v29 }
 0x1e5   : > { %1658 = vpow2.f32 %v734_v11 }
 0x1e6   : > { %v2054_v32 = vpop.eup %1648  ;;  %v736_v13 = vmul.f32 1.442695, %v682_v24  ;;  %v738_v30 = vmul.f32 1.442695, %v683_v27  ;;  %778 = vadd.xlane.f32.xlu1 %v777_v31 }
 0x1e7   : > { %v2056_v33 = vpop.eup %1650  ;;  %v650_v39 = vpop.xlane.xlu0 %649 }
 0x1e8   : > { %1660 = vpow2.f32 %v736_v13  ;;  %v684_v42 = vsub.f32 %v1958_v37, %v650_v39  ;;  %v685_v45 = vsub.f32 %v1960_v38, %v650_v39  ;;  %v780_v34 = vadd.f32 %v2056_v33, %v2054_v32 }
 0x1e9   : > { %1662 = vpow2.f32 %v738_v30 }
 0x1ea   : > { %v2062_v35 = vpop.eup %1652  ;;  %v740_v16 = vmul.f32 1.442695, %v684_v42  ;;  %v742_v48 = vmul.f32 1.442695, %v685_v45  ;;  %781 = vadd.xlane.f32.xlu0 %v780_v34 }
 0x1eb   : > { %v2064_v49 = vpop.eup %1654  ;;  %v653_v51 = vpop.xlane.xlu1 %652 }
 0x1ec   : > { %1664 = vpow2.f32 %v740_v16  ;;  %v686_v52 = vsub.f32 %v1964_v40, %v653_v51  ;;  %v687_v53 = vsub.f32 %v1966_v41, %v653_v51  ;;  %v783_v37 = vadd.f32 %v2064_v49, %v2062_v35 }
 0x1ed   : > { %1666 = vpow2.f32 %v742_v48 }
 0x1ee   : > { %v2070_v38 = vpop.eup %1656  ;;  %v744_v19 = vmul.f32 1.442695, %v686_v52  ;;  %v746_v54 = vmul.f32 1.442695, %v687_v53  ;;  %784 = vadd.xlane.f32.xlu1 %v783_v37 }
 0x1ef   : > { %v2072_v55 = vpop.eup %1658  ;;  %v656_v57 = vpop.xlane.xlu0 %655 }
 0x1f0   : > { %1668 = vpow2.f32 %v744_v19  ;;  %v688_v58 = vsub.f32 %v1970_v43, %v656_v57  ;;  %v689_v59 = vsub.f32 %v1972_v44, %v656_v57  ;;  %v786_v40 = vadd.f32 %v2072_v55, %v2070_v38 }
 0x1f1   : > { %1670 = vpow2.f32 %v746_v54 }
 0x1f2   : > { %v2078_v41 = vpop.eup %1660  ;;  %v748_v22 = vmul.f32 1.442695, %v688_v58  ;;  %v750_v60 = vmul.f32 1.442695, %v689_v59  ;;  %787 = vadd.xlane.f32.xlu0 %v786_v40 }
 0x1f3   : > { %v2080_v61 = vpop.eup %1662  ;;  %v659_v63 = vpop.xlane.xlu1 %658 }
 0x1f4   : > { %1672 = vpow2.f32 %v748_v22  ;;  %v690_v0 = vsub.f32 %v1976_v46, %v659_v63  ;;  %v691_v1 = vsub.f32 %v1978_v47, %v659_v63  ;;  %v789_v43 = vadd.f32 %v2080_v61, %v2078_v41 }
 0x1f5   : > { %1674 = vpow2.f32 %v750_v60 }
 0x1f6   : > { %v2086_v44 = vpop.eup %1664  ;;  %v752_v25 = vmul.f32 1.442695, %v690_v0  ;;  %v754_v2 = vmul.f32 1.442695, %v691_v1  ;;  %790 = vadd.xlane.f32.xlu1 %v789_v43 }
 0x1f7   : > { %v2088_v4 = vpop.eup %1666 }
 0x1f8   : > { %1676 = vpow2.f32 %v752_v25  ;;  %v792_v9 = vadd.f32 %v2088_v4, %v2086_v44 }
 0x1f9   : > { %1678 = vpow2.f32 %v754_v2 }
 0x1fa   : > { %v2092_v7 = vpop.eup %1668  ;;  %793 = vadd.xlane.f32.xlu0 %v792_v9 }
 0x1fb   : > { %v2094_v46 = vpop.eup %1670 }
 0x1fc   : > { %v795_v47 = vadd.f32 %v2094_v46, %v2092_v7 }
 0x1fe   : > { %v2098_v8 = vpop.eup %1672  ;;  %796 = vadd.xlane.f32.xlu1 %v795_v47 }
 0x1ff   : > { %v2100_v28 = vpop.eup %1674 }
 0x200   : > { %v798_v12 = vadd.f32 %v2100_v28, %v2098_v8 }
 0x202   : > { %v2104_v11 = vpop.eup %1676  ;;  %799 = vadd.xlane.f32.xlu0 %v798_v12 }
 0x203   : > { %v2106_v21 = vpop.eup %1678 }
 0x204   : > { %v801_v24 = vadd.f32 %v2106_v21, %v2104_v11 }
 0x206   : > { %802 = vadd.xlane.f32.xlu1 %v801_v24 }
 0x257   : > { %v758_v27 = vpop.xlane.xlu0 %757 }
 0x258   : > { %1680 = vrcp.f32 %v758_v27 }
 0x25b   : > { %v761_v31 = vpop.xlane.xlu1 %760 }
 0x25c   : > { %1682 = vrcp.f32 %v761_v31 }
 0x25f   : > { %v764_v13 = vpop.xlane.xlu0 %763 }
 0x260   : > { %1684 = vrcp.f32 %v764_v13 }
 0x262   : > { %v1681_v30 = vpop.eup %1680 }
 0x263   : > { %v767_v39 = vpop.xlane.xlu1 %766  ;;  %v821_v42 = vmul.f32 %v1681_v30, %v1992_v6  ;;  %v820_v45 = vmul.f32 %v1681_v30, %v1990_v3 }
 0x264   : > { %1686 = vrcp.f32 %v767_v39 }
 0x265   : > { %916 = vmatprep.mubr.f32.mxu1 %v821_v42 }
 0x266   : > { %v1683_v34 = vpop.eup %1682  ;;  %917 = vmatmul.mubr.f32.vlgmr.msra.gmra.mrb[0].mxu1 %v820_v45 }
 0x267   : > { %v770_v16 = vpop.xlane.xlu0 %769  ;;  %v823_v48 = vmul.f32 %v1683_v34, %v2000_v18  ;;  %v822_v51 = vmul.f32 %v1683_v34, %v1998_v10 }
 0x268   : > { %1688 = vrcp.f32 %v770_v16 }
 0x269   : > { %921 = vmatprep.mubr.f32.mxu1 %v823_v48 }
 0x26a   : > { %v1685_v52 = vpop.eup %1684  ;;  %922 = vmatmul.mubr.f32.gmra.mrb[2].mxu1 %v822_v51 }
 0x26b   : > { %v773_v53 = vpop.xlane.xlu1 %772  ;;  %v825_v37 = vmul.f32 %v1685_v52, %v2008_v36  ;;  %v824_v6 = vmul.f32 %v1685_v52, %v2006_v14 }
 0x26c   : > { %1690 = vrcp.f32 %v773_v53 }
 0x26d   : > { %926 = vmatprep.mubr.f32.mxu1 %v825_v37 }
 0x26e   : > { %v1687_v3 = vpop.eup %1686  ;;  %927 = vmatmul.mubr.f32.gmra.mrb[4].mxu1 %v824_v6 }
 0x26f   : > { %v776_v19 = vpop.xlane.xlu0 %775  ;;  %v827_v54 = vmul.f32 %v1687_v3, %v2016_v50  ;;  %v826_v18 = vmul.f32 %v1687_v3, %v2014_v17 }
 0x270   : > { %1692 = vrcp.f32 %v776_v19 }
 0x271   : > { %931 = vmatprep.mubr.f32.mxu1 %v827_v54 }
 0x272   : > { %v1689_v10 = vpop.eup %1688  ;;  %932 = vmatmul.mubr.f32.gmra.mrb[6].mxu1 %v826_v18 }
 0x273   : > { %v779_v57 = vpop.xlane.xlu1 %778  ;;  %v829_v58 = vmul.f32 %v1689_v10, %v2024_v56  ;;  %v828_v36 = vmul.f32 %v1689_v10, %v2022_v20 }
 0x274   : > { %1694 = vrcp.f32 %v779_v57 }
 0x275   : > { %936 = vmatprep.mubr.f32.mxu1 %v829_v58 }
 0x276   : > { %v1691_v14 = vpop.eup %1690  ;;  %937 = vmatmul.mubr.f32.gmra.mrb[8].mxu1 %v828_v36  ;;  %v998_v36 = vld [vmem:[%s2146_s27 + $0x8] sm:$0xff] }
 0x277   : > { %v782_v59 = vpop.xlane.xlu0 %781  ;;  %v831_v40 = vmul.f32 %v1691_v14, %v2032_v62  ;;  %v830_v50 = vmul.f32 %v1691_v14, %v2030_v23 }
 0x278   : > { %1696 = vrcp.f32 %v782_v59 }
 0x279   : > { %941 = vmatprep.mubr.f32.mxu1 %v831_v40  ;;  %v997_v40 = vld [vmem:[%s2146_s27] sm:$0xff] }
 0x27a   : > { %v1693_v17 = vpop.eup %1692  ;;  %942 = vmatmul.mubr.f32.gmra.mrb[10].mxu1 %v830_v50  ;;  %v999_v50 = vld [vmem:[%s2146_s27 + $0x10] sm:$0xff] }
 0x27b   : > { %v785_v22 = vpop.xlane.xlu1 %784  ;;  %v833_v60 = vmul.f32 %v1693_v17, %v2040_v5  ;;  %v832_v56 = vmul.f32 %v1693_v17, %v2038_v26 }
 0x27c   : > { %1698 = vrcp.f32 %v785_v22 }
 0x27d   : > { %946 = vmatprep.mubr.f32.mxu1 %v833_v60  ;;  %v1000_v60 = vld [vmem:[%s2146_s27 + $0x18] sm:$0xff] }
 0x27e   : > { %v1695_v20 = vpop.eup %1694  ;;  %947 = vmatmul.mubr.f32.gmra.mrb[12].mxu1 %v832_v56 }
 0x27f   : > { %v788_v63 = vpop.xlane.xlu0 %787  ;;  %v835_v0 = vmul.f32 %v1695_v20, %v2048_v15  ;;  %v834_v62 = vmul.f32 %v1695_v20, %v2046_v29 }
 0x280   : > { %1700 = vrcp.f32 %v788_v63 }
 0x281   : > { %951 = vmatprep.mubr.f32.mxu1 %v835_v0 }
 0x282   : > { %v1697_v23 = vpop.eup %1696  ;;  %952 = vmatmul.mubr.f32.gmra.mrb[14].mxu1 %v834_v62  ;;  %v1001_v62 = vld [vmem:[%s2146_s27 + $0x20] sm:$0xff] }
 0x283   : > { %v791_v1 = vpop.xlane.xlu1 %790  ;;  %v837_v43 = vmul.f32 %v1697_v23, %v2056_v33  ;;  %v836_v5 = vmul.f32 %v1697_v23, %v2054_v32 }
 0x284   : > { %1702 = vrcp.f32 %v791_v1 }
 0x285   : > { %956 = vmatprep.mubr.f32.mxu1 %v837_v43 }
 0x286   : > { %v1699_v26 = vpop.eup %1698  ;;  %957 = vmatmul.mubr.f32.gmra.mrb[16].mxu1 %v836_v5  ;;  %v1002_v5 = vld [vmem:[%s2146_s27 + $0x28] sm:$0xff] }
 0x287   : > { %v794_v25 = vpop.xlane.xlu0 %793  ;;  %v839_v2 = vmul.f32 %v1699_v26, %v2064_v49  ;;  %v838_v15 = vmul.f32 %v1699_v26, %v2062_v35 }
 0x288   : > { %1704 = vrcp.f32 %v794_v25 }
 0x289   : > { %961 = vmatprep.mubr.f32.mxu1 %v839_v2 }
 0x28a   : > { %v1701_v29 = vpop.eup %1700  ;;  %962 = vmatmul.mubr.f32.gmra.mrb[18].mxu1 %v838_v15 }
 0x28b   : > { %v797_v9 = vpop.xlane.xlu1 %796  ;;  %v841_v47 = vmul.f32 %v1701_v29, %v2072_v55  ;;  %v840_v33 = vmul.f32 %v1701_v29, %v2070_v38 }
 0x28c   : > { %1706 = vrcp.f32 %v797_v9 }
 0x28d   : > { %966 = vmatprep.mubr.f32.mxu1 %v841_v47  ;;  %v1003_v47 = vld [vmem:[%s2146_s27 + $0x30] sm:$0xff] }
 0x28e   : > { %v1703_v32 = vpop.eup %1702  ;;  %967 = vmatmul.mubr.f32.gmra.mrb[20].mxu1 %v840_v33 }
 0x28f   : > { %v800_v12 = vpop.xlane.xlu0 %799  ;;  %v843_v24 = vmul.f32 %v1703_v32, %v2080_v61  ;;  %v842_v49 = vmul.f32 %v1703_v32, %v2078_v41 }
 0x290   : > { %1708 = vrcp.f32 %v800_v12 }
 0x291   : > { %971 = vmatprep.mubr.f32.mxu1 %v843_v24 }
 0x292   : > { %v1705_v35 = vpop.eup %1704  ;;  %972 = vmatmul.mubr.f32.gmra.mrb[22].mxu1 %v842_v49  ;;  %v1004_v49 = vld [vmem:[%s2146_s27 + $0x38] sm:$0xff] }
 0x293   : > { %v803_v27 = vpop.xlane.xlu1 %802  ;;  %v845_v31 = vmul.f32 %v1705_v35, %v2088_v4  ;;  %v844_v55 = vmul.f32 %v1705_v35, %v2086_v44 }
 0x294   : > { %1710 = vrcp.f32 %v803_v27 }
 0x295   : > { %976 = vmatprep.mubr.f32.mxu1 %v845_v31 }
 0x296   : > { %v1707_v38 = vpop.eup %1706  ;;  %977 = vmatmul.mubr.f32.gmra.mrb[24].mxu1 %v844_v55 }
 0x297   : > { %v847_v13 = vmul.f32 %v1707_v38, %v2094_v46  ;;  %v846_v30 = vmul.f32 %v1707_v38, %v2092_v7 }
 0x299   : > { %981 = vmatprep.mubr.f32.mxu1 %v847_v13  ;;  %v1005_v13 = vld [vmem:[%s2146_s27 + $0x40] sm:$0xff] }
 0x29a   : > { %v1709_v61 = vpop.eup %1708  ;;  %982 = vmatmul.mubr.f32.gmra.mrb[26].mxu1 %v846_v30 }
 0x29b   : > { %v849_v41 = vmul.f32 %v1709_v61, %v2100_v28  ;;  %v848_v39 = vmul.f32 %v1709_v61, %v2098_v8 }
 0x29d   : > { %986 = vmatprep.mubr.f32.mxu1 %v849_v41 }
 0x29e   : > { %v1711_v42 = vpop.eup %1710  ;;  %987 = vmatmul.mubr.f32.gmra.mrb[28].mxu1 %v848_v39 }
 0x29f   : > { %v851_v44 = vmul.f32 %v1711_v42, %v2106_v21  ;;  %v850_v4 = vmul.f32 %v1711_v42, %v2104_v11  ;;  %v1006_v42 = vld [vmem:[%s2146_s27 + $0x48] sm:$0xff] }
 0x2a1   : > { %991 = vmatprep.mubr.f32.mxu1 %v851_v44 }
 0x2a2   : > { %992 = vmatmul.mubr.f32.gmra.mrb[30].mxu1 %v850_v4 }
 0x339   : > { %v1474_v45 = vpop.f32.mrb[0].mxu1 }
 0x33a   : > { %v1475_v46 = vpop.f32.mrb[1].mxu1 }
 0x33b   : > { %v1476_v34 = vadd.f32 %v1475_v46, %v1474_v45 }
 0x33d   : > { %v1477_v7 = vpop.f32.mrb[2].mxu1  ;;  %v2154_v20 = vadd.f32 %v1476_v34, %v997_v40 }
 0x33e   : > { %v1478_v16 = vpop.f32.mrb[3].mxu1 }
 0x33f   : > { %v1479_v48 = vadd.f32 %v1478_v16, %v1477_v7  ;;  %v1029_v25 = vsel %vm306_vm0, %v2154_v20, 0.0  ;;  %v1007_v7 = vld [vmem:[%s2146_s27 + $0x50] sm:$0xff] }
 0x341   : > { %v1480_v51 = vpop.f32.mrb[4].mxu1  ;;  %v2151_v17 = vadd.f32 %v1479_v48, %v998_v36 }
 0x342   : > { %v1481_v28 = vpop.f32.mrb[5].mxu1 }
 0x343   : > { %v1482_v52 = vadd.f32 %v1481_v28, %v1480_v51  ;;  %v1030_v23 = vsel %vm306_vm0, %v2151_v17, 0.0 }
 0x344   : > { %v1031_v9 = vadd.f32 %v1030_v23, %v1029_v25 }
 0x345   : > { %v1483_v8 = vpop.f32.mrb[6].mxu1  ;;  %v2156_v63 = vadd.f32 %v1482_v52, %v999_v50  ;;  %v1008_v52 = vld [vmem:[%s2146_s27 + $0x58] sm:$0xff] }
 0x346   : > { %v1484_v53 = vpop.f32.mrb[7].mxu1 }
 0x347   : > { %v1485_v37 = vadd.f32 %v1484_v53, %v1483_v8  ;;  %v1032_v2 = vsel %vm306_vm0, %v2156_v63, 0.0 }
 0x348   : > { %v1033_v24 = vadd.f32 %v1032_v2, %v1031_v9  ;;  %v1012_v9 = vld [vmem:[%s2146_s27 + $0x78] sm:$0xff] }
 0x349   : > { %v1486_v6 = vpop.f32.mrb[8].mxu1  ;;  %v2161_v1 = vadd.f32 %v1485_v37, %v1000_v60 }
 0x34a   : > { %v1487_v3 = vpop.f32.mrb[9].mxu1 }
 0x34b   : > { %v1488_v21 = vadd.f32 %v1487_v3, %v1486_v6  ;;  %v1034_v33 = vsel %vm306_vm0, %v2161_v1, 0.0 }
 0x34c   : > { %v1035_v38 = vadd.f32 %v1034_v33, %v1033_v24 }
 0x34d   : > { %v1489_v19 = vpop.f32.mrb[10].mxu1  ;;  %v2168_v15 = vadd.f32 %v1488_v21, %v1001_v62  ;;  %v1009_v21 = vld [vmem:[%s2146_s27 + $0x60] sm:$0xff] }
 0x34e   : > { %v1490_v11 = vpop.f32.mrb[11].mxu1 }
 0x34f   : > { %v1491_v54 = vadd.f32 %v1490_v11, %v1489_v19  ;;  %v1036_v27 = vsel %vm306_vm0, %v2168_v15, 0.0 }
 0x350   : > { %v1037_v39 = vadd.f32 %v1036_v27, %v1035_v38 }
 0x351   : > { %v1492_v18 = vpop.f32.mrb[12].mxu1  ;;  %v2173_v32 = vadd.f32 %v1491_v54, %v1002_v5 }
 0x352   : > { %v1493_v10 = vpop.f32.mrb[13].mxu1 }
 0x353   : > { %v1494_v57 = vadd.f32 %v1493_v10, %v1492_v18  ;;  %v1038_v30 = vsel %vm306_vm0, %v2173_v32, 0.0 }
 0x354   : > { %v1039_v34 = vadd.f32 %v1038_v30, %v1037_v39 }
 0x355   : > { %v1495_v58 = vpop.f32.mrb[14].mxu1  ;;  %v2178_v31 = vadd.f32 %v1494_v57, %v1003_v47  ;;  %v1010_v57 = vld [vmem:[%s2146_s27 + $0x68] sm:$0xff] }
 0x356   : > { %v1496_v14 = vpop.f32.mrb[15].mxu1 }
 0x357   : > { %v1497_v59 = vadd.f32 %v1496_v14, %v1495_v58  ;;  %v1040_v4 = vsel %vm306_vm0, %v2178_v31, 0.0 }
 0x358   : > { %v1041_v28 = vadd.f32 %v1040_v4, %v1039_v34 }
 0x359   : > { %v1498_v22 = vpop.f32.mrb[16].mxu1  ;;  %v2183_v61 = vadd.f32 %v1497_v59, %v1004_v49 }
 0x35a   : > { %v1499_v56 = vpop.f32.mrb[17].mxu1 }
 0x35b   : > { %v1500_v0 = vadd.f32 %v1499_v56, %v1498_v22  ;;  %v1042_v16 = vsel %vm306_vm0, %v2183_v61, 0.0 }
 0x35c   : > { %v1043_v3 = vadd.f32 %v1042_v16, %v1041_v28 }
 0x35d   : > { %v1501_v43 = vpop.f32.mrb[18].mxu1  ;;  %v2188_v45 = vadd.f32 %v1500_v0, %v1005_v13  ;;  %v1011_v0 = vld [vmem:[%s2146_s27 + $0x70] sm:$0xff] }
 0x35e   : > { %v1502_v26 = vpop.f32.mrb[19].mxu1 }
 0x35f   : > { %v1503_v29 = vadd.f32 %v1502_v26, %v1501_v43  ;;  %v1044_v53 = vsel %vm306_vm0, %v2188_v45, 0.0 }
 0x360   : > { %v1045_v18 = vadd.f32 %v1044_v53, %v1043_v3 }
 0x361   : > { %v1504_v12 = vpop.f32.mrb[20].mxu1  ;;  %v2193_v48 = vadd.f32 %v1503_v29, %v1006_v42 }
 0x362   : > { %v1505_v35 = vpop.f32.mrb[21].mxu1 }
 0x363   : > { %v1506_v55 = vadd.f32 %v1505_v35, %v1504_v12  ;;  %v1046_v19 = vsel %vm306_vm0, %v2193_v48, 0.0 }
 0x364   : > { %v1047_v59 = vadd.f32 %v1046_v19, %v1045_v18 }
 0x365   : > { %v1507_v41 = vpop.f32.mrb[22].mxu1  ;;  %v2198_v37 = vadd.f32 %v1506_v55, %v1007_v7 }
 0x366   : > { %v1508_v44 = vpop.f32.mrb[23].mxu1 }
 0x367   : > { %v1509_v46 = vadd.f32 %v1508_v44, %v1507_v41  ;;  %v1048_v58 = vsel %vm306_vm0, %v2198_v37, 0.0 }
 0x368   : > { %v1049_v60 = vadd.f32 %v1048_v58, %v1047_v59 }
 0x369   : > { %v1510_v51 = vpop.f32.mrb[24].mxu1  ;;  %v2203_v11 = vadd.f32 %v1509_v46, %v1008_v52 }
 0x36a   : > { %v1511_v8 = vpop.f32.mrb[25].mxu1 }
 0x36b   : > { %v1512_v6 = vadd.f32 %v1511_v8, %v1510_v51  ;;  %v1050_v40 = vsel %vm306_vm0, %v2203_v11, 0.0 }
 0x36c   : > { %v1051_v43 = vadd.f32 %v1050_v40, %v1049_v60 }
 0x36d   : > { %v1513_v54 = vpop.f32.mrb[26].mxu1  ;;  %v2208_v36 = vadd.f32 %v1512_v6, %v1009_v21 }
 0x36e   : > { %v1514_v10 = vpop.f32.mrb[27].mxu1 }
 0x36f   : > { %v1515_v14 = vadd.f32 %v1514_v10, %v1513_v54  ;;  %v1052_v62 = vsel %vm306_vm0, %v2208_v36, 0.0 }
 0x370   : > { %v1053_v2 = vadd.f32 %v1052_v62, %v1051_v43 }
 0x371   : > { %v2212_v50 = vadd.f32 %v1515_v14, %v1010_v57  ;;  %v1516_v22 = vpop.f32.mrb[28].mxu1 }
 0x372   : > { %v1517_v56 = vpop.f32.mrb[29].mxu1 }
 0x373   : > { %v1518_v23 = vadd.f32 %v1517_v56, %v1516_v22  ;;  %v1054_v5 = vsel %vm306_vm0, %v2212_v50, 0.0 }
 0x374   : > { %v1055_v12 = vadd.f32 %v1054_v5, %v1053_v2 }
 0x375   : > { %v2219_v26 = vadd.f32 %v1518_v23, %v1011_v0  ;;  %v1519_v25 = vpop.f32.mrb[30].mxu1 }
 0x376   : > { %v1520_v29 = vpop.f32.mrb[31].mxu1 }
 0x377   : > { %v1521_v47 = vadd.f32 %v1520_v29, %v1519_v25  ;;  %v1056_v33 = vsel %vm306_vm0, %v2219_v26, 0.0 }
 0x378   : > { %v1057_v49 = vadd.f32 %v1056_v33, %v1055_v12 }
 0x379   : > { %v2224_v24 = vadd.f32 %v1521_v47, %v1012_v9 }
 0x37b   : > { %v1058_v35 = vsel %vm306_vm0, %v2224_v24, 0.0 }
 0x37c   : > { %v1059_v27 = vadd.f32 %v1058_v35, %v1057_v49 }
 0x37e   : > { %1060 = vadd.xlane.f32.xlu0 %v1059_v27 }
 0x40b   : > { %v1061_v55 = vpop.xlane.xlu0 %1060 }
 0x40c   : > { %v1062_v38 = vrot.slane %v1061_v55, 4 }
 0x40e   : > { %v1063_v13 = vadd.f32 %v1062_v38, %v1061_v55 }
 0x410   : > { %v1064_v30 = vrot.slane %v1063_v13, 2 }
 0x412   : > { %v1065_v41 = vadd.f32 %v1064_v30, %v1063_v13 }
 0x414   : > { %v1066_v39 = vrot.slane %v1065_v41, 1 }
 0x416   : > { %v1067_v42 = vadd.f32 %v1066_v39, %v1065_v41 }
 0x418   : > { %1602 = vpush %v1067_v42 }
 0x449   : > { %s1603_s28 = spop %1602 }
 0x44a   : > { %s1071_s29 = smul.f32 0.00048828125, %s1603_s28 }
 0x44c   : > { %v1072_v44 = vstv %s1071_s29 }
 0x44d   : > { %v2229_v4 = vsub.f32 %v2154_v20, %v1072_v44  ;;  %v2232_v46 = vsub.f32 %v2151_v17, %v1072_v44  ;;  %v2235_v34 = vsub.f32 %v2156_v63, %v1072_v44  ;;  %v2238_v7 = vsub.f32 %v2161_v1, %v1072_v44 }
 0x44e   : > { %v2245_v28 = vsub.f32 %v2168_v15, %v1072_v44  ;;  %v2250_v17 = vsub.f32 %v2173_v32, %v1072_v44  ;;  %v2257_v53 = vsub.f32 %v2178_v31, %v1072_v44  ;;  %v2263_v32 = vsub.f32 %v2183_v61, %v1072_v44 }
 0x44f   : > { %v1089_v16 = vmul.f32 %v2229_v4, %v2229_v4  ;;  %v1090_v51 = vmul.f32 %v2232_v46, %v2232_v46  ;;  %v1091_v20 = vmul.f32 %v2235_v34, %v2235_v34  ;;  %v1092_v63 = vmul.f32 %v2238_v7, %v2238_v7 }
 0x450   : > { %v1093_v15 = vmul.f32 %v2245_v28, %v2245_v28  ;;  %v1094_v21 = vmul.f32 %v2250_v17, %v2250_v17  ;;  %v2269_v18 = vsub.f32 %v2188_v45, %v1072_v44  ;;  %v1095_v31 = vmul.f32 %v2257_v53, %v2257_v53 }
 0x451   : > { %v1105_v1 = vsel %vm306_vm0, %v1089_v16, 0.0  ;;  %v1106_v52 = vsel %vm306_vm0, %v1090_v51, 0.0  ;;  %v1108_v6 = vsel %vm306_vm0, %v1091_v20, 0.0  ;;  %v1110_v19 = vsel %vm306_vm0, %v1092_v63, 0.0 }
 0x452   : > { %v1107_v8 = vadd.f32 %v1106_v52, %v1105_v1  ;;  %v1112_v10 = vsel %vm306_vm0, %v1093_v15, 0.0  ;;  %v2275_v58 = vsub.f32 %v2193_v48, %v1072_v44  ;;  %v1096_v61 = vmul.f32 %v2263_v32, %v2263_v32 }
 0x453   : > { %v1114_v14 = vsel %vm306_vm0, %v1094_v21, 0.0  ;;  %v2281_v40 = vsub.f32 %v2198_v37, %v1072_v44  ;;  %v1097_v45 = vmul.f32 %v2269_v18, %v2269_v18  ;;  %v1116_v22 = vsel %vm306_vm0, %v1095_v31, 0.0 }
 0x454   : > { %v1109_v3 = vadd.f32 %v1108_v6, %v1107_v8  ;;  %v2287_v56 = vsub.f32 %v2203_v11, %v1072_v44  ;;  %v1098_v48 = vmul.f32 %v2275_v58, %v2275_v58  ;;  %v1118_v0 = vsel %vm306_vm0, %v1096_v61, 0.0  ;;  %v1172_v61 = vld [vmem:[%s2320_s9 + $0x18] sm:$0xff] }
 0x455   : > { %v2293_v23 = vsub.f32 %v2208_v36, %v1072_v44  ;;  %v1099_v37 = vmul.f32 %v2281_v40, %v2281_v40  ;;  %v1120_v43 = vsel %vm306_vm0, %v1097_v45, 0.0  ;;  %v2299_v25 = vsub.f32 %v2212_v50, %v1072_v44 }
 0x456   : > { %v1111_v54 = vadd.f32 %v1110_v19, %v1109_v3  ;;  %v1100_v11 = vmul.f32 %v2287_v56, %v2287_v56  ;;  %v1122_v2 = vsel %vm306_vm0, %v1098_v48, 0.0  ;;  %v1087_v9 = vsub.f32 %v2219_v26, %v1072_v44  ;;  %v1169_v3 = vld [vmem:[%s2320_s9] sm:$0xff] }
 0x457   : > { %v1101_v36 = vmul.f32 %v2293_v23, %v2293_v23  ;;  %v1124_v47 = vsel %vm306_vm0, %v1099_v37, 0.0  ;;  %v1088_v12 = vsub.f32 %v2224_v24, %v1072_v44  ;;  %v1102_v50 = vmul.f32 %v2299_v25, %v2299_v25  ;;  %v1177_v48 = vld [vmem:[%s2320_s9 + $0x40] sm:$0xff] }
 0x458   : > { %v1113_v57 = vadd.f32 %v1112_v10, %v1111_v54  ;;  %v1126_v49 = vsel %vm306_vm0, %v1100_v11, 0.0  ;;  %v1103_v27 = vmul.f32 %v1087_v9, %v1087_v9  ;;  %v1170_v10 = vld [vmem:[%s2320_s9 + $0x8] sm:$0xff]  ;;  %v1184_v11 = vld [vmem:[%s2320_s9 + $0x78] sm:$0xff] }
 0x459   : > { %v1128_v55 = vsel %vm306_vm0, %v1101_v36, 0.0  ;;  %v1104_v13 = vmul.f32 %v1088_v12, %v1088_v12  ;;  %v1130_v26 = vsel %vm306_vm0, %v1102_v50, 0.0 }
 0x45a   : > { %v1115_v59 = vadd.f32 %v1114_v14, %v1113_v57  ;;  %v1132_v41 = vsel %vm306_vm0, %v1103_v27, 0.0  ;;  %v1171_v57 = vld [vmem:[%s2320_s9 + $0x10] sm:$0xff] }
 0x45b   : > { %v1134_v42 = vsel %vm306_vm0, %v1104_v13, 0.0 }
 0x45c   : > { %v1117_v60 = vadd.f32 %v1116_v22, %v1115_v59 }
 0x45e   : > { %v1119_v62 = vadd.f32 %v1118_v0, %v1117_v60 }
 0x460   : > { %v1121_v5 = vadd.f32 %v1120_v43, %v1119_v62  ;;  %v1180_v43 = vld [vmem:[%s2320_s9 + $0x58] sm:$0xff] }
 0x462   : > { %v1123_v29 = vadd.f32 %v1122_v2, %v1121_v5  ;;  %v1181_v5 = vld [vmem:[%s2320_s9 + $0x60] sm:$0xff] }
 0x464   : > { %v1125_v33 = vadd.f32 %v1124_v47, %v1123_v29 }
 0x466   : > { %v1127_v35 = vadd.f32 %v1126_v49, %v1125_v33 }
 0x468   : > { %v1129_v38 = vadd.f32 %v1128_v55, %v1127_v35 }
 0x46a   : > { %v1131_v30 = vadd.f32 %v1130_v26, %v1129_v38 }
 0x46c   : > { %v1133_v39 = vadd.f32 %v1132_v41, %v1131_v30 }
 0x46e   : > { %v1135_v24 = vadd.f32 %v1134_v42, %v1133_v39 }
 0x470   : > { %1136 = vadd.xlane.f32.xlu1 %v1135_v24 }
 0x4fd   : > { %v1137_v44 = vpop.xlane.xlu1 %1136 }
 0x4fe   : > { %v1138_v16 = vrot.slane %v1137_v44, 4 }
 0x500   : > { %v1139_v51 = vadd.f32 %v1138_v16, %v1137_v44 }
 0x502   : > { %v1140_v20 = vrot.slane %v1139_v51, 2 }
 0x504   : > { %v1141_v63 = vadd.f32 %v1140_v20, %v1139_v51 }
 0x506   : > { %v1142_v1 = vrot.slane %v1141_v63, 1 }
 0x508   : > { %v1143_v52 = vadd.f32 %v1142_v1, %v1141_v63 }
 0x50a   : > { %1604 = vpush %v1143_v52 }
 0x53b   : > { %s1605_s30 = spop %1604 }
 0x53c   : > { %s1147_s5 = smul.f32 0.00048828125, %s1605_s30 }
 0x53e   : > { %s1148_s6 = sadd.f32 1e-05, %s1147_s5 }
 0x540   : > { %v1149_v8 = vstv %s1148_s6 }
 0x541   : > { %1712 = vrsqrt.f32 %v1149_v8 }
 0x54b   : > { %v1713_v15 = vpop.eup %1712 }
 0x54c   : > { %1606 = vpush %v1713_v15 }
 0x57d   : > { %s1607_s10 = spop %1606 }
 0x57e   : > { %v1152_v6 = vstv %s1607_s10 }
 0x57f   : > { %v1153_v21 = vmul.f32 %v1152_v6, %v2229_v4  ;;  %v1154_v19 = vmul.f32 %v1152_v6, %v2232_v46  ;;  %v1155_v54 = vmul.f32 %v1152_v6, %v2235_v34  ;;  %v1156_v31 = vmul.f32 %v1152_v6, %v2238_v7  ;;  %v1173_v46 = vld [vmem:[%s2320_s9 + $0x20] sm:$0xff]  ;;  %v1174_v34 = vld [vmem:[%s2320_s9 + $0x28] sm:$0xff]  ;;  %v1175_v7 = vld [vmem:[%s2320_s9 + $0x30] sm:$0xff] }
 0x580   : > { %v1157_v14 = vmul.f32 %v1152_v6, %v2245_v28  ;;  %v1158_v59 = vmul.f32 %v1152_v6, %v2250_v17  ;;  %v1159_v45 = vmul.f32 %v1152_v6, %v2257_v53  ;;  %v1160_v4 = vmul.f32 %v1152_v6, %v2263_v32  ;;  %v1176_v53 = vld [vmem:[%s2320_s9 + $0x38] sm:$0xff]  ;;  %v1178_v32 = vld [vmem:[%s2320_s9 + $0x48] sm:$0xff] }
 0x581   : > { %v1161_v22 = vmul.f32 %v1152_v6, %v2269_v18  ;;  %v1162_v60 = vmul.f32 %v1152_v6, %v2275_v58  ;;  %v1163_v28 = vmul.f32 %v1152_v6, %v2281_v40  ;;  %v1164_v17 = vmul.f32 %v1152_v6, %v2287_v56  ;;  %v1179_v58 = vld [vmem:[%s2320_s9 + $0x50] sm:$0xff]  ;;  %v1182_v40 = vld [vmem:[%s2320_s9 + $0x68] sm:$0xff] }
 0x582   : > { %v1165_v0 = vmul.f32 %v1152_v6, %v2293_v23  ;;  %v1166_v18 = vmul.f32 %v1152_v6, %v2299_v25  ;;  %v1167_v62 = vmul.f32 %v1152_v6, %v1087_v9  ;;  %v1168_v37 = vmul.f32 %v1152_v6, %v1088_v12  ;;  %v1183_v56 = vld [vmem:[%s2320_s9 + $0x70] sm:$0xff] }
 0x583   : > { %v1185_v2 = vadd.f32 %v1169_v3, %v1153_v21  ;;  %v1186_v29 = vadd.f32 %v1170_v10, %v1154_v19  ;;  %v1187_v36 = vadd.f32 %v1171_v57, %v1155_v54  ;;  %v1188_v47 = vadd.f32 %v1172_v61, %v1156_v31 }
 0x584   : > { %v1189_v33 = vadd.f32 %v1173_v46, %v1157_v14  ;;  %v1190_v23 = vadd.f32 %v1174_v34, %v1158_v59  ;;  %v1191_v25 = vadd.f32 %v1175_v7, %v1159_v45  ;;  %v1192_v9 = vadd.f32 %v1176_v53, %v1160_v4 }
 0x585   : > { %v1193_v12 = vadd.f32 %v1177_v48, %v1161_v22  ;;  %v1194_v50 = vadd.f32 %v1178_v32, %v1162_v60  ;;  %v1195_v49 = vadd.f32 %v1179_v58, %v1163_v28  ;;  %v1196_v35 = vadd.f32 %v1180_v43, %v1164_v17  ;;  %1201 = vst.msk [vmem:[%s2348_s13] sm:$0xff] %vm306_vm0, %v1185_v2 }
 0x586   : > { %1202 = vst.msk [vmem:[%s2348_s13 + $0x8] sm:$0xff] %vm306_vm0, %v1186_v29  ;;  %1203 = vst.msk [vmem:[%s2348_s13 + $0x10] sm:$0xff] %vm306_vm0, %v1187_v36  ;;  %v1197_v27 = vadd.f32 %v1181_v5, %v1165_v0  ;;  %v1198_v55 = vadd.f32 %v1182_v40, %v1166_v18  ;;  %v1199_v38 = vadd.f32 %v1183_v56, %v1167_v62 }
 0x587   : > { %1204 = vst.msk [vmem:[%s2348_s13 + $0x18] sm:$0xff] %vm306_vm0, %v1188_v47  ;;  %v1200_v13 = vadd.f32 %v1184_v11, %v1168_v37  ;;  %1205 = vst.msk [vmem:[%s2348_s13 + $0x20] sm:$0xff] %vm306_vm0, %v1189_v33 }
 0x588   : > { %1206 = vst.msk [vmem:[%s2348_s13 + $0x28] sm:$0xff] %vm306_vm0, %v1190_v23  ;;  %1207 = vst.msk [vmem:[%s2348_s13 + $0x30] sm:$0xff] %vm306_vm0, %v1191_v25 }
 0x589   : > { %1208 = vst.msk [vmem:[%s2348_s13 + $0x38] sm:$0xff] %vm306_vm0, %v1192_v9  ;;  %1209 = vst.msk [vmem:[%s2348_s13 + $0x40] sm:$0xff] %vm306_vm0, %v1193_v12 }
 0x58a   : > { %1210 = vst.msk [vmem:[%s2348_s13 + $0x48] sm:$0xff] %vm306_vm0, %v1194_v50  ;;  %1211 = vst.msk [vmem:[%s2348_s13 + $0x50] sm:$0xff] %vm306_vm0, %v1195_v49 }
 0x58b   : > { %1212 = vst.msk [vmem:[%s2348_s13 + $0x58] sm:$0xff] %vm306_vm0, %v1196_v35  ;;  %1213 = vst.msk [vmem:[%s2348_s13 + $0x60] sm:$0xff] %vm306_vm0, %v1197_v27 }
 0x58c   : > { %1214 = vst.msk [vmem:[%s2348_s13 + $0x68] sm:$0xff] %vm306_vm0, %v1198_v55  ;;  %1215 = vst.msk [vmem:[%s2348_s13 + $0x70] sm:$0xff] %vm306_vm0, %v1199_v38 }
 0x58d   : > { %1216 = vst.msk [vmem:[%s2348_s13 + $0x78] sm:$0xff] %vm306_vm0, %v1200_v13 }
 0x58e PF: > { %s14_s15 = sadd.s32 1, %s1720_s15  }
 0x58f   : > { %p11_p4 = scmp.ge.s32.totalorder %s14_s15, 4  }
 0x591   :  { %13 = sbr.rel (!%p11_p4) target bundleno = 1 (0x1), region = 75 }

// kernel: forward.5
= control target key start
LH: loop header
LB: loop body
LE: loop exit
PB: predicated region body
PF: predicated region fallthrough
CT: control target
= control target key end

     0   :  { %s1489_s18 = smov 0   ;;  %s1623_s0 = inlined_call_operand.vmem [shape: bf16[2,640,128], index: 0, kind: input, shape index: {}]   ;;  %s1624_s1 = inlined_call_operand.vmem [shape: bf16[32,640], index: 1, kind: input, shape index: {}]   ;;  %s1625_s2 = inlined_call_operand.vmem [shape: f32[2,16,16], index: 2, kind: input, shape index: {}]   ;;  %s1626_s3 = inlined_call_operand.vmem [shape: f32[2,16,128], index: 3, kind: input, shape index: {}]   ;;  %s1627_s4 = inlined_call_operand.vmem [shape: f32[2,64,128], index: 4, kind: input, shape index: {}]   ;;  %s1628_s5 = inlined_call_operand.vmem [shape: f32[2,16,128], index: 5, kind: output, shape index: {}]  }
   0x1 LB: > { %s1159_s19 = sadd.s32 4294967295, %s1457_s18   ;;  %p1163_p0 = scmp.ge.s32.totalorder %s1457_s18, 1  ;;  %s1457_s18 = sphi %s1489_s18, %s15_s18  }
   0x2   : > { %p208_p1 = scmp.lt.s32.totalorder %s1457_s18, 3 }
   0x4   : > { %p209_p2 = pnand %p1163_p0, %p208_p1 }
   0x5   : > { %p247_p3 = scmp.lt.s32.totalorder (!%p209_p2), %s1159_s19, 1  ;;  %v1411_v0 = vld [vmem:[%s1624_s1 + $0x4] ss:$20 sps:$4 sm:$0xff] (!%p209_p2)   ;;  %v1414_v1 = vld [vmem:[%s1624_s1 + $0xc] ss:$20 sps:$4 sm:$0xff] (!%p209_p2)   ;;  %vm887_vm0 = vcmask (!%p209_p2), 130048  }
   0x6   : > { %212 = sbr.rel (%p209_p2) target bundleno = 1111 (0x457), region = 40  ;;  %685 = vmatprep.mubr.bf16.mxu0 (!%p209_p2), %v1411_v0  ;;  %734 = vmatprep.mubr.bf16.mxu1 (!%p209_p2), %v1414_v1  ;;  %v1409_v32 = vld [vmem:[%s1624_s1] ss:$20 sps:$4 sm:$0xff] (!%p209_p2)   ;;  %v1412_v34 = vld [vmem:[%s1624_s1 + $0x8] ss:$20 sps:$4 sm:$0xff] (!%p209_p2)  }
   0x7   : > { %v1420_v36 = vld [vmem:[%s1624_s1 + $0x2c] ss:$20 sps:$4 sm:$0xff] (!%p209_p2)   ;;  %v1422_v39 = vld [vmem:[%s1624_s1 + $0x34] ss:$20 sps:$4 sm:$0xff] (!%p209_p2)   ;;  %v1426_v42 = vld [vmem:[%s1624_s1 + $0x30] ss:$20 sps:$4 sm:$0xff] (!%p209_p2)  }
   0x8   : > { %v1425_v41 = vld [vmem:[%s1624_s1 + $0x28] ss:$20 sps:$4 sm:$0xff] (!%p209_p2)   ;;  %v1429_v44 = vld [vmem:[%s1624_s1 + $0x10] ss:$20 sps:$4 sm:$0xff] (!%p209_p2)   ;;  %v1430_v49 = vld [vmem:[%s1624_s1 + $0x38] ss:$20 sps:$4 sm:$0xff] (!%p209_p2)  }
   0xd   : > { %s1630_s19 = smov (!%p247_p3, %s1159_s19), 1 }
   0xe   : > { %s1356_s24 = smul.u32 320, %s1630_s19  ;;  %s1236_s23 = sshll.u32 %s1630_s19, 6 }
   0xf   : > { %s1585_s26 = scalar_lea.vmem %s1627_s4, %s1236_s23  ;;  %s1235_s29 = sshll.u32 %s1630_s19, 4 }
  0x10   : > { %s1509_s27 = scalar_lea.vmem %s1623_s0, %s1356_s24  ;;  %s256_s7 = scalar_lea.vmem %s1626_s3, %s1235_s29 }
  0x11   : > { %v1377_v2 = vld [vmem:[%s1509_s27 + $0x40] sm:$0xff]   ;;  %v1381_v6 = vld [vmem:[%s1509_s27 + $0x48] sm:$0xff]   ;;  %v1385_v10 = vld [vmem:[%s1509_s27 + $0x50] sm:$0xff]   ;;  %s267_s28 = scalar_lea.vmem %s1628_s5, %s1235_s29 }
  0x12   : > { %v1378_v3 = vld [vmem:[%s1509_s27 + $0xc0] sm:$0xff]   ;;  %1238 = vmatprep.subr.bf16.mxu0 %v1377_v2  ;;  %v1382_v7 = vld [vmem:[%s1509_s27 + $0xc8] sm:$0xff]   ;;  %v1386_v11 = vld [vmem:[%s1509_s27 + $0xd0] sm:$0xff]  }
  0x13   : > { %v1379_v4 = vld [vmem:[%s1509_s27] sm:$0xff]   ;;  %1266 = vmatprep.subr.bf16.mxu1 %v1378_v3  ;;  %v1383_v8 = vld [vmem:[%s1509_s27 + $0x8] sm:$0xff]   ;;  %v1387_v12 = vld [vmem:[%s1509_s27 + $0x10] sm:$0xff]  }
  0x14   : > { %v1380_v5 = vld [vmem:[%s1509_s27 + $0x80] sm:$0xff]   ;;  %1239 = vmatpush3.bf16.msra.mxu0 %v1379_v4  ;;  %v1384_v9 = vld [vmem:[%s1509_s27 + $0x88] sm:$0xff]   ;;  %v1388_v13 = vld [vmem:[%s1509_s27 + $0x90] sm:$0xff]  }
  0x15   : > { %1267 = vmatpush3.bf16.msra.mxu1 %v1380_v5  ;;  %1240 = vmatprep.subr.bf16.mxu0 %v1381_v6  ;;  %v1389_v14 = vld [vmem:[%s1509_s27 + $0x58] sm:$0xff]   ;;  %v1393_v18 = vld [vmem:[%s1509_s27 + $0x60] sm:$0xff]   ;;  %v1397_v22 = vld [vmem:[%s1509_s27 + $0x68] sm:$0xff]  }
  0x16   : > { %1268 = vmatprep.subr.bf16.mxu1 %v1382_v7  ;;  %v1390_v15 = vld [vmem:[%s1509_s27 + $0xd8] sm:$0xff]   ;;  %v1394_v19 = vld [vmem:[%s1509_s27 + $0xe0] sm:$0xff]   ;;  %v1398_v23 = vld [vmem:[%s1509_s27 + $0xe8] sm:$0xff]  }
  0x17   : > { %v1391_v16 = vld [vmem:[%s1509_s27 + $0x18] sm:$0xff]   ;;  %v1395_v20 = vld [vmem:[%s1509_s27 + $0x20] sm:$0xff]   ;;  %v1399_v24 = vld [vmem:[%s1509_s27 + $0x28] sm:$0xff]  }
  0x18   : > { %1241 = vmatpush3.bf16.msra.mxu0 %v1383_v8  ;;  %v1392_v17 = vld [vmem:[%s1509_s27 + $0x98] sm:$0xff]   ;;  %v1396_v21 = vld [vmem:[%s1509_s27 + $0xa0] sm:$0xff]   ;;  %v1400_v25 = vld [vmem:[%s1509_s27 + $0xa8] sm:$0xff]  }
  0x19   : > { %1269 = vmatpush3.bf16.msra.mxu1 %v1384_v9  ;;  %1242 = vmatprep.subr.bf16.mxu0 %v1385_v10  ;;  %v1401_v26 = vld [vmem:[%s1509_s27 + $0x70] sm:$0xff]   ;;  %v1405_v30 = vld [vmem:[%s1509_s27 + $0x78] sm:$0xff]   ;;  %v1415_v37 = vld [vmem:[%s1509_s27 + $0x100] sm:$0xff]  }
  0x1a   : > { %1270 = vmatprep.subr.bf16.mxu1 %v1386_v11  ;;  %v1402_v27 = vld [vmem:[%s1509_s27 + $0xf0] sm:$0xff]   ;;  %v1406_v31 = vld [vmem:[%s1509_s27 + $0xf8] sm:$0xff]   ;;  %v1416_v38 = vld [vmem:[%s1509_s27 + $0x108] sm:$0xff]  }
  0x1b   : > { %v1403_v28 = vld [vmem:[%s1509_s27 + $0x30] sm:$0xff]   ;;  %v1407_v33 = vld [vmem:[%s1509_s27 + $0x38] sm:$0xff]   ;;  %v1419_v45 = vld [vmem:[%s1509_s27 + $0x120] sm:$0xff]  }
  0x1c   : > { %1243 = vmatpush3.bf16.msra.mxu0 %v1387_v12  ;;  %v1404_v29 = vld [vmem:[%s1509_s27 + $0xb0] sm:$0xff]   ;;  %v1408_v35 = vld [vmem:[%s1509_s27 + $0xb8] sm:$0xff]   ;;  %v1424_v46 = vld [vmem:[%s1509_s27 + $0x128] sm:$0xff]  }
  0x1d   : > { %1271 = vmatpush3.bf16.msra.mxu1 %v1388_v13  ;;  %1244 = vmatprep.subr.bf16.mxu0 %v1389_v14  ;;  %v1417_v40 = vld [vmem:[%s1509_s27 + $0x110] sm:$0xff]   ;;  %v1418_v43 = vld [vmem:[%s1509_s27 + $0x118] sm:$0xff]  }
  0x1e   : > { %1272 = vmatprep.subr.bf16.mxu1 %v1390_v15  ;;  %v1427_v47 = vld [vmem:[%s1509_s27 + $0x130] sm:$0xff]   ;;  %v1428_v48 = vld [vmem:[%s1509_s27 + $0x138] sm:$0xff]  }
  0x20   : > { %1245 = vmatpush3.bf16.msra.mxu0 %v1391_v16 }
  0x21   : > { %1273 = vmatpush3.bf16.msra.mxu1 %v1392_v17  ;;  %1246 = vmatprep.subr.bf16.mxu0 %v1393_v18 }
  0x22   : > { %1274 = vmatprep.subr.bf16.mxu1 %v1394_v19 }
  0x24   : > { %1247 = vmatpush3.bf16.msra.mxu0 %v1395_v20 }
  0x25   : > { %1275 = vmatpush3.bf16.msra.mxu1 %v1396_v21  ;;  %1248 = vmatprep.subr.bf16.mxu0 %v1397_v22 }
  0x26   : > { %1276 = vmatprep.subr.bf16.mxu1 %v1398_v23 }
  0x28   : > { %1249 = vmatpush3.bf16.msra.mxu0 %v1399_v24 }
  0x29   : > { %1277 = vmatpush3.bf16.msra.mxu1 %v1400_v25  ;;  %1250 = vmatprep.subr.bf16.mxu0 %v1401_v26 }
  0x2a   : > { %1278 = vmatprep.subr.bf16.mxu1 %v1402_v27 }
  0x2c   : > { %1251 = vmatpush3.bf16.msra.mxu0 %v1403_v28 }
  0x2d   : > { %1279 = vmatpush3.bf16.msra.mxu1 %v1404_v29  ;;  %1252 = vmatprep.subr.bf16.mxu0 %v1405_v30 }
  0x2e   : > { %1280 = vmatprep.subr.bf16.mxu1 %v1406_v31 }
  0x30   : > { %1253 = vmatpush3.bf16.msra.mxu0 %v1407_v33 }
  0x31   : > { %1281 = vmatpush3.bf16.msra.mxu1 %v1408_v35  ;;  %1312 = vmatprep.subr.bf16.mxu0 %v1415_v37 }
  0x33   : > { %686 = vmatmul.mubr.bf16.vlgmr.msra.gmra.mrb[0].mxu0 %v1409_v32 }
  0x34   : > { %735 = vmatmul.mubr.bf16.vlgmr.msra.gmra.mrb[0].mxu1 %v1412_v34  ;;  %1313 = vmatpush3.bf16.msra.mxu0 %v1415_v37 }
  0x35   : > { %1314 = vmatprep.subr.bf16.mxu0 %v1416_v38  ;;  %693 = vmatprep.mubr.bf16.mxu0 %v1420_v36 }
  0x36   : > { %742 = vmatprep.mubr.bf16.mxu1 %v1422_v39 }
  0x38   : > { %1315 = vmatpush3.bf16.msra.mxu0 %v1416_v38 }
  0x39   : > { %1316 = vmatprep.subr.bf16.mxu0 %v1417_v40 }
  0x3b   : > { %694 = vmatmul.mubr.bf16.gmra.mrb[4].mxu0 %v1425_v41 }
  0x3c   : > { %1317 = vmatpush3.bf16.msra.mxu0 %v1417_v40  ;;  %743 = vmatmul.mubr.bf16.gmra.mrb[4].mxu1 %v1426_v42 }
  0x3d   : > { %1318 = vmatprep.subr.bf16.mxu0 %v1418_v43  ;;  %1328 = vmatprep.mubr.bf16.mxu0 %v1429_v44  ;;  %v1223_v44 = vld [vmem:[%s1585_s26 + $0x30] sm:$0xff] }
  0x40   : > { %1319 = vmatpush3.bf16.msra.mxu0 %v1418_v43 }
  0x41   : > { %1320 = vmatprep.subr.bf16.mxu0 %v1419_v45 }
  0x44   : > { %1321 = vmatpush3.bf16.msra.mxu0 %v1419_v45  ;;  %v1224_v45 = vld [vmem:[%s1585_s26 + $0x38] sm:$0xff] }
  0x45   : > { %1322 = vmatprep.subr.bf16.mxu0 %v1424_v46 }
  0x48   : > { %1323 = vmatpush3.bf16.msra.mxu0 %v1424_v46  ;;  %v1225_v46 = vld [vmem:[%s1625_s2 + $0x10] sm:$0xff] }
  0x49   : > { %1324 = vmatprep.subr.bf16.mxu0 %v1427_v47  ;;  %1336 = vmatprep.mubr.msk.f32.mxu1 %vm887_vm0, %v1225_v46 }
  0x4c   : > { %1325 = vmatpush3.bf16.msra.mxu0 %v1427_v47  ;;  %v1346_v47 = vpack.c.bf16 %v1224_v45, %v1223_v44 }
  0x4d   : > { %1326 = vmatprep.subr.bf16.mxu0 %v1428_v48 }
  0x4e   : > { %1347 = vmatprep.subr.bf16.mxu1 %v1346_v47 }
  0x4f   : > { %1349 = vmatpush3.bf16.msra.mxu1 %v1346_v47 }
  0x50   : > { %1327 = vmatpush3.bf16.msra.mxu0 %v1428_v48  ;;  %v880_v48 = vld [vmem:[%s256_s7] sm:$0xff] }
  0x53   : > { %1329 = vmatmul.mubr.bf16.vlgmr.msra.gmra.mrb[8].mxu0 %v1430_v49  ;;  %v881_v49 = vld [vmem:[%s256_s7 + $0x8] sm:$0xff] }
 0x106   : > { %v1254_v50 = vpop.f32.mrb[0].mxu0 }
 0x107   : > { %v1282_v51 = vpop.f32.mrb[0].mxu1  ;;  %v1255_v52 = vpop.f32.mrb[1].mxu0 }
 0x108   : > { %v1256_v53 = vadd.f32 %v1255_v52, %v1254_v50  ;;  %v1283_v54 = vpop.f32.mrb[1].mxu1  ;;  %v1257_v55 = vpop.f32.mrb[2].mxu0  ;;  %v1350_v50 = vpack.c.bf16 %v881_v49, %v880_v48  ;;  %v882_v52 = vld [vmem:[%s1625_s2] sm:$0xff] }
 0x109   : > { %v1284_v56 = vadd.f32 %v1283_v54, %v1282_v51  ;;  %v1285_v57 = vpop.f32.mrb[2].mxu1  ;;  %v1258_v58 = vpop.f32.mrb[3].mxu0  ;;  %v1226_v51 = vld [vmem:[%s1625_s2 + $0x18] sm:$0xff] }
 0x10a   : > { %v1259_v59 = vadd.f32 %v1258_v58, %v1257_v55  ;;  %v1286_v60 = vpop.f32.mrb[3].mxu1  ;;  %1351 = vmatprep.subr.bf16.mxu1 %v1350_v50  ;;  %1337 = vmatmul.mubr.msk.f32.vlgmr.msra.gmra.mrb[8].mxu1 %vm887_vm0, %v1226_v51 }
 0x10b   : > { %v1287_v61 = vadd.f32 %v1286_v60, %v1285_v57  ;;  %v737_v62 = vadd.f32 %v1284_v56, %v1256_v53  ;;  %1353 = vmatpush3.bf16.msra.mxu1 %v1350_v50  ;;  %1343 = vmatprep.mubr.msk.f32.mxu1 %vm887_vm0, %v882_v52  ;;  %v883_v53 = vld [vmem:[%s1625_s2 + $0x8] sm:$0xff] }
 0x10d   : > { %v740_v63 = vadd.f32 %v1287_v61, %v1259_v59 }
 0x10e   : > { %v1260_v0 = vpop.f32.mrb[4].mxu0 }
 0x10f   : > { %v1288_v1 = vpop.f32.mrb[4].mxu1  ;;  %v1261_v2 = vpop.f32.mrb[5].mxu0 }
 0x110   : > { %v1262_v3 = vadd.f32 %v1261_v2, %v1260_v0  ;;  %v1289_v4 = vpop.f32.mrb[5].mxu1  ;;  %v1263_v5 = vpop.f32.mrb[6].mxu0  ;;  %v1221_v0 = vld [vmem:[%s1585_s26 + $0x20] sm:$0xff] }
 0x111   : > { %v1290_v6 = vadd.f32 %v1289_v4, %v1288_v1  ;;  %v1291_v7 = vpop.f32.mrb[6].mxu1  ;;  %v1264_v8 = vpop.f32.mrb[7].mxu0  ;;  %v1222_v1 = vld [vmem:[%s1585_s26 + $0x28] sm:$0xff] }
 0x112   : > { %v1265_v9 = vadd.f32 %v1264_v8, %v1263_v5  ;;  %v1292_v10 = vpop.f32.mrb[7].mxu1  ;;  %1344 = vmatmul.mubr.msk.f32.vlgmr.msra.gmra.mrb[8].mxu1 %vm887_vm0, %v883_v53 }
 0x113   : > { %v1293_v11 = vadd.f32 %v1292_v10, %v1291_v7  ;;  %v745_v12 = vadd.f32 %v1290_v6, %v1262_v3 }
 0x115   : > { %v748_v13 = vadd.f32 %v1293_v11, %v1265_v9 }
 0x126   : > { %v1330_v14 = vpop.f32.mrb[8].mxu0 }
 0x127   : > { %v1575_v15 = vadd.f32 %v1330_v14, %v745_v12  ;;  %v785_v16 = vpop.f32.mrb[9].mxu0 }
 0x128   : > { %v786_v17 = vadd.f32 %v785_v16, %v737_v62  ;;  %v1331_v18 = vpop.f32.mrb[10].mxu0 }
 0x129   : > { %v1577_v19 = vadd.f32 %v1331_v18, %v748_v13  ;;  %v788_v20 = vpop.f32.mrb[11].mxu0 }
 0x12a   : > { %v789_v21 = vadd.f32 %v788_v20, %v740_v63 }
 0x12b   : > { %v838_v22 = vadd.f32 %v1577_v19, %v1575_v15 }
 0x12c   : > { %v800_v23 = vadd.f32 %v789_v21, %v786_v17 }
 0x12d   : > { %839 = vadd.xlane.f32.xlu1 %v838_v22 }
 0x12e   : > { %801 = vadd.xlane.f32.xlu0 %v800_v23 }
 0x1ba   : > { %v840_v54 = vpop.xlane.xlu1 %839 }
 0x1bb   : > { %v802_v24 = vpop.xlane.xlu0 %801  ;;  %v841_v55 = vrot.slane %v840_v54, 4 }
 0x1bc   : > { %v803_v25 = vrot.slane %v802_v24, 4 }
 0x1bd   : > { %v842_v56 = vadd.f32 %v841_v55, %v840_v54 }
 0x1be   : > { %v804_v26 = vadd.f32 %v803_v25, %v802_v24 }
 0x1bf   : > { %v843_v57 = vrot.slane %v842_v56, 2 }
 0x1c0   : > { %v805_v27 = vrot.slane %v804_v26, 2 }
 0x1c1   : > { %v844_v59 = vadd.f32 %v843_v57, %v842_v56 }
 0x1c2   : > { %v806_v28 = vadd.f32 %v805_v27, %v804_v26 }
 0x1c3   : > { %v845_v60 = vrot.slane %v844_v59, 1 }
 0x1c4   : > { %v807_v29 = vrot.slane %v806_v28, 1 }
 0x1c5   : > { %v846_v62 = vadd.f32 %v845_v60, %v844_v59 }
 0x1c6   : > { %v808_v30 = vadd.f32 %v807_v29, %v806_v28 }
 0x1c8   : > { %1357 = vpush %v808_v30 }
 0x1f9   : > { %s1358_s21 = spop %1357 }
 0x1fa   : > { %s812_s22 = smul.f32 0.00048828125, %s1358_s21 }
 0x1fc   : > { %v813_v31 = vstv %s812_s22 }
 0x1fd   : > { %v814_v32 = vsub.f32 %v786_v17, %v813_v31  ;;  %v815_v33 = vsub.f32 %v789_v21, %v813_v31  ;;  %v1345_v21 = vpop.f32.mrb[8].mxu1 }
 0x1fe   : > { %v1041_v22 = vpop.f32.mrb[9].mxu1 }
 0x1ff   : > { %v816_v34 = vmul.f32 %v814_v32, %v814_v32  ;;  %v817_v35 = vmul.f32 %v815_v33, %v815_v33 }
 0x201   : > { %v818_v36 = vadd.f32 %v817_v35, %v816_v34 }
 0x203   : > { %819 = vadd.xlane.f32.xlu0 %v818_v36 }
 0x290   : > { %v820_v37 = vpop.xlane.xlu0 %819 }
 0x291   : > { %v821_v38 = vrot.slane %v820_v37, 4 }
 0x293   : > { %v822_v39 = vadd.f32 %v821_v38, %v820_v37 }
 0x295   : > { %v823_v40 = vrot.slane %v822_v39, 2 }
 0x297   : > { %v824_v41 = vadd.f32 %v823_v40, %v822_v39 }
 0x299   : > { %v825_v42 = vrot.slane %v824_v41, 1 }
 0x29b   : > { %v826_v43 = vadd.f32 %v825_v42, %v824_v41 }
 0x29d   : > { %1359 = vpush %v826_v43 }
 0x2ce   : > { %s1360_s14 = spop %1359 }
 0x2cf   : > { %s830_s15 = smul.f32 0.00048828125, %s1360_s14 }
 0x2d1   : > { %s831_s16 = sadd.f32 1e-05, %s830_s15 }
 0x2d3   : > { %v832_v58 = vstv %s831_s16 }
 0x2d4   : > { %1431 = vrsqrt.f32 %v832_v58 }
 0x2de   : > { %v1432_v61 = vpop.eup %1431 }
 0x2df   : > { %1361 = vpush %v1432_v61 }
 0x2e0   : > { %1363 = vpush %v846_v62 }
 0x310   : > { %s1362_s17 = spop %1361 }
 0x311   : > { %v835_v63 = vstv %s1362_s17  ;;  %s1364_s20 = spop %1363 }
 0x312   : > { %v836_v2 = vmul.f32 %v835_v63, %v814_v32  ;;  %v837_v3 = vmul.f32 %v835_v63, %v815_v33  ;;  %s850_s21 = smul.f32 0.00048828125, %s1364_s20 }
 0x314   : > { %v1052_v4 = vadd.f32 %v1221_v0, %v836_v2  ;;  %v1053_v5 = vadd.f32 %v1222_v1, %v837_v3  ;;  %v851_v6 = vstv %s850_s21 }
 0x315   : > { %v852_v7 = vsub.f32 %v1575_v15, %v851_v6  ;;  %v853_v8 = vsub.f32 %v1577_v19, %v851_v6 }
 0x317   : > { %v854_v9 = vmul.f32 %v852_v7, %v852_v7  ;;  %v855_v10 = vmul.f32 %v853_v8, %v853_v8 }
 0x319   : > { %v856_v11 = vadd.f32 %v855_v10, %v854_v9 }
 0x31b   : > { %857 = vadd.xlane.f32.xlu1 %v856_v11 }
 0x3a8   : > { %v858_v12 = vpop.xlane.xlu1 %857 }
 0x3a9   : > { %v859_v13 = vrot.slane %v858_v12, 4 }
 0x3ab   : > { %v860_v14 = vadd.f32 %v859_v13, %v858_v12 }
 0x3ad   : > { %v861_v16 = vrot.slane %v860_v14, 2 }
 0x3af   : > { %v862_v17 = vadd.f32 %v861_v16, %v860_v14 }
 0x3b1   : > { %v863_v18 = vrot.slane %v862_v17, 1 }
 0x3b3   : > { %v864_v20 = vadd.f32 %v863_v18, %v862_v17 }
 0x3b5   : > { %1365 = vpush %v864_v20 }
 0x3e6   : > { %s1366_s22 = spop %1365 }
 0x3e7   : > { %s868_s23 = smul.f32 0.00048828125, %s1366_s22 }
 0x3e9   : > { %s869_s24 = sadd.f32 1e-05, %s868_s23 }
 0x3eb   : > { %v870_v15 = vstv %s869_s24 }
 0x3ec   : > { %1433 = vrsqrt.f32 %v870_v15 }
 0x3f6   : > { %v1434_v19 = vpop.eup %1433 }
 0x3f7   : > { %1367 = vpush %v1434_v19 }
 0x428   : > { %s1368_s25 = spop %1367 }
 0x429   : > { %v873_v23 = vstv %s1368_s25 }
 0x42a   : > { %v874_v24 = vmul.f32 %v873_v23, %v852_v7  ;;  %v875_v25 = vmul.f32 %v873_v23, %v853_v8 }
 0x42c   : > { %v1054_v26 = vadd.f32 %v1052_v4, %v874_v24  ;;  %v1055_v27 = vadd.f32 %v1053_v5, %v875_v25 }
 0x42e   : > { %1435 = vtanh.f32 %v1054_v26 }
 0x42f   : > { %1437 = vtanh.f32 %v1055_v27 }
 0x438   : > { %v1436_v28 = vpop.eup %1435 }
 0x439   : > { %v1438_v29 = vpop.eup %1437  ;;  %v1231_v30 = vmul.f32 -1.442695, %v1436_v28 }
 0x43a   : > { %v1232_v31 = vmul.f32 -1.442695, %v1438_v29 }
 0x43b   : > { %1439 = vpow2.f32 %v1231_v30 }
 0x43c   : > { %1441 = vpow2.f32 %v1232_v31 }
 0x43d   : > { %1443 = vtanh.f32 %v1345_v21 }
 0x43e   : > { %1445 = vtanh.f32 %v1041_v22 }
 0x445   : > { %v1440_v32 = vpop.eup %1439 }
 0x446   : > { %v1442_v33 = vpop.eup %1441  ;;  %v1064_v34 = vadd.f32 1.0, %v1440_v32 }
 0x447   : > { %v1065_v35 = vadd.f32 1.0, %v1442_v33  ;;  %v1444_v36 = vpop.eup %1443 }
 0x448   : > { %1447 = vrcp.f32 %v1064_v34  ;;  %v1446_v37 = vpop.eup %1445 }
 0x449   : > { %1449 = vrcp.f32 %v1065_v35 }
 0x452   : > { %v1448_v38 = vpop.eup %1447 }
 0x453   : > { %v1450_v39 = vpop.eup %1449  ;;  %v1070_v40 = vmul.f32 %v1448_v38, %v1446_v37 }
 0x454   : > { %v1071_v41 = vmul.f32 %v1450_v39, %v1444_v36 }
 0x455   : > { %1072 = vst [vmem:[%s267_s28] sm:$0xff] %v1070_v40 }
 0x456   : > { %1073 = vst [vmem:[%s267_s28 + $0x8] sm:$0xff] %v1071_v41 }
 0x457 PF: > { %s15_s18 = sadd.s32 1, %s1457_s18  }
 0x458   : > { %p12_p4 = scmp.ge.s32.totalorder %s15_s18, 4  }
 0x45a   :  { %14 = sbr.rel (!%p12_p4) target bundleno = 1 (0x1), region = 77 }

</bundles_post_ra>
